<compile_context>
chip_gen: v5e
topology: v5e:2x2
jax: 0.10.0
libtpu: 0.0.40
codegen_flags: <defaults>
</compile_context>

<pallas_src>
import functools
import numpy as np

import jax
import jax.numpy as jnp
from jax.experimental import pallas as pl
from jax.experimental.pallas import tpu as pltpu

# ----------------------------------------------------------------------------
# Synthetic stand-ins for the pysc2 globals used by the original module.
# ----------------------------------------------------------------------------
NUM_FUNCTIONS = 8
ACTION_TYPES = ("arg_screen", "arg_minimap", "arg_queued", "arg_select")
IS_SPATIAL = {"arg_screen": True, "arg_minimap": True,
              "arg_queued": False, "arg_select": False}
NONSPATIAL_SIZES = {"arg_queued": 2, "arg_select": 5}

GROUP = 128                              # lane-aligned head-group width
_VMEM_LIMIT = 48 * 1024 * 1024           # under v7x 64MiB physical, > v5e 16MiB default


# ----------------------------------------------------------------------------
# Pallas kernels
# ----------------------------------------------------------------------------
def _conv_pair_kernel(cs_ref, cm_ref, ws_ref, wm_ref, bs_ref, bm_ref, o_ref, *, oc):
    """Fused screen+minimap conv layer as transposed im2col matmuls.

    cs/cm : [C*K*K, T] bf16 patch tile (rows ordered (c, kh, kw), lanes = (b,oh,ow)).
    ws/wm : [O, C*K*K] bf16 conv weights (torch OIHW reshape), resident.
    o     : [2*O, T] bf16; rows 0:O screen, O:2O minimap.  bias+ReLU in f32.
    """
    ys = jnp.dot(ws_ref[...], cs_ref[...], preferred_element_type=jnp.float32)
    ym = jnp.dot(wm_ref[...], cm_ref[...], preferred_element_type=jnp.float32)
    o_ref[0:oc, :] = jnp.maximum(ys + bs_ref[...], 0.0).astype(o_ref.dtype)
    o_ref[oc:2 * oc, :] = jnp.maximum(ym + bm_ref[...], 0.0).astype(o_ref.dtype)


def _tail_kernel(s_ref, m_ref, f_ref, ws_ref, wm_ref, wf_ref, b1_ref,
                 wsm_ref, bsm_ref, wx_ref, bx_ref, wy_ref, by_ref,
                 small_ref, sp_ref, *, n_groups):
    """linear_1 + all heads fused in one kernel (bf16 matmuls, f32 elementwise)."""
    f32 = jnp.float32
    bf16 = jnp.bfloat16

    def softmax(a):                      # f32 in/out; denom via EUP approx recip
        a = a - jnp.max(a, axis=-1, keepdims=True)
        e = jnp.exp(a)
        return e * pl.reciprocal(jnp.sum(e, axis=-1, keepdims=True), approx=True)

    # linear_1: concat expressed as row-split dots.
    h = jnp.dot(s_ref[...], ws_ref[...], preferred_element_type=f32)
    h = h + jnp.dot(m_ref[...], wm_ref[...], preferred_element_type=f32)
    tf = jnp.tanh(f_ref[...]).astype(bf16)               # tanh stays f32 (EUP)
    h = h + jnp.dot(tf, wf_ref[...], preferred_element_type=f32)
    h = jnp.maximum(h + b1_ref[...], 0.0)                # [B, 256] f32
    hb = h.astype(bf16)

    # Small heads (value | act | queued | select): one dot into 128-lane-aligned
    # groups; softmax groups carry -1e30 bias padding so padded lanes give
    # exp()==0.  All stores are full-width 128-lane aligned stores into ONE slab.
    z = jnp.dot(hb, wsm_ref[...], preferred_element_type=f32) + bsm_ref[...]
    small_ref[:, 0:GROUP] = z[:, 0:GROUP]                # value head: no softmax
    for g in range(1, n_groups):
        small_ref[:, g * GROUP:(g + 1) * GROUP] = softmax(
            z[:, g * GROUP:(g + 1) * GROUP])

    # Spatial head: separate narrow dots (no lane-unaligned z slices), then
    # flatten outer(y, x) onto 1024 lanes with 0/1 expansion matmuls whose
    # matrices are generated in-kernel (no HBM constants, MXU is idle anyway):
    #   (y @ E)[b, k] = y[b, k // 32]     (x @ F)[b, k] = x[b, k % 32]
    xf = jnp.dot(hb, wx_ref[...], preferred_element_type=f32) + bx_ref[...]
    yf = jnp.dot(hb, wy_ref[...], preferred_element_type=f32) + by_ref[...]
    rows = jax.lax.broadcasted_iota(jnp.int32, (32, 1024), 0)
    kidx = jax.lax.broadcasted_iota(jnp.int32, (32, 1024), 1)
    e_row = jnp.where(rows == (kidx >> 5), 1.0, 0.0).astype(bf16)   # [32, 1024]
    f_col = jnp.where(rows == (kidx & 31), 1.0, 0.0).astype(bf16)
    ye = jnp.dot(yf.astype(bf16), e_row, preferred_element_type=f32)
    xe = jnp.dot(xf.astype(bf16), f_col, preferred_element_type=f32)
    sp_ref[...] = softmax(ye * xe)                       # [B, 1024]


# ----------------------------------------------------------------------------
# XLA glue: transposed im2col (channel-major rows), padding, conv wrapper
# ----------------------------------------------------------------------------
def _im2col_T(x_cbhw, k, stride, oh, ow):
    """[C, B, Hp, Wp] (padded, channel-major) -> [C*k*k, B*oh*ow]."""
    # TODO(synk): patch extraction stays in XLA glue; a fully in-kernel gather
    # needs strided manual DMA and has no lane-dense layout at these tiny sizes.
    c, b = x_cbhw.shape[0], x_cbhw.shape[1]
    taps = []
    for kh in range(k):
        for kw in range(k):
            taps.append(x_cbhw[:, :, kh:kh + stride * oh:stride,
                               kw:kw + stride * ow:stride])       # [C, B, oh, ow]
    col = jnp.stack(taps, axis=1)                                 # [C, k*k, B, oh, ow]
    return col.reshape(c * k * k, b * oh * ow)


def _round_up(n, m):
    return ((n + m - 1) // m) * m


def _lane_tile(m):
    for t in (1024, 512):          # big lane tiles pipeline near HBM roofline
        if m >= t:
            return t
    return 128                      # minimum lane-dense tile


def _pad_cols(col, m_pad):
    m = col.shape[1]
    if m == m_pad:
        return col
    return jnp.pad(col, ((0, 0), (0, m_pad - m)))


def _conv_pair(col_s, col_m, w_s, w_m, b_s, b_m, lane_tile):
    oc = w_s.shape[0]
    ks, m = col_s.shape
    km = col_m.shape[0]
    return pl.pallas_call(
        functools.partial(_conv_pair_kernel, oc=oc),
        grid_spec=pltpu.PrefetchScalarGridSpec(
            num_scalar_prefetch=0,
            grid=(m // lane_tile,),
            in_specs=[
                pl.BlockSpec((ks, lane_tile), lambda i: (0, i)),
                pl.BlockSpec((km, lane_tile), lambda i: (0, i)),
                pl.BlockSpec((oc, ks), lambda i: (0, 0)),   # resident weights
                pl.BlockSpec((oc, km), lambda i: (0, 0)),
                pl.BlockSpec((oc, 1), lambda i: (0, 0)),
                pl.BlockSpec((oc, 1), lambda i: (0, 0)),
            ],
            out_specs=pl.BlockSpec((2 * oc, lane_tile), lambda i: (0, i)),
        ),
        out_shape=jax.ShapeDtypeStruct((2 * oc, m), jnp.bfloat16),
        compiler_params=pltpu.CompilerParams(
            dimension_semantics=("parallel",),
            vmem_limit_bytes=_VMEM_LIMIT),
    )(col_s, col_m, w_s, w_m, b_s.reshape(oc, 1), b_m.reshape(oc, 1))


# ----------------------------------------------------------------------------
# Parameter init (deterministic, PyTorch-default-like U(-1/sqrt(fan_in), ...))
# ----------------------------------------------------------------------------
def _init_linear(key, fan_in, fan_out):
    kw, kb = jax.random.split(key)
    bound = 1.0 / float(np.sqrt(fan_in))
    w = jax.random.uniform(kw, (fan_in, fan_out), jnp.float32, -bound, bound)
    b = jax.random.uniform(kb, (fan_out,), jnp.float32, -bound, bound)
    return w, b


def _init_conv(key, cin, cout, k):
    kw, kb = jax.random.split(key)
    bound = 1.0 / float(np.sqrt(cin * k * k))
    w = jax.random.uniform(kw, (cout, cin, k, k), jnp.float32, -bound, bound)
    b = jax.random.uniform(kb, (cout,), jnp.float32, -bound, bound)
    return w, b


def init_params(key):
    keys = jax.random.split(key, 16)
    p = {}
    p["c1s_w"], p["c1s_b"] = _init_conv(keys[0], 27, 16, 8)
    p["c1m_w"], p["c1m_b"] = _init_conv(keys[1], 11, 16, 8)
    p["c2s_w"], p["c2s_b"] = _init_conv(keys[2], 16, 32, 4)
    p["c2m_w"], p["c2m_b"] = _init_conv(keys[3], 16, 32, 4)
    p["l1_w"], p["l1_b"] = _init_linear(keys[4], 11 + 32 * 4 * 4 + 32 * 4 * 4, 256)
    p["l2_w"], p["l2_b"] = _init_linear(keys[5], 256, 1)
    p["l3_w"], p["l3_b"] = _init_linear(keys[6], 256, NUM_FUNCTIONS)
    p["lx_w"], p["lx_b"] = _init_linear(keys[7], 256, 32)
    p["ly_w"], p["ly_b"] = _init_linear(keys[8], 256, 32)
    # TODO(synk): conv3 (75->1, 1x1) is defined in the torch __init__ but never
    # used in forward(); intentionally not instantiated here.
    i = 9
    p["mylinear"] = {}
    for name in ACTION_TYPES:
        if not IS_SPATIAL[name]:
            p["mylinear"][name] = _init_linear(keys[i], 256, NONSPATIAL_SIZES[name])
            i += 1
    return p


# ----------------------------------------------------------------------------
# Forward pass (3 pallas_calls)
# ----------------------------------------------------------------------------
def cnn_forward(params, screen, minimap, flat):
    B = screen.shape[0]
    bf16 = jnp.bfloat16

    # ---- conv stage: two fused (screen+minimap) gridded Pallas matmuls ----
    xs = jnp.pad(screen.astype(bf16), ((0, 0), (0, 0), (2, 2), (2, 2))).transpose(1, 0, 2, 3)
    xm = jnp.pad(minimap.astype(bf16), ((0, 0), (0, 0), (2, 2), (2, 2))).transpose(1, 0, 2, 3)
    col1_s = _im2col_T(xs, 8, 4, 8, 8)                      # [1728, B*64] bf16
    col1_m = _im2col_T(xm, 8, 4, 8, 8)                      # [704,  B*64]
    m1 = B * 64
    t1 = _lane_tile(m1)
    m1p = _round_up(m1, t1)
    o1 = _conv_pair(_pad_cols(col1_s, m1p), _pad_cols(col1_m, m1p),
                    params["c1s_w"].reshape(16, -1).astype(bf16),
                    params["c1m_w"].reshape(16, -1).astype(bf16),
                    params["c1s_b"], params["c1m_b"], t1)[:, :m1]   # [32, B*64] bf16

    y1p = jnp.pad(o1.reshape(32, B, 8, 8), ((0, 0), (0, 0), (1, 1), (1, 1)))
    col2_s = _im2col_T(y1p[0:16], 4, 2, 4, 4)               # [256, B*16]
    col2_m = _im2col_T(y1p[16:32], 4, 2, 4, 4)
    m2 = B * 16
    t2 = _lane_tile(m2)
    m2p = _round_up(m2, t2)                                 # lane pad to >=128
    o2 = _conv_pair(_pad_cols(col2_s, m2p), _pad_cols(col2_m, m2p),
                    params["c2s_w"].reshape(32, -1).astype(bf16),
                    params["c2m_w"].reshape(32, -1).astype(bf16),
                    params["c2s_b"], params["c2m_b"], t2)[:, :m2]   # [64, B*16] bf16

    # channel-major rows -> torch NCHW flatten order (tiny ~B KiB transpose)
    o2r = o2.reshape(64, B, 16).transpose(1, 0, 2)          # [B, 64, 16]
    s_flat = o2r[:, 0:32, :].reshape(B, 512)                # (c, h, w) order, bf16
    m_flat = o2r[:, 32:64, :].reshape(B, 512)

    # ---- tail weights: split W1 rows; pack small heads into 128-lane groups ----
    w1 = params["l1_w"]                                     # [1035, 256]
    ws = w1[:512].astype(bf16)
    wm = w1[512:1024].astype(bf16)
    wf = w1[1024:].astype(bf16)
    ns_names = [n for n in ACTION_TYPES if not IS_SPATIAL[n]]
    head_ws = ([params["l2_w"], params["l3_w"]]
               + [params["mylinear"][n][0] for n in ns_names])
    head_bs = ([params["l2_b"], params["l3_b"]]
               + [params["mylinear"][n][1] for n in ns_names])
    n_groups = len(head_ws)                                 # value, act, queued, select
    w_cols, b_cols = [], []
    for gi, (w, b) in enumerate(zip(head_ws, head_bs)):
        sz = w.shape[1]
        w_cols.append(jnp.pad(w, ((0, 0), (0, GROUP - sz))))
        pad_val = 0.0 if gi == 0 else -1e30                 # -inf pad for softmax groups
        b_cols.append(jnp.pad(b, (0, GROUP - sz), constant_values=pad_val))
    w_small = jnp.concatenate(w_cols, axis=1).astype(bf16)  # [256, n_groups*128]
    b_small = jnp.concatenate(b_cols).reshape(1, -1).astype(jnp.float32)

    small, spatial = pl.pallas_call(
        functools.partial(_tail_kernel, n_groups=n_groups),
        out_shape=(jax.ShapeDtypeStruct((B, n_groups * GROUP), jnp.float32),
                   jax.ShapeDtypeStruct((B, 1024), jnp.float32)),
        compiler_params=pltpu.CompilerParams(vmem_limit_bytes=_VMEM_LIMIT),
    )(s_flat, m_flat, flat, ws, wm, wf, params["l1_b"].reshape(1, -1),
      w_small, b_small,
      params["lx_w"].astype(bf16), params["lx_b"].reshape(1, -1),
      params["ly_w"].astype(bf16), params["ly_b"].reshape(1, -1))

    # slice the lane-padded slab apart on the XLA side
    value = small[:, 0]
    act_prob = small[:, GROUP:GROUP + NUM_FUNCTIONS]
    args_out = {}
    gi = 2
    for name in ACTION_TYPES:
        if IS_SPATIAL[name]:
            # arg_screen / arg_minimap share linear_x / linear_y in the torch
            # model, so their outputs are identical -> computed once, reused.
            args_out[name] = spatial
        else:
            args_out[name] = small[:, gi * GROUP:gi * GROUP + NONSPATIAL_SIZES[name]]
            gi += 1
    policy = (act_prob, args_out)
    return policy, value


# ----------------------------------------------------------------------------
# Pure-JAX reference (for a loose numerical sanity check)
# ----------------------------------------------------------------------------
def ref_forward(p, screen, minimap, flat):
    hp = jax.lax.Precision.HIGHEST

    def conv(x, w, b, stride, pad):
        y = jax.lax.conv_general_dilated(
            x, w, (stride, stride), [(pad, pad), (pad, pad)],
            dimension_numbers=("NCHW", "OIHW", "NCHW"), precision=hp)
        return jax.nn.relu(y + b[None, :, None, None])

    B = screen.shape[0]
    s = conv(screen, p["c1s_w"], p["c1s_b"], 4, 2)
    s = conv(s, p["c2s_w"], p["c2s_b"], 2, 1).reshape(B, -1)
    m = conv(minimap, p["c1m_w"], p["c1m_b"], 4, 2)
    m = conv(m, p["c2m_w"], p["c2m_b"], 2, 1).reshape(B, -1)
    state = jnp.concatenate([s, m, jnp.tanh(flat)], axis=1)
    flt = jax.nn.relu(state @ p["l1_w"] + p["l1_b"])
    value = (flt @ p["l2_w"] + p["l2_b"]).reshape(-1)
    act_prob = jax.nn.softmax(flt @ p["l3_w"] + p["l3_b"], axis=1)
    args = {}
    for name in ACTION_TYPES:
        if IS_SPATIAL[name]:
            xf = (flt @ p["lx_w"] + p["lx_b"]).reshape(B, 1, 32)
            yf = (flt @ p["ly_w"] + p["ly_b"]).reshape(B, 32, 1)
            args[name] = jax.nn.softmax(jnp.matmul(yf, xf).reshape(B, -1), axis=1)
        else:
            w, b = p["mylinear"][name]
            args[name] = jax.nn.softmax(flt @ w + b, axis=1)
    return (act_prob, args), value


# ----------------------------------------------------------------------------
if __name__ == "__main__":
    key = jax.random.PRNGKey(0)
    kp, ks, km, kf = jax.random.split(key, 4)
    params = init_params(kp)

    B = 2
    # 32x32 spatial inputs are implied by linear_1's 32*4*4 feature count.
    screen = jax.random.normal(ks, (B, 27, 32, 32), jnp.float32)
    minimap = jax.random.normal(km, (B, 11, 32, 32), jnp.float32)
    flat = jax.random.normal(kf, (B, 11), jnp.float32)

    forward = jax.jit(cnn_forward)
    (act_prob, args_out), value = forward(params, screen, minimap, flat)
    jax.block_until_ready((act_prob, args_out, value))

    # structural checks
    assert value.shape == (B,)
    assert act_prob.shape == (B, NUM_FUNCTIONS)
    assert args_out["arg_screen"].shape == (B, 32 * 32)
    assert args_out["arg_minimap"].shape == (B, 32 * 32)
    assert args_out["arg_queued"].shape == (B, NONSPATIAL_SIZES["arg_queued"])
    assert args_out["arg_select"].shape == (B, NONSPATIAL_SIZES["arg_select"])

    # loose numerical check against pure-JAX reference (bf16 matmul operands)
    (r_prob, r_args), r_value = ref_forward(params, screen, minimap, flat)
    np.testing.assert_allclose(np.asarray(act_prob), np.asarray(r_prob),
                               rtol=5e-2, atol=5e-2)
    np.testing.assert_allclose(np.asarray(value), np.asarray(r_value),
                               rtol=5e-2, atol=5e-2)
    for name in ACTION_TYPES:
        np.testing.assert_allclose(np.asarray(args_out[name]),
                                   np.asarray(r_args[name]),
                                   rtol=5e-2, atol=5e-2)

    print("KERNEL_OK")
</pallas_src>

<mosaic_0001>
module attributes {stable_mosaic.version = 11 : i64} {
  func.func @_conv_pair_kernel(%arg0: i32, %arg1: memref<1728x128xbf16, #tpu.memory_space<vmem>>, %arg2: memref<704x128xbf16, #tpu.memory_space<vmem>>, %arg3: memref<16x1728xbf16, #tpu.memory_space<vmem>>, %arg4: memref<16x704xbf16, #tpu.memory_space<vmem>>, %arg5: memref<16x1xf32, #tpu.memory_space<vmem>>, %arg6: memref<16x1xf32, #tpu.memory_space<vmem>>, %arg7: memref<32x128xbf16, #tpu.memory_space<vmem>>) attributes {dimension_semantics = [#tpu.dimension_semantics<parallel>], iteration_bounds = array<i64: 1>, scalar_prefetch = 0 : i64, scratch_operands = 0 : i64, tpu.core_type = #tpu.core_type<tc>, window_params = [{transform_indices = @transform_0, window_bounds = array<i64: 1728, 128>}, {transform_indices = @transform_1, window_bounds = array<i64: 704, 128>}, {pipeline_mode = #tpu.pipeline_mode<synchronous>, transform_indices = @transform_2, window_bounds = array<i64: 16, 1728>}, {pipeline_mode = #tpu.pipeline_mode<synchronous>, transform_indices = @transform_3, window_bounds = array<i64: 16, 704>}, {pipeline_mode = #tpu.pipeline_mode<synchronous>, transform_indices = @transform_4, window_bounds = array<i64: 16, 1>}, {pipeline_mode = #tpu.pipeline_mode<synchronous>, transform_indices = @transform_5, window_bounds = array<i64: 16, 1>}, {transform_indices = @transform_6, window_bounds = array<i64: 32, 128>}]} {
    %c0 = arith.constant 0 : index
    %c0_0 = arith.constant 0 : index
    %0 = vector.load %arg3[%c0, %c0_0] : memref<16x1728xbf16, #tpu.memory_space<vmem>>, vector<16x1728xbf16>
    %c0_1 = arith.constant 0 : index
    %c0_2 = arith.constant 0 : index
    %1 = vector.load %arg1[%c0_1, %c0_2] : memref<1728x128xbf16, #tpu.memory_space<vmem>>, vector<1728x128xbf16>
    %cst = arith.constant dense<0.000000e+00> : vector<16x128xf32>
    %2 = tpu.matmul %0, %1, %cst {dimension_numbers = #tpu.dot_dimension_numbers<[1], [0], [0], [1], [0, 0, 1, 1], [], []>} : vector<16x1728xbf16>, vector<1728x128xbf16>, vector<16x128xf32> -> vector<16x128xf32>
    %c0_3 = arith.constant 0 : index
    %c0_4 = arith.constant 0 : index
    %3 = vector.load %arg4[%c0_3, %c0_4] : memref<16x704xbf16, #tpu.memory_space<vmem>>, vector<16x704xbf16>
    %c0_5 = arith.constant 0 : index
    %c0_6 = arith.constant 0 : index
    %4 = vector.load %arg2[%c0_5, %c0_6] : memref<704x128xbf16, #tpu.memory_space<vmem>>, vector<704x128xbf16>
    %cst_7 = arith.constant dense<0.000000e+00> : vector<16x128xf32>
    %5 = tpu.matmul %3, %4, %cst_7 {dimension_numbers = #tpu.dot_dimension_numbers<[1], [0], [0], [1], [0, 0, 1, 1], [], []>} : vector<16x704xbf16>, vector<704x128xbf16>, vector<16x128xf32> -> vector<16x128xf32>
    %c0_8 = arith.constant 0 : index
    %c0_9 = arith.constant 0 : index
    %6 = vector.load %arg5[%c0_8, %c0_9] : memref<16x1xf32, #tpu.memory_space<vmem>>, vector<16x1xf32>
    %7 = vector.broadcast %6 : vector<16x1xf32> to vector<16x128xf32>
    %8 = arith.addf %2, %7 : vector<16x128xf32>
    %cst_10 = arith.constant 0.000000e+00 : f32
    %9 = vector.broadcast %cst_10 : f32 to vector<16x128xf32>
    %10 = arith.maximumf %8, %9 : vector<16x128xf32>
    %11 = arith.truncf %10 : vector<16x128xf32> to vector<16x128xbf16>
    %c0_11 = arith.constant 0 : index
    %c0_12 = arith.constant 0 : index
    %12 = vector.load %arg7[%c0_11, %c0_12] : memref<32x128xbf16, #tpu.memory_space<vmem>>, vector<16x128xbf16>
    tpu.vector_store %arg7[%c0_11, %c0_12], %11 {strides = array<i32>} : memref<32x128xbf16, #tpu.memory_space<vmem>>, vector<16x128xbf16>,
    %c0_13 = arith.constant 0 : index
    %c0_14 = arith.constant 0 : index
    %13 = vector.load %arg6[%c0_13, %c0_14] : memref<16x1xf32, #tpu.memory_space<vmem>>, vector<16x1xf32>
    %14 = vector.broadcast %13 : vector<16x1xf32> to vector<16x128xf32>
    %15 = arith.addf %5, %14 : vector<16x128xf32>
    %cst_15 = arith.constant 0.000000e+00 : f32
    %16 = vector.broadcast %cst_15 : f32 to vector<16x128xf32>
    %17 = arith.maximumf %15, %16 : vector<16x128xf32>
    %18 = arith.truncf %17 : vector<16x128xf32> to vector<16x128xbf16>
    %c16 = arith.constant 16 : index
    %c0_16 = arith.constant 0 : index
    %19 = vector.load %arg7[%c16, %c0_16] : memref<32x128xbf16, #tpu.memory_space<vmem>>, vector<16x128xbf16>
    tpu.vector_store %arg7[%c16, %c0_16], %18 {strides = array<i32>} : memref<32x128xbf16, #tpu.memory_space<vmem>>, vector<16x128xbf16>,
    return
  }
  func.func @transform_0(%arg0: i32) -> (i32, i32) {
    %c0_i32 = arith.constant 0 : i32
    %c0_i32_0 = arith.constant 0 : i32
    return %c0_i32, %arg0 : i32, i32
  }
  func.func @transform_1(%arg0: i32) -> (i32, i32) {
    %c0_i32 = arith.constant 0 : i32
    %c0_i32_0 = arith.constant 0 : i32
    return %c0_i32, %arg0 : i32, i32
  }
  func.func @transform_2(%arg0: i32) -> (i32, i32) {
    %c0_i32 = arith.constant 0 : i32
    %c0_i32_0 = arith.constant 0 : i32
    %c0_i32_1 = arith.constant 0 : i32
    return %c0_i32, %c0_i32_0 : i32, i32
  }
  func.func @transform_3(%arg0: i32) -> (i32, i32) {
    %c0_i32 = arith.constant 0 : i32
    %c0_i32_0 = arith.constant 0 : i32
    %c0_i32_1 = arith.constant 0 : i32
    return %c0_i32, %c0_i32_0 : i32, i32
  }
  func.func @transform_4(%arg0: i32) -> (i32, i32) {
    %c0_i32 = arith.constant 0 : i32
    %c0_i32_0 = arith.constant 0 : i32
    %c0_i32_1 = arith.constant 0 : i32
    return %c0_i32, %c0_i32_0 : i32, i32
  }
  func.func @transform_5(%arg0: i32) -> (i32, i32) {
    %c0_i32 = arith.constant 0 : i32
    %c0_i32_0 = arith.constant 0 : i32
    %c0_i32_1 = arith.constant 0 : i32
    return %c0_i32, %c0_i32_0 : i32, i32
  }
  func.func @transform_6(%arg0: i32) -> (i32, i32) {
    %c0_i32 = arith.constant 0 : i32
    %c0_i32_0 = arith.constant 0 : i32
    return %c0_i32, %arg0 : i32, i32
  }
}

module attributes {stable_mosaic.version = 11 : i64} {
  func.func @_conv_pair_kernel(%arg0: i32, %arg1: memref<256x128xbf16, #tpu.memory_space<vmem>>, %arg2: memref<256x128xbf16, #tpu.memory_space<vmem>>, %arg3: memref<32x256xbf16, #tpu.memory_space<vmem>>, %arg4: memref<32x256xbf16, #tpu.memory_space<vmem>>, %arg5: memref<32x1xf32, #tpu.memory_space<vmem>>, %arg6: memref<32x1xf32, #tpu.memory_space<vmem>>, %arg7: memref<64x128xbf16, #tpu.memory_space<vmem>>) attributes {dimension_semantics = [#tpu.dimension_semantics<parallel>], iteration_bounds = array<i64: 1>, scalar_prefetch = 0 : i64, scratch_operands = 0 : i64, tpu.core_type = #tpu.core_type<tc>, window_params = [{transform_indices = @transform_0, window_bounds = array<i64: 256, 128>}, {transform_indices = @transform_1, window_bounds = array<i64: 256, 128>}, {pipeline_mode = #tpu.pipeline_mode<synchronous>, transform_indices = @transform_2, window_bounds = array<i64: 32, 256>}, {pipeline_mode = #tpu.pipeline_mode<synchronous>, transform_indices = @transform_3, window_bounds = array<i64: 32, 256>}, {pipeline_mode = #tpu.pipeline_mode<synchronous>, transform_indices = @transform_4, window_bounds = array<i64: 32, 1>}, {pipeline_mode = #tpu.pipeline_mode<synchronous>, transform_indices = @transform_5, window_bounds = array<i64: 32, 1>}, {transform_indices = @transform_6, window_bounds = array<i64: 64, 128>}]} {
    %c0 = arith.constant 0 : index
    %c0_0 = arith.constant 0 : index
    %0 = vector.load %arg3[%c0, %c0_0] : memref<32x256xbf16, #tpu.memory_space<vmem>>, vector<32x256xbf16>
    %c0_1 = arith.constant 0 : index
    %c0_2 = arith.constant 0 : index
    %1 = vector.load %arg1[%c0_1, %c0_2] : memref<256x128xbf16, #tpu.memory_space<vmem>>, vector<256x128xbf16>
    %cst = arith.constant dense<0.000000e+00> : vector<32x128xf32>
    %2 = tpu.matmul %0, %1, %cst {dimension_numbers = #tpu.dot_dimension_numbers<[1], [0], [0], [1], [0, 0, 1, 1], [], []>} : vector<32x256xbf16>, vector<256x128xbf16>, vector<32x128xf32> -> vector<32x128xf32>
    %c0_3 = arith.constant 0 : index
    %c0_4 = arith.constant 0 : index
    %3 = vector.load %arg4[%c0_3, %c0_4] : memref<32x256xbf16, #tpu.memory_space<vmem>>, vector<32x256xbf16>
    %c0_5 = arith.constant 0 : index
    %c0_6 = arith.constant 0 : index
    %4 = vector.load %arg2[%c0_5, %c0_6] : memref<256x128xbf16, #tpu.memory_space<vmem>>, vector<256x128xbf16>
    %cst_7 = arith.constant dense<0.000000e+00> : vector<32x128xf32>
    %5 = tpu.matmul %3, %4, %cst_7 {dimension_numbers = #tpu.dot_dimension_numbers<[1], [0], [0], [1], [0, 0, 1, 1], [], []>} : vector<32x256xbf16>, vector<256x128xbf16>, vector<32x128xf32> -> vector<32x128xf32>
    %c0_8 = arith.constant 0 : index
    %c0_9 = arith.constant 0 : index
    %6 = vector.load %arg5[%c0_8, %c0_9] : memref<32x1xf32, #tpu.memory_space<vmem>>, vector<32x1xf32>
    %7 = vector.broadcast %6 : vector<32x1xf32> to vector<32x128xf32>
    %8 = arith.addf %2, %7 : vector<32x128xf32>
    %cst_10 = arith.constant 0.000000e+00 : f32
    %9 = vector.broadcast %cst_10 : f32 to vector<32x128xf32>
    %10 = arith.maximumf %8, %9 : vector<32x128xf32>
    %11 = arith.truncf %10 : vector<32x128xf32> to vector<32x128xbf16>
    %c0_11 = arith.constant 0 : index
    %c0_12 = arith.constant 0 : index
    %12 = vector.load %arg7[%c0_11, %c0_12] : memref<64x128xbf16, #tpu.memory_space<vmem>>, vector<32x128xbf16>
    tpu.vector_store %arg7[%c0_11, %c0_12], %11 {strides = array<i32>} : memref<64x128xbf16, #tpu.memory_space<vmem>>, vector<32x128xbf16>,
    %c0_13 = arith.constant 0 : index
    %c0_14 = arith.constant 0 : index
    %13 = vector.load %arg6[%c0_13, %c0_14] : memref<32x1xf32, #tpu.memory_space<vmem>>, vector<32x1xf32>
    %14 = vector.broadcast %13 : vector<32x1xf32> to vector<32x128xf32>
    %15 = arith.addf %5, %14 : vector<32x128xf32>
    %cst_15 = arith.constant 0.000000e+00 : f32
    %16 = vector.broadcast %cst_15 : f32 to vector<32x128xf32>
    %17 = arith.maximumf %15, %16 : vector<32x128xf32>
    %18 = arith.truncf %17 : vector<32x128xf32> to vector<32x128xbf16>
    %c32 = arith.constant 32 : index
    %c0_16 = arith.constant 0 : index
    %19 = vector.load %arg7[%c32, %c0_16] : memref<64x128xbf16, #tpu.memory_space<vmem>>, vector<32x128xbf16>
    tpu.vector_store %arg7[%c32, %c0_16], %18 {strides = array<i32>} : memref<64x128xbf16, #tpu.memory_space<vmem>>, vector<32x128xbf16>,
    return
  }
  func.func @transform_0(%arg0: i32) -> (i32, i32) {
    %c0_i32 = arith.constant 0 : i32
    %c0_i32_0 = arith.constant 0 : i32
    return %c0_i32, %arg0 : i32, i32
  }
  func.func @transform_1(%arg0: i32) -> (i32, i32) {
    %c0_i32 = arith.constant 0 : i32
    %c0_i32_0 = arith.constant 0 : i32
    return %c0_i32, %arg0 : i32, i32
  }
  func.func @transform_2(%arg0: i32) -> (i32, i32) {
    %c0_i32 = arith.constant 0 : i32
    %c0_i32_0 = arith.constant 0 : i32
    %c0_i32_1 = arith.constant 0 : i32
    return %c0_i32, %c0_i32_0 : i32, i32
  }
  func.func @transform_3(%arg0: i32) -> (i32, i32) {
    %c0_i32 = arith.constant 0 : i32
    %c0_i32_0 = arith.constant 0 : i32
    %c0_i32_1 = arith.constant 0 : i32
    return %c0_i32, %c0_i32_0 : i32, i32
  }
  func.func @transform_4(%arg0: i32) -> (i32, i32) {
    %c0_i32 = arith.constant 0 : i32
    %c0_i32_0 = arith.constant 0 : i32
    %c0_i32_1 = arith.constant 0 : i32
    return %c0_i32, %c0_i32_0 : i32, i32
  }
  func.func @transform_5(%arg0: i32) -> (i32, i32) {
    %c0_i32 = arith.constant 0 : i32
    %c0_i32_0 = arith.constant 0 : i32
    %c0_i32_1 = arith.constant 0 : i32
    return %c0_i32, %c0_i32_0 : i32, i32
  }
  func.func @transform_6(%arg0: i32) -> (i32, i32) {
    %c0_i32 = arith.constant 0 : i32
    %c0_i32_0 = arith.constant 0 : i32
    return %c0_i32, %arg0 : i32, i32
  }
}

module attributes {stable_mosaic.version = 11 : i64} {
  func.func @_tail_kernel(%arg0: memref<2x512xbf16, #tpu.memory_space<vmem>>, %arg1: memref<2x512xbf16, #tpu.memory_space<vmem>>, %arg2: memref<2x11xf32, #tpu.memory_space<vmem>>, %arg3: memref<512x256xbf16, #tpu.memory_space<vmem>>, %arg4: memref<512x256xbf16, #tpu.memory_space<vmem>>, %arg5: memref<11x256xbf16, #tpu.memory_space<vmem>>, %arg6: memref<1x256xf32, #tpu.memory_space<vmem>>, %arg7: memref<256x512xbf16, #tpu.memory_space<vmem>>, %arg8: memref<1x512xf32, #tpu.memory_space<vmem>>, %arg9: memref<256x32xbf16, #tpu.memory_space<vmem>>, %arg10: memref<1x32xf32, #tpu.memory_space<vmem>>, %arg11: memref<256x32xbf16, #tpu.memory_space<vmem>>, %arg12: memref<1x32xf32, #tpu.memory_space<vmem>>, %arg13: memref<2x512xf32, #tpu.memory_space<vmem>>, %arg14: memref<2x1024xf32, #tpu.memory_space<vmem>>) attributes {dimension_semantics = [], scalar_prefetch = 0 : i64, scratch_operands = 0 : i64, tpu.core_type = #tpu.core_type<tc>} {
    %c0 = arith.constant 0 : index
    %c0_0 = arith.constant 0 : index
    %0 = vector.load %arg0[%c0, %c0_0] : memref<2x512xbf16, #tpu.memory_space<vmem>>, vector<2x512xbf16>
    %c0_1 = arith.constant 0 : index
    %c0_2 = arith.constant 0 : index
    %1 = vector.load %arg3[%c0_1, %c0_2] : memref<512x256xbf16, #tpu.memory_space<vmem>>, vector<512x256xbf16>
    %cst = arith.constant dense<0.000000e+00> : vector<2x256xf32>
    %2 = tpu.matmul %0, %1, %cst {dimension_numbers = #tpu.dot_dimension_numbers<[1], [0], [0], [1], [0, 0, 1, 1], [], []>} : vector<2x512xbf16>, vector<512x256xbf16>, vector<2x256xf32> -> vector<2x256xf32>
    %c0_3 = arith.constant 0 : index
    %c0_4 = arith.constant 0 : index
    %3 = vector.load %arg1[%c0_3, %c0_4] : memref<2x512xbf16, #tpu.memory_space<vmem>>, vector<2x512xbf16>
    %c0_5 = arith.constant 0 : index
    %c0_6 = arith.constant 0 : index
    %4 = vector.load %arg4[%c0_5, %c0_6] : memref<512x256xbf16, #tpu.memory_space<vmem>>, vector<512x256xbf16>
    %cst_7 = arith.constant dense<0.000000e+00> : vector<2x256xf32>
    %5 = tpu.matmul %3, %4, %cst_7 {dimension_numbers = #tpu.dot_dimension_numbers<[1], [0], [0], [1], [0, 0, 1, 1], [], []>} : vector<2x512xbf16>, vector<512x256xbf16>, vector<2x256xf32> -> vector<2x256xf32>
    %6 = arith.addf %2, %5 : vector<2x256xf32>
    %c0_8 = arith.constant 0 : index
    %c0_9 = arith.constant 0 : index
    %7 = vector.load %arg2[%c0_8, %c0_9] : memref<2x11xf32, #tpu.memory_space<vmem>>, vector<2x11xf32>
    %8 = math.tanh %7 : vector<2x11xf32>
    %9 = arith.truncf %8 : vector<2x11xf32> to vector<2x11xbf16>
    %c0_10 = arith.constant 0 : index
    %c0_11 = arith.constant 0 : index
    %10 = vector.load %arg5[%c0_10, %c0_11] : memref<11x256xbf16, #tpu.memory_space<vmem>>, vector<11x256xbf16>
    %cst_12 = arith.constant dense<0.000000e+00> : vector<2x256xf32>
    %11 = tpu.matmul %9, %10, %cst_12 {dimension_numbers = #tpu.dot_dimension_numbers<[1], [0], [0], [1], [0, 0, 1, 1], [], []>} : vector<2x11xbf16>, vector<11x256xbf16>, vector<2x256xf32> -> vector<2x256xf32>
    %12 = arith.addf %6, %11 : vector<2x256xf32>
    %c0_13 = arith.constant 0 : index
    %c0_14 = arith.constant 0 : index
    %13 = vector.load %arg6[%c0_13, %c0_14] : memref<1x256xf32, #tpu.memory_space<vmem>>, vector<1x256xf32>
    %14 = vector.broadcast %13 : vector<1x256xf32> to vector<2x256xf32>
    %15 = arith.addf %12, %14 : vector<2x256xf32>
    %cst_15 = arith.constant 0.000000e+00 : f32
    %16 = vector.broadcast %cst_15 : f32 to vector<2x256xf32>
    %17 = arith.maximumf %15, %16 : vector<2x256xf32>
    %18 = arith.truncf %17 : vector<2x256xf32> to vector<2x256xbf16>
    %c0_16 = arith.constant 0 : index
    %c0_17 = arith.constant 0 : index
    %19 = vector.load %arg7[%c0_16, %c0_17] : memref<256x512xbf16, #tpu.memory_space<vmem>>, vector<256x512xbf16>
    %cst_18 = arith.constant dense<0.000000e+00> : vector<2x512xf32>
    %20 = tpu.matmul %18, %19, %cst_18 {dimension_numbers = #tpu.dot_dimension_numbers<[1], [0], [0], [1], [0, 0, 1, 1], [], []>} : vector<2x256xbf16>, vector<256x512xbf16>, vector<2x512xf32> -> vector<2x512xf32>
    %c0_19 = arith.constant 0 : index
    %c0_20 = arith.constant 0 : index
    %21 = vector.load %arg8[%c0_19, %c0_20] : memref<1x512xf32, #tpu.memory_space<vmem>>, vector<1x512xf32>
    %22 = vector.broadcast %21 : vector<1x512xf32> to vector<2x512xf32>
    %23 = arith.addf %20, %22 : vector<2x512xf32>
    %24 = vector.extract_strided_slice %23 {offsets = [0, 0], sizes = [2, 128], strides = [1, 1]} : vector<2x512xf32> to vector<2x128xf32>
    %c0_21 = arith.constant 0 : index
    %c0_22 = arith.constant 0 : index
    %25 = vector.load %arg13[%c0_21, %c0_22] : memref<2x512xf32, #tpu.memory_space<vmem>>, vector<2x128xf32>
    tpu.vector_store %arg13[%c0_21, %c0_22], %24 {strides = array<i32>} : memref<2x512xf32, #tpu.memory_space<vmem>>, vector<2x128xf32>,
    %26 = vector.extract_strided_slice %23 {offsets = [0, 128], sizes = [2, 128], strides = [1, 1]} : vector<2x512xf32> to vector<2x128xf32>
    %cst_23 = arith.constant dense<0xFF800000> : vector<2xf32>
    %27 = vector.multi_reduction <maximumf>, %26, %cst_23 [1] : vector<2x128xf32> to vector<2xf32>
    %28 = vector.shape_cast %27 : vector<2xf32> to vector<2x1xf32>
    %29 = vector.broadcast %28 : vector<2x1xf32> to vector<2x128xf32>
    %30 = arith.subf %26, %29 : vector<2x128xf32>
    %31 = math.exp %30 : vector<2x128xf32>
    %cst_24 = arith.constant dense<0.000000e+00> : vector<2xf32>
    %32 = vector.multi_reduction <add>, %31, %cst_24 [1] : vector<2x128xf32> to vector<2xf32>
    %33 = vector.shape_cast %32 : vector<2xf32> to vector<2x1xf32>
    %34 = tpu.reciprocal %33 {approx = true} : vector<2x1xf32> -> vector<2x1xf32>
    %35 = vector.broadcast %34 : vector<2x1xf32> to vector<2x128xf32>
    %36 = arith.mulf %31, %35 : vector<2x128xf32>
    %c0_25 = arith.constant 0 : index
    %c128 = arith.constant 128 : index
    %37 = vector.load %arg13[%c0_25, %c128] : memref<2x512xf32, #tpu.memory_space<vmem>>, vector<2x128xf32>
    tpu.vector_store %arg13[%c0_25, %c128], %36 {strides = array<i32>} : memref<2x512xf32, #tpu.memory_space<vmem>>, vector<2x128xf32>,
    %38 = vector.extract_strided_slice %23 {offsets = [0, 256], sizes = [2, 128], strides = [1, 1]} : vector<2x512xf32> to vector<2x128xf32>
    %cst_26 = arith.constant dense<0xFF800000> : vector<2xf32>
    %39 = vector.multi_reduction <maximumf>, %38, %cst_26 [1] : vector<2x128xf32> to vector<2xf32>
    %40 = vector.shape_cast %39 : vector<2xf32> to vector<2x1xf32>
    %41 = vector.broadcast %40 : vector<2x1xf32> to vector<2x128xf32>
    %42 = arith.subf %38, %41 : vector<2x128xf32>
    %43 = math.exp %42 : vector<2x128xf32>
    %cst_27 = arith.constant dense<0.000000e+00> : vector<2xf32>
    %44 = vector.multi_reduction <add>, %43, %cst_27 [1] : vector<2x128xf32> to vector<2xf32>
    %45 = vector.shape_cast %44 : vector<2xf32> to vector<2x1xf32>
    %46 = tpu.reciprocal %45 {approx = true} : vector<2x1xf32> -> vector<2x1xf32>
    %47 = vector.broadcast %46 : vector<2x1xf32> to vector<2x128xf32>
    %48 = arith.mulf %43, %47 : vector<2x128xf32>
    %c0_28 = arith.constant 0 : index
    %c256 = arith.constant 256 : index
    %49 = vector.load %arg13[%c0_28, %c256] : memref<2x512xf32, #tpu.memory_space<vmem>>, vector<2x128xf32>
    tpu.vector_store %arg13[%c0_28, %c256], %48 {strides = array<i32>} : memref<2x512xf32, #tpu.memory_space<vmem>>, vector<2x128xf32>,
    %50 = vector.extract_strided_slice %23 {offsets = [0, 384], sizes = [2, 128], strides = [1, 1]} : vector<2x512xf32> to vector<2x128xf32>
    %cst_29 = arith.constant dense<0xFF800000> : vector<2xf32>
    %51 = vector.multi_reduction <maximumf>, %50, %cst_29 [1] : vector<2x128xf32> to vector<2xf32>
    %52 = vector.shape_cast %51 : vector<2xf32> to vector<2x1xf32>
    %53 = vector.broadcast %52 : vector<2x1xf32> to vector<2x128xf32>
    %54 = arith.subf %50, %53 : vector<2x128xf32>
    %55 = math.exp %54 : vector<2x128xf32>
    %cst_30 = arith.constant dense<0.000000e+00> : vector<2xf32>
    %56 = vector.multi_reduction <add>, %55, %cst_30 [1] : vector<2x128xf32> to vector<2xf32>
    %57 = vector.shape_cast %56 : vector<2xf32> to vector<2x1xf32>
    %58 = tpu.reciprocal %57 {approx = true} : vector<2x1xf32> -> vector<2x1xf32>
    %59 = vector.broadcast %58 : vector<2x1xf32> to vector<2x128xf32>
    %60 = arith.mulf %55, %59 : vector<2x128xf32>
    %c0_31 = arith.constant 0 : index
    %c384 = arith.constant 384 : index
    %61 = vector.load %arg13[%c0_31, %c384] : memref<2x512xf32, #tpu.memory_space<vmem>>, vector<2x128xf32>
    tpu.vector_store %arg13[%c0_31, %c384], %60 {strides = array<i32>} : memref<2x512xf32, #tpu.memory_space<vmem>>, vector<2x128xf32>,
    %c0_32 = arith.constant 0 : index
    %c0_33 = arith.constant 0 : index
    %62 = vector.load %arg9[%c0_32, %c0_33] : memref<256x32xbf16, #tpu.memory_space<vmem>>, vector<256x32xbf16>
    %cst_34 = arith.constant dense<0.000000e+00> : vector<2x32xf32>
    %63 = tpu.matmul %18, %62, %cst_34 {dimension_numbers = #tpu.dot_dimension_numbers<[1], [0], [0], [1], [0, 0, 1, 1], [], []>} : vector<2x256xbf16>, vector<256x32xbf16>, vector<2x32xf32> -> vector<2x32xf32>
    %c0_35 = arith.constant 0 : index
    %c0_36 = arith.constant 0 : index
    %64 = vector.load %arg10[%c0_35, %c0_36] : memref<1x32xf32, #tpu.memory_space<vmem>>, vector<1x32xf32>
    %65 = vector.broadcast %64 : vector<1x32xf32> to vector<2x32xf32>
    %66 = arith.addf %63, %65 : vector<2x32xf32>
    %c0_37 = arith.constant 0 : index
    %c0_38 = arith.constant 0 : index
    %67 = vector.load %arg11[%c0_37, %c0_38] : memref<256x32xbf16, #tpu.memory_space<vmem>>, vector<256x32xbf16>
    %cst_39 = arith.constant dense<0.000000e+00> : vector<2x32xf32>
    %68 = tpu.matmul %18, %67, %cst_39 {dimension_numbers = #tpu.dot_dimension_numbers<[1], [0], [0], [1], [0, 0, 1, 1], [], []>} : vector<2x256xbf16>, vector<256x32xbf16>, vector<2x32xf32> -> vector<2x32xf32>
    %c0_40 = arith.constant 0 : index
    %c0_41 = arith.constant 0 : index
    %69 = vector.load %arg12[%c0_40, %c0_41] : memref<1x32xf32, #tpu.memory_space<vmem>>, vector<1x32xf32>
    %70 = vector.broadcast %69 : vector<1x32xf32> to vector<2x32xf32>
    %71 = arith.addf %68, %70 : vector<2x32xf32>
    %72 = tpu.iota {dimensions = array<i32: 0>} : vector<32x1024xi32>
    %73 = tpu.iota {dimensions = array<i32: 1>} : vector<32x1024xi32>
    %c5_i32 = arith.constant 5 : i32
    %74 = vector.broadcast %c5_i32 : i32 to vector<32x1024xi32>
    %75 = arith.shrsi %73, %74 : vector<32x1024xi32>
    %76 = arith.cmpi eq, %72, %75 : vector<32x1024xi32>
    %cst_42 = arith.constant 1.000000e+00 : f32
    %cst_43 = arith.constant 0.000000e+00 : f32
    %77 = vector.broadcast %cst_42 : f32 to vector<32x1024xf32>
    %78 = vector.broadcast %cst_43 : f32 to vector<32x1024xf32>
    %79 = arith.select %76, %77, %78 : vector<32x1024xi1>, vector<32x1024xf32>
    %80 = arith.truncf %79 : vector<32x1024xf32> to vector<32x1024xbf16>
    %c31_i32 = arith.constant 31 : i32
    %81 = vector.broadcast %c31_i32 : i32 to vector<32x1024xi32>
    %82 = arith.andi %73, %81 : vector<32x1024xi32>
    %83 = arith.cmpi eq, %72, %82 : vector<32x1024xi32>
    %cst_44 = arith.constant 1.000000e+00 : f32
    %cst_45 = arith.constant 0.000000e+00 : f32
    %84 = vector.broadcast %cst_44 : f32 to vector<32x1024xf32>
    %85 = vector.broadcast %cst_45 : f32 to vector<32x1024xf32>
    %86 = arith.select %83, %84, %85 : vector<32x1024xi1>, vector<32x1024xf32>
    %87 = arith.truncf %86 : vector<32x1024xf32> to vector<32x1024xbf16>
    %88 = arith.truncf %71 : vector<2x32xf32> to vector<2x32xbf16>
    %cst_46 = arith.constant dense<0.000000e+00> : vector<2x1024xf32>
    %89 = tpu.matmul %88, %80, %cst_46 {dimension_numbers = #tpu.dot_dimension_numbers<[1], [0], [0], [1], [0, 0, 1, 1], [], []>} : vector<2x32xbf16>, vector<32x1024xbf16>, vector<2x1024xf32> -> vector<2x1024xf32>
    %90 = arith.truncf %66 : vector<2x32xf32> to vector<2x32xbf16>
    %cst_47 = arith.constant dense<0.000000e+00> : vector<2x1024xf32>
    %91 = tpu.matmul %90, %87, %cst_47 {dimension_numbers = #tpu.dot_dimension_numbers<[1], [0], [0], [1], [0, 0, 1, 1], [], []>} : vector<2x32xbf16>, vector<32x1024xbf16>, vector<2x1024xf32> -> vector<2x1024xf32>
    %92 = arith.mulf %89, %91 : vector<2x1024xf32>
    %cst_48 = arith.constant dense<0xFF800000> : vector<2xf32>
    %93 = vector.multi_reduction <maximumf>, %92, %cst_48 [1] : vector<2x1024xf32> to vector<2xf32>
    %94 = vector.shape_cast %93 : vector<2xf32> to vector<2x1xf32>
    %95 = vector.broadcast %94 : vector<2x1xf32> to vector<2x1024xf32>
    %96 = arith.subf %92, %95 : vector<2x1024xf32>
    %97 = math.exp %96 : vector<2x1024xf32>
    %cst_49 = arith.constant dense<0.000000e+00> : vector<2xf32>
    %98 = vector.multi_reduction <add>, %97, %cst_49 [1] : vector<2x1024xf32> to vector<2xf32>
    %99 = vector.shape_cast %98 : vector<2xf32> to vector<2x1xf32>
    %100 = tpu.reciprocal %99 {approx = true} : vector<2x1xf32> -> vector<2x1xf32>
    %101 = vector.broadcast %100 : vector<2x1xf32> to vector<2x1024xf32>
    %102 = arith.mulf %97, %101 : vector<2x1024xf32>
    %c0_50 = arith.constant 0 : index
    %c0_51 = arith.constant 0 : index
    %103 = vector.load %arg14[%c0_50, %c0_51] : memref<2x1024xf32, #tpu.memory_space<vmem>>, vector<2x1024xf32>
    tpu.vector_store %arg14[%c0_50, %c0_51], %102 {strides = array<i32>} : memref<2x1024xf32, #tpu.memory_space<vmem>>, vector<2x1024xf32>,
    return
  }
}

</mosaic_0001>

<bundles_post_ra>
// kernel: cnn_forward.3
= control target key start
LH: loop header
LB: loop body
LE: loop exit
PB: predicated region body
PF: predicated region fallthrough
CT: control target
= control target key end

     0   :  { %v2561_v57 = vmov 0   ;;  %vm1077_vm0 = vcmask 523264   ;;  %s3193_s0 = inlined_call_operand.vmem [shape: bf16[1728,128], index: 0, kind: input, shape index: {}]   ;;  %s3194_s2 = inlined_call_operand.vmem [shape: bf16[16,1728], index: 2, kind: input, shape index: {}]   ;;  %s3195_s4 = inlined_call_operand.vmem [shape: f32[16,1], index: 4, kind: input, shape index: {}]   ;;  %s3196_s1 = inlined_call_operand.vmem [shape: bf16[704,128], index: 1, kind: input, shape index: {}]   ;;  %s3197_s5 = inlined_call_operand.vmem [shape: f32[16,1], index: 5, kind: input, shape index: {}]   ;;  %s3198_s3 = inlined_call_operand.vmem [shape: bf16[16,704], index: 3, kind: input, shape index: {}]   ;;  %s3199_s6 = inlined_call_operand.vmem [shape: bf16[32,128], index: 6, kind: output, shape index: {}]  }
   0x1   :  { %v2396_v0 = vld [vmem:[%s3193_s0 + $0x38] sm:$0xff]  ;;  %v2395_v4 = vld [vmem:[%s3193_s0 + $0x30] sm:$0xff]  ;;  %v2394_v8 = vld [vmem:[%s3193_s0 + $0x28] sm:$0xff]  ;;  %2559 = vset.pattern.permute.xlu0 %v2561_v57  ;;  %2560 = vset.pattern.permute.xlu1 %v2561_v57 }
   0x2   :  { %v2412_v1 = vld [vmem:[%s3193_s0 + $0xb8] sm:$0xff]  ;;  %1081 = vmatpush.bf16.msra.mxu0 %v2396_v0  ;;  %v2411_v5 = vld [vmem:[%s3193_s0 + $0xb0] sm:$0xff]  ;;  %v2410_v9 = vld [vmem:[%s3193_s0 + $0xa8] sm:$0xff] }
   0x3   :  { %v2404_v2 = vld [vmem:[%s3193_s0 + $0x78] sm:$0xff]  ;;  %1109 = vmatpush.bf16.msra.mxu2 %v2412_v1  ;;  %v2403_v6 = vld [vmem:[%s3193_s0 + $0x70] sm:$0xff]  ;;  %v2402_v10 = vld [vmem:[%s3193_s0 + $0x68] sm:$0xff] }
   0x4   :  { %v2420_v3 = vld [vmem:[%s3193_s0 + $0xf8] sm:$0xff]  ;;  %1095 = vmatpush.bf16.msra.mxu1 %v2404_v2  ;;  %v2419_v7 = vld [vmem:[%s3193_s0 + $0xf0] sm:$0xff]  ;;  %v2418_v11 = vld [vmem:[%s3193_s0 + $0xe8] sm:$0xff] }
   0x5   :  { %1123 = vmatpush.bf16.msra.mxu3 %v2420_v3  ;;  %v2393_v12 = vld [vmem:[%s3193_s0 + $0x20] sm:$0xff]  ;;  %v2392_v16 = vld [vmem:[%s3193_s0 + $0x18] sm:$0xff]  ;;  %v2391_v20 = vld [vmem:[%s3193_s0 + $0x10] sm:$0xff] }
   0x6   :  { %1082 = vmatpush.bf16.msra.mxu0 %v2395_v4  ;;  %v2409_v13 = vld [vmem:[%s3193_s0 + $0xa0] sm:$0xff]  ;;  %v2408_v17 = vld [vmem:[%s3193_s0 + $0x98] sm:$0xff]  ;;  %v2407_v21 = vld [vmem:[%s3193_s0 + $0x90] sm:$0xff] }
   0x7   :  { %1110 = vmatpush.bf16.msra.mxu2 %v2411_v5  ;;  %v2401_v14 = vld [vmem:[%s3193_s0 + $0x60] sm:$0xff]  ;;  %v2400_v18 = vld [vmem:[%s3193_s0 + $0x58] sm:$0xff]  ;;  %v2399_v22 = vld [vmem:[%s3193_s0 + $0x50] sm:$0xff] }
   0x8   :  { %1096 = vmatpush.bf16.msra.mxu1 %v2403_v6  ;;  %v2417_v15 = vld [vmem:[%s3193_s0 + $0xe0] sm:$0xff]  ;;  %v2416_v19 = vld [vmem:[%s3193_s0 + $0xd8] sm:$0xff]  ;;  %v2415_v23 = vld [vmem:[%s3193_s0 + $0xd0] sm:$0xff] }
   0x9   :  { %1124 = vmatpush.bf16.msra.mxu3 %v2419_v7  ;;  %v2390_v24 = vld [vmem:[%s3193_s0 + $0x8] sm:$0xff]  ;;  %v2389_v28 = vld [vmem:[%s3193_s0] sm:$0xff]  ;;  %v2428_v30 = vld [vmem:[%s3193_s0 + $0x138] sm:$0xff] }
   0xa   :  { %1083 = vmatpush.bf16.msra.mxu0 %v2394_v8  ;;  %v2406_v25 = vld [vmem:[%s3193_s0 + $0x88] sm:$0xff]  ;;  %v2405_v29 = vld [vmem:[%s3193_s0 + $0x80] sm:$0xff]  ;;  %v2444_v31 = vld [vmem:[%s3193_s0 + $0x1b8] sm:$0xff] }
   0xb   :  { %1111 = vmatpush.bf16.msra.mxu2 %v2410_v9  ;;  %v2398_v26 = vld [vmem:[%s3193_s0 + $0x48] sm:$0xff]  ;;  %v2397_v32 = vld [vmem:[%s3193_s0 + $0x40] sm:$0xff]  ;;  %v2382_v35 = vld [vmem:[%s3194_s2 + $0x34] sm:$0xf0] }
   0xc   :  { %1097 = vmatpush.bf16.msra.mxu1 %v2402_v10  ;;  %v2414_v27 = vld [vmem:[%s3193_s0 + $0xc8] sm:$0xff]  ;;  %v2413_v33 = vld [vmem:[%s3193_s0 + $0xc0] sm:$0xff]  ;;  %v2436_v38 = vld [vmem:[%s3193_s0 + $0x178] sm:$0xff] }
   0xd   :  { %1125 = vmatpush.bf16.msra.mxu3 %v2418_v11  ;;  %v1687_v34 = vld [vmem:[%s3194_s2] sm:$0xf]  ;;  %v1695_v36 = vld [vmem:[%s3194_s2 + $0x8] sm:$0xf]  ;;  %v2452_v39 = vld [vmem:[%s3193_s0 + $0x1f8] sm:$0xff] }
   0xe   :  { %1084 = vmatpush.bf16.msra.mxu0 %v2393_v12  ;;  %v2383_v37 = vld [vmem:[%s3194_s2 + $0x3c] sm:$0xf0]  ;;  %v2375_v40 = vld [vmem:[%s3194_s2 + $0x4] sm:$0xf]  ;;  %v1689_v41 = vld [vmem:[%s3194_s2 + $0x38] sm:$0xf0]  ;;  %v1688_v44 = vor.u32 %v2382_v35, %v1687_v34 }
   0xf   :  { %1112 = vmatpush.bf16.msra.mxu2 %v2409_v13  ;;  %v2376_v42 = vld [vmem:[%s3194_s2 + $0xc] sm:$0xf]  ;;  %v1697_v43 = vld [vmem:[%s3194_s2 + $0x40] sm:$0xf0]  ;;  %v1696_v45 = vor.u32 %v2383_v37, %v1695_v36  ;;  %v2427_v46 = vld [vmem:[%s3193_s0 + $0x130] sm:$0xff]  ;;  %v1692_v48 = vor.u32 %v2375_v40, %v1689_v41 }
  0x10   :  { %1098 = vmatpush.bf16.msra.mxu1 %v2401_v14  ;;  %v2443_v47 = vld [vmem:[%s3193_s0 + $0x1b0] sm:$0xff]  ;;  %v1700_v49 = vor.u32 %v2376_v42, %v1697_v43  ;;  %v2426_v52 = vld [vmem:[%s3193_s0 + $0x128] sm:$0xff]  ;;  %v348_v56 = vld [vmem:[%s3195_s4] sm:$0xff] }
  0x11   :  { %1126 = vmatpush.bf16.msra.mxu3 %v2417_v15  ;;  %v2435_v50 = vld [vmem:[%s3193_s0 + $0x170] sm:$0xff]  ;;  %v2442_v53 = vld [vmem:[%s3193_s0 + $0x1a8] sm:$0xff]  ;;  %v2425_v58 = vld [vmem:[%s3193_s0 + $0x120] sm:$0xff]  ;;  %352 = vperm.xlu0 %2559, %v348_v56  }
  0x12   :  { %1085 = vmatpush.bf16.msra.mxu0 %v2392_v16  ;;  %v2451_v51 = vld [vmem:[%s3193_s0 + $0x1f0] sm:$0xff]  ;;  %v2434_v54 = vld [vmem:[%s3193_s0 + $0x168] sm:$0xff]  ;;  %v2441_v59 = vld [vmem:[%s3193_s0 + $0x1a0] sm:$0xff] }
  0x13   :  { %1113 = vmatpush.bf16.msra.mxu2 %v2408_v17  ;;  %v2450_v55 = vld [vmem:[%s3193_s0 + $0x1e8] sm:$0xff]  ;;  %v2433_v60 = vld [vmem:[%s3193_s0 + $0x160] sm:$0xff]  ;;  %v2424_v62 = vld [vmem:[%s3193_s0 + $0x118] sm:$0xff] }
  0x14   :  { %1099 = vmatpush.bf16.msra.mxu1 %v2400_v18  ;;  %v2449_v61 = vld [vmem:[%s3193_s0 + $0x1e0] sm:$0xff]  ;;  %v2440_v63 = vld [vmem:[%s3193_s0 + $0x198] sm:$0xff]  ;;  %v349_v2 = vld [vmem:[%s3195_s4 + $0x8] sm:$0xff] }
  0x15   :  { %1127 = vmatpush.bf16.msra.mxu3 %v2416_v19  ;;  %v2432_v0 = vld [vmem:[%s3193_s0 + $0x158] sm:$0xff]  ;;  %v2423_v3 = vld [vmem:[%s3193_s0 + $0x110] sm:$0xff]  ;;  %v2422_v7 = vld [vmem:[%s3193_s0 + $0x108] sm:$0xff] }
  0x16   :  { %1086 = vmatpush.bf16.msra.mxu0 %v2391_v20  ;;  %v2448_v1 = vld [vmem:[%s3193_s0 + $0x1d8] sm:$0xff]  ;;  %v2439_v4 = vld [vmem:[%s3193_s0 + $0x190] sm:$0xff]  ;;  %v2438_v8 = vld [vmem:[%s3193_s0 + $0x188] sm:$0xff] }
  0x17   :  { %1114 = vmatpush.bf16.msra.mxu2 %v2407_v21  ;;  %v2431_v5 = vld [vmem:[%s3193_s0 + $0x150] sm:$0xff]  ;;  %v2430_v9 = vld [vmem:[%s3193_s0 + $0x148] sm:$0xff]  ;;  %v2421_v11 = vld [vmem:[%s3193_s0 + $0x100] sm:$0xff] }
  0x18   :  { %1100 = vmatpush.bf16.msra.mxu1 %v2399_v22  ;;  %v2447_v6 = vld [vmem:[%s3193_s0 + $0x1d0] sm:$0xff]  ;;  %v2446_v10 = vld [vmem:[%s3193_s0 + $0x1c8] sm:$0xff]  ;;  %v2437_v12 = vld [vmem:[%s3193_s0 + $0x180] sm:$0xff] }
  0x19   :  { %1128 = vmatpush.bf16.msra.mxu3 %v2415_v23  ;;  %357 = vperm.xlu0 %2559, %v349_v2   ;;  %v2460_v13 = vld [vmem:[%s3193_s0 + $0x238] sm:$0xff]  ;;  %v1703_v15 = vld [vmem:[%s3194_s2 + $0x10] sm:$0xf]  ;;  %v2384_v16 = vld [vmem:[%s3194_s2 + $0x44] sm:$0xf0] }
  0x1a   :  { %1087 = vmatpush.bf16.msra.mxu0 %v2390_v24  ;;  %v2476_v14 = vld [vmem:[%s3193_s0 + $0x2b8] sm:$0xff]  ;;  %v2385_v18 = vld [vmem:[%s3194_s2 + $0x4c] sm:$0xf0]  ;;  %v2429_v19 = vld [vmem:[%s3193_s0 + $0x140] sm:$0xff] }
  0x1b   :  { %1115 = vmatpush.bf16.msra.mxu2 %v2406_v25  ;;  %v1711_v17 = vld [vmem:[%s3194_s2 + $0x18] sm:$0xf]  ;;  %v2445_v20 = vld [vmem:[%s3193_s0 + $0x1c0] sm:$0xff]  ;;  %v2377_v21 = vld [vmem:[%s3194_s2 + $0x14] sm:$0xf]  ;;  %v1704_v25 = vor.u32 %v2384_v16, %v1703_v15 }
  0x1c   :  { %1101 = vmatpush.bf16.msra.mxu1 %v2398_v26  ;;  %v1705_v22 = vld [vmem:[%s3194_s2 + $0x48] sm:$0xf0]  ;;  %v2378_v23 = vld [vmem:[%s3194_s2 + $0x1c] sm:$0xf]  ;;  %v1713_v24 = vld [vmem:[%s3194_s2 + $0x50] sm:$0xf0]  ;;  %v1712_v26 = vor.u32 %v2385_v18, %v1711_v17 }
  0x1d   :  { %1129 = vmatpush.bf16.msra.mxu3 %v2414_v27  ;;  %v2468_v27 = vld [vmem:[%s3193_s0 + $0x278] sm:$0xff]  ;;  %v2483_v34 = vld [vmem:[%s3193_s0 + $0x2f0] sm:$0xff]  ;;  %v2458_v35 = vld [vmem:[%s3193_s0 + $0x228] sm:$0xff] }
  0x1e   :  { %1088 = vmatpush.bf16.msra.mxu0 %v2389_v28  ;;  %v2484_v28 = vld [vmem:[%s3193_s0 + $0x2f8] sm:$0xff]  ;;  %v2474_v36 = vld [vmem:[%s3193_s0 + $0x2a8] sm:$0xff]  ;;  %v2473_v40 = vld [vmem:[%s3193_s0 + $0x2a0] sm:$0xff] }
  0x1f   :  { %1116 = vmatpush.bf16.msra.mxu2 %v2405_v29  ;;  %v1708_v29 = vor.u32 %v2377_v21, %v1705_v22  ;;  %v2466_v37 = vld [vmem:[%s3193_s0 + $0x268] sm:$0xff]  ;;  %v2465_v41 = vld [vmem:[%s3193_s0 + $0x260] sm:$0xff]  ;;  %v2456_v43 = vld [vmem:[%s3193_s0 + $0x218] sm:$0xff] }
  0x20   :  { %1102 = vmatpush.bf16.msra.mxu1 %v2397_v32  ;;  %v2475_v32 = vld [vmem:[%s3193_s0 + $0x2b0] sm:$0xff]  ;;  %v2481_v42 = vld [vmem:[%s3193_s0 + $0x2e0] sm:$0xff]  ;;  %v2492_v57 = vld [vmem:[%s3193_s0 + $0x338] sm:$0xff] }
  0x21   :  { %1130 = vmatpush.bf16.msra.mxu3 %v2413_v33  ;;  %1089 = vmatmul.bf16.vlgmr.msra.gmra.mxu0 %v1688_v44  ;;  %v2467_v33 = vld [vmem:[%s3193_s0 + $0x270] sm:$0xff]  ;;  %v2472_v44 = vld [vmem:[%s3193_s0 + $0x298] sm:$0xff]  ;;  %v2469_v56 = vld [vmem:[%s3193_s0 + $0x280] sm:$0xff] }
  0x22   :  { %1137 = vmatpush.bf16.msrb.mxu0 %v2428_v30  ;;  %1117 = vmatmul.bf16.vlgmr.msra.gmra.mxu2 %v1696_v45  ;;  %v1716_v30 = vor.u32 %v2378_v23, %v1713_v24  ;;  %v2464_v45 = vld [vmem:[%s3193_s0 + $0x258] sm:$0xff]  ;;  %v2490_v15 = vld [vmem:[%s3193_s0 + $0x328] sm:$0xff]  ;;  %v2493_v21 = vld [vmem:[%s3193_s0 + $0x340] sm:$0xff] }
  0x23   :  { %1165 = vmatpush.bf16.msrb.mxu2 %v2444_v31  ;;  %1103 = vmatmul.bf16.vlgmr.msra.gmra.mxu1 %v1692_v48  ;;  %v2459_v31 = vld [vmem:[%s3193_s0 + $0x230] sm:$0xff]  ;;  %v1721_v2 = vld [vmem:[%s3194_s2 + $0x58] sm:$0xf0]  ;;  %v2508_v16 = vld [vmem:[%s3196_s1 + $0x28] sm:$0xff] }
  0x24   :  { %1151 = vmatpush.bf16.msrb.mxu1 %v2436_v38  ;;  %1131 = vmatmul.bf16.vlgmr.msra.gmra.mxu3 %v1700_v49  ;;  %v2482_v38 = vld [vmem:[%s3193_s0 + $0x2e8] sm:$0xff]  ;;  %v2471_v48 = vld [vmem:[%s3193_s0 + $0x290] sm:$0xff]  ;;  %v2515_v22 = vld [vmem:[%s3196_s1 + $0x60] sm:$0xff] }
  0x25   :  { %1179 = vmatpush.bf16.msrb.mxu3 %v2452_v39  ;;  %v2457_v39 = vld [vmem:[%s3193_s0 + $0x220] sm:$0xff]  ;;  %v2463_v49 = vld [vmem:[%s3193_s0 + $0x250] sm:$0xff]  ;;  %v2494_v17 = vld [vmem:[%s3193_s0 + $0x348] sm:$0xff] }
  0x26   :  { %1138 = vmatpush.bf16.msrb.mxu0 %v2427_v46  ;;  %v2480_v46 = vld [vmem:[%s3193_s0 + $0x2d8] sm:$0xff]  ;;  %v2516_v18 = vld [vmem:[%s3196_s1 + $0x68] sm:$0xff] }
  0x27   :  { %1166 = vmatpush.bf16.msrb.mxu2 %v2443_v47  ;;  %v2455_v47 = vld [vmem:[%s3193_s0 + $0x210] sm:$0xff]  ;;  %v2526_v23 = vld [vmem:[%s3196_s1 + $0xb8] sm:$0xff] }
  0x28   :  { %1152 = vmatpush.bf16.msrb.mxu1 %v2435_v50  ;;  %v2479_v50 = vld [vmem:[%s3193_s0 + $0x2d0] sm:$0xff]  ;;  %v2488_v24 = vld [vmem:[%s3193_s0 + $0x318] sm:$0xff] }
  0x29   :  { %1180 = vmatpush.bf16.msrb.mxu3 %v2451_v51  ;;  %v2454_v51 = vld [vmem:[%s3193_s0 + $0x208] sm:$0xff] }
  0x2a   :  { %1139 = vmatpush.bf16.msrb.mxu0 %v2426_v52  ;;  %v2470_v52 = vld [vmem:[%s3193_s0 + $0x288] sm:$0xff] }
  0x2b   :  { %1167 = vmatpush.bf16.msrb.mxu2 %v2442_v53  ;;  %v2462_v53 = vld [vmem:[%s3193_s0 + $0x248] sm:$0xff] }
  0x2c   :  { %1153 = vmatpush.bf16.msrb.mxu1 %v2434_v54  ;;  %v2478_v54 = vld [vmem:[%s3193_s0 + $0x2c8] sm:$0xff] }
  0x2d   :  { %1181 = vmatpush.bf16.msrb.mxu3 %v2450_v55  ;;  %v2453_v55 = vld [vmem:[%s3193_s0 + $0x200] sm:$0xff] }
  0x2e   :  { %1140 = vmatpush.bf16.msrb.mxu0 %v2425_v58  ;;  %v2510_v58 = vld [vmem:[%s3196_s1 + $0x38] sm:$0xff] }
  0x2f   :  { %1168 = vmatpush.bf16.msrb.mxu2 %v2441_v59  ;;  %v1719_v59 = vld [vmem:[%s3194_s2 + $0x20] sm:$0xf] }
  0x30   :  { %1154 = vmatpush.bf16.msrb.mxu1 %v2433_v60  ;;  %v2386_v60 = vld [vmem:[%s3194_s2 + $0x54] sm:$0xf0] }
  0x31   :  { %1182 = vmatpush.bf16.msrb.mxu3 %v2449_v61  ;;  %v1727_v61 = vld [vmem:[%s3194_s2 + $0x28] sm:$0xf] }
  0x32   :  { %1141 = vmatpush.bf16.msrb.mxu0 %v2424_v62  ;;  %v2387_v62 = vld [vmem:[%s3194_s2 + $0x5c] sm:$0xf0] }
  0x33   :  { %1169 = vmatpush.bf16.msrb.mxu2 %v2440_v63  ;;  %v2461_v63 = vld [vmem:[%s3193_s0 + $0x240] sm:$0xff] }
  0x34   :  { %1155 = vmatpush.bf16.msrb.mxu1 %v2432_v0  ;;  %v2477_v0 = vld [vmem:[%s3193_s0 + $0x2c0] sm:$0xff] }
  0x35   :  { %1183 = vmatpush.bf16.msrb.mxu3 %v2448_v1  ;;  %v2379_v1 = vld [vmem:[%s3194_s2 + $0x24] sm:$0xf] }
  0x36   :  { %1142 = vmatpush.bf16.msrb.mxu0 %v2423_v3  ;;  %v2380_v3 = vld [vmem:[%s3194_s2 + $0x2c] sm:$0xf] }
  0x37   :  { %1170 = vmatpush.bf16.msrb.mxu2 %v2439_v4  ;;  %v1729_v4 = vld [vmem:[%s3194_s2 + $0x60] sm:$0xf0] }
  0x38   :  { %1156 = vmatpush.bf16.msrb.mxu1 %v2431_v5  ;;  %v1720_v5 = vor.u32 %v2386_v60, %v1719_v59  ;;  %v2521_v59 = vld [vmem:[%s3196_s1 + $0x90] sm:$0xff] }
  0x39   :  { %1184 = vmatpush.bf16.msrb.mxu3 %v2447_v6  ;;  %v1728_v6 = vor.u32 %v2387_v62, %v1727_v61  ;;  %v2545_v60 = vld [vmem:[%s3196_s1 + $0x150] sm:$0xff]  ;;  %v2532_v61 = vld [vmem:[%s3196_s1 + $0xe8] sm:$0xff] }
  0x3a   :  { %1143 = vmatpush.bf16.msrb.mxu0 %v2422_v7  ;;  %v2496_v7 = vld [vmem:[%s3193_s0 + $0x358] sm:$0xff]  ;;  %v2540_v62 = vld [vmem:[%s3196_s1 + $0x128] sm:$0xff] }
  0x3b   :  { %1171 = vmatpush.bf16.msrb.mxu2 %v2438_v8  ;;  %v2518_v8 = vld [vmem:[%s3196_s1 + $0x78] sm:$0xff] }
  0x3c   :  { %1157 = vmatpush.bf16.msrb.mxu1 %v2430_v9  ;;  %v1724_v9 = vor.u32 %v2379_v1, %v1721_v2  ;;  %v2531_v1 = vld [vmem:[%s3196_s1 + $0xe0] sm:$0xff] }
  0x3d   :  { %1185 = vmatpush.bf16.msrb.mxu3 %v2446_v10  ;;  %v1732_v10 = vor.u32 %v2380_v3, %v1729_v4  ;;  %v2539_v2 = vld [vmem:[%s3196_s1 + $0x120] sm:$0xff]  ;;  %v2184_v4 = vld [vmem:[%s3198_s3 + $0x8] sm:$0xf] }
  0x3e   :  { %1144 = vmatpush.bf16.msrb.mxu0 %v2421_v11  ;;  %v2491_v11 = vld [vmem:[%s3193_s0 + $0x330] sm:$0xff]  ;;  %v2519_v3 = vld [vmem:[%s3196_s1 + $0x80] sm:$0xff] }
  0x3f   :  { %1172 = vmatpush.bf16.msrb.mxu2 %v2437_v12  ;;  %v2509_v12 = vld [vmem:[%s3196_s1 + $0x30] sm:$0xff] }
  0x40   :  { %1158 = vmatpush.bf16.msrb.mxu1 %v2429_v19  ;;  %v2489_v19 = vld [vmem:[%s3193_s0 + $0x320] sm:$0xff] }
  0x41   :  { %1186 = vmatpush.bf16.msrb.mxu3 %v2445_v20  ;;  %1145 = vmatmul.bf16.vlgmr.msrb.gmra.mxu0 %v1704_v25  ;;  %v2507_v20 = vld [vmem:[%s3196_s1 + $0x20] sm:$0xff]  ;;  %v2506_v25 = vld [vmem:[%s3196_s1 + $0x18] sm:$0xff] }
  0x42   :  { %1193 = vmatpush.bf16.msra.mxu0 %v2460_v13  ;;  %1173 = vmatmul.bf16.vlgmr.msrb.gmra.mxu2 %v1712_v26  ;;  %v2495_v13 = vld [vmem:[%s3193_s0 + $0x350] sm:$0xff]  ;;  %v2514_v26 = vld [vmem:[%s3196_s1 + $0x58] sm:$0xff] }
  0x43   :  { %1221 = vmatpush.bf16.msra.mxu2 %v2476_v14  ;;  %1159 = vmatmul.bf16.vlgmr.msrb.gmra.mxu1 %v1708_v29  ;;  %v2517_v14 = vld [vmem:[%s3196_s1 + $0x70] sm:$0xff] }
  0x44   :  { %1207 = vmatpush.bf16.msra.mxu1 %v2468_v27  ;;  %1187 = vmatmul.bf16.vlgmr.msrb.gmra.mxu3 %v1716_v30  ;;  %v2381_v27 = vld [vmem:[%s3194_s2 + $0x34] sm:$0xf] }
  0x45   :  { %1235 = vmatpush.bf16.msra.mxu3 %v2484_v28  ;;  %v1737_v28 = vld [vmem:[%s3194_s2 + $0x68] sm:$0xf0]  ;;  %v2525_v29 = vld [vmem:[%s3196_s1 + $0xb0] sm:$0xff] }
  0x46   :  { %1194 = vmatpush.bf16.msra.mxu0 %v2459_v31  ;;  %v2487_v30 = vld [vmem:[%s3193_s0 + $0x310] sm:$0xff] }
  0x47   :  { %1222 = vmatpush.bf16.msra.mxu2 %v2475_v32  ;;  %v2505_v31 = vld [vmem:[%s3196_s1 + $0x10] sm:$0xff]  ;;  %v1740_v32 = vor.u32 %v2381_v27, %v1737_v28 }
  0x48   :  { %1208 = vmatpush.bf16.msra.mxu1 %v2467_v33  ;;  %v1283_v33 = vld [vmem:[%s3197_s5] sm:$0xff] }
  0x49   :  { %1236 = vmatpush.bf16.msra.mxu3 %v2483_v34  ;;  %v2513_v34 = vld [vmem:[%s3196_s1 + $0x50] sm:$0xff]  ;;  %1287 = vperm.xlu1 %2560, %v1283_v33  }
  0x4a   :  { %1195 = vmatpush.bf16.msra.mxu0 %v2458_v35  ;;  %v2524_v35 = vld [vmem:[%s3196_s1 + $0xa8] sm:$0xff] }
  0x4b   :  { %1223 = vmatpush.bf16.msra.mxu2 %v2474_v36  ;;  %v2486_v36 = vld [vmem:[%s3193_s0 + $0x308] sm:$0xff] }
  0x4c   :  { %1209 = vmatpush.bf16.msra.mxu1 %v2466_v37  ;;  %v2504_v37 = vld [vmem:[%s3196_s1 + $0x8] sm:$0xff] }
  0x4d   :  { %1237 = vmatpush.bf16.msra.mxu3 %v2482_v38  ;;  %v2512_v38 = vld [vmem:[%s3196_s1 + $0x48] sm:$0xff] }
  0x4e   :  { %1196 = vmatpush.bf16.msra.mxu0 %v2457_v39  ;;  %v2523_v39 = vld [vmem:[%s3196_s1 + $0xa0] sm:$0xff] }
  0x4f   :  { %1224 = vmatpush.bf16.msra.mxu2 %v2473_v40  ;;  %v2485_v40 = vld [vmem:[%s3193_s0 + $0x300] sm:$0xff] }
  0x50   :  { %1210 = vmatpush.bf16.msra.mxu1 %v2465_v41  ;;  %v2503_v41 = vld [vmem:[%s3196_s1] sm:$0xff] }
  0x51   :  { %1238 = vmatpush.bf16.msra.mxu3 %v2481_v42  ;;  %v2534_v42 = vld [vmem:[%s3196_s1 + $0xf8] sm:$0xff] }
  0x52   :  { %1197 = vmatpush.bf16.msra.mxu0 %v2456_v43  ;;  %v1735_v43 = vld [vmem:[%s3194_s2 + $0x30] sm:$0xf] }
  0x53   :  { %1225 = vmatpush.bf16.msra.mxu2 %v2472_v44  ;;  %v2388_v44 = vld [vmem:[%s3194_s2 + $0x64] sm:$0xf0] }
  0x54   :  { %1211 = vmatpush.bf16.msra.mxu1 %v2464_v45  ;;  %v2542_v45 = vld [vmem:[%s3196_s1 + $0x138] sm:$0xff] }
  0x55   :  { %1239 = vmatpush.bf16.msra.mxu3 %v2480_v46  ;;  %v2176_v46 = vld [vmem:[%s3198_s3] sm:$0xf] }
  0x56   :  { %1198 = vmatpush.bf16.msra.mxu0 %v2455_v47  ;;  %v2500_v47 = vld [vmem:[%s3198_s3 + $0x14] sm:$0xf0] }
  0x57   :  { %1226 = vmatpush.bf16.msra.mxu2 %v2471_v48  ;;  %v2511_v48 = vld [vmem:[%s3196_s1 + $0x40] sm:$0xff] }
  0x58   :  { %1212 = vmatpush.bf16.msra.mxu1 %v2463_v49  ;;  %v1736_v49 = vor.u32 %v2388_v44, %v1735_v43 }
  0x59   :  { %1240 = vmatpush.bf16.msra.mxu3 %v2479_v50  ;;  %v2522_v50 = vld [vmem:[%s3196_s1 + $0x98] sm:$0xff] }
  0x5a   :  { %1199 = vmatpush.bf16.msra.mxu0 %v2454_v51  ;;  %v2497_v51 = vld [vmem:[%s3198_s3 + $0x4] sm:$0xf] }
  0x5b   :  { %1227 = vmatpush.bf16.msra.mxu2 %v2470_v52  ;;  %v2178_v52 = vld [vmem:[%s3198_s3 + $0x18] sm:$0xf0] }
  0x5c   :  { %1213 = vmatpush.bf16.msra.mxu1 %v2462_v53  ;;  %v2177_v53 = vor.u32 %v2500_v47, %v2176_v46 }
  0x5d   :  { %1241 = vmatpush.bf16.msra.mxu3 %v2478_v54  ;;  %v2546_v54 = vld [vmem:[%s3196_s1 + $0x158] sm:$0xff] }
  0x5e   :  { %1200 = vmatpush.bf16.msra.mxu0 %v2453_v55  ;;  %v1284_v55 = vld [vmem:[%s3197_s5 + $0x8] sm:$0xff] }
  0x5f   :  { %1228 = vmatpush.bf16.msra.mxu2 %v2469_v56  ;;  %v2533_v56 = vld [vmem:[%s3196_s1 + $0xf0] sm:$0xff]  ;;  %1292 = vperm.xlu1 %2560, %v1284_v55  }
  0x60   :  { %1214 = vmatpush.bf16.msra.mxu1 %v2461_v63  ;;  %v2520_v63 = vld [vmem:[%s3196_s1 + $0x88] sm:$0xff] }
  0x61   :  { %1242 = vmatpush.bf16.msra.mxu3 %v2477_v0  ;;  %1201 = vmatmul.bf16.vlgmr.msra.gmra.mxu0 %v1720_v5  ;;  %v2544_v0 = vld [vmem:[%s3196_s1 + $0x148] sm:$0xff]  ;;  %v2501_v5 = vld [vmem:[%s3198_s3 + $0x1c] sm:$0xf0] }
  0x62   :  { %1249 = vmatpush.bf16.msrb.mxu0 %v2492_v57  ;;  %1229 = vmatmul.bf16.vlgmr.msra.gmra.mxu2 %v1728_v6  ;;  %v2541_v57 = vld [vmem:[%s3196_s1 + $0x130] sm:$0xff]  ;;  %v2543_v6 = vld [vmem:[%s3196_s1 + $0x140] sm:$0xff] }
  0x63   :  { %1591 = vmatpush.bf16.msrb.mxu2 %v2510_v58  ;;  %1215 = vmatmul.bf16.vlgmr.msra.gmra.mxu1 %v1724_v9  ;;  %v2181_v58 = vor.u32 %v2497_v51, %v2178_v52  ;;  %v2185_v9 = vor.u32 %v2501_v5, %v2184_v4 }
  0x64   :  { %1267 = vmatpush.bf16.msrb.mxu1 %v2496_v7  ;;  %1243 = vmatmul.bf16.vlgmr.msra.gmra.mxu3 %v1732_v10  ;;  %v2530_v7 = vld [vmem:[%s3196_s1 + $0xd8] sm:$0xff]  ;;  %v2499_v10 = vld [vmem:[%s3198_s3 + $0x14] sm:$0xf] }
  0x65   :  { %1605 = vmatpush.bf16.msrb.mxu3 %v2518_v8  ;;  %v2538_v8 = vld [vmem:[%s3196_s1 + $0x118] sm:$0xff] }
  0x66   :  { %1250 = vmatpush.bf16.msrb.mxu0 %v2491_v11  ;;  %v2194_v11 = vld [vmem:[%s3198_s3 + $0x28] sm:$0xf0] }
  0x67   :  { %1592 = vmatpush.bf16.msrb.mxu2 %v2509_v12  ;;  %v2529_v12 = vld [vmem:[%s3196_s1 + $0xd0] sm:$0xff] }
  0x68   :  { %1268 = vmatpush.bf16.msrb.mxu1 %v2495_v13  ;;  %v2537_v13 = vld [vmem:[%s3196_s1 + $0x110] sm:$0xff] }
  0x69   :  { %1606 = vmatpush.bf16.msrb.mxu3 %v2517_v14  ;;  %v2197_v14 = vor.u32 %v2499_v10, %v2194_v11 }
  0x6a   :  { %1251 = vmatpush.bf16.msrb.mxu0 %v2490_v15  ;;  %v2528_v15 = vld [vmem:[%s3196_s1 + $0xc8] sm:$0xff] }
  0x6b   :  { %1593 = vmatpush.bf16.msrb.mxu2 %v2508_v16  ;;  %v2536_v16 = vld [vmem:[%s3196_s1 + $0x108] sm:$0xff] }
  0x6c   :  { %1269 = vmatpush.bf16.msrb.mxu1 %v2494_v17  ;;  %v2527_v17 = vld [vmem:[%s3196_s1 + $0xc0] sm:$0xff] }
  0x6d   :  { %1607 = vmatpush.bf16.msrb.mxu3 %v2516_v18  ;;  %v2535_v18 = vld [vmem:[%s3196_s1 + $0x100] sm:$0xff] }
  0x6e   :  { %1252 = vmatpush.bf16.msrb.mxu0 %v2489_v19  ;;  %v2498_v19 = vld [vmem:[%s3198_s3 + $0xc] sm:$0xf] }
  0x6f   :  { %1594 = vmatpush.bf16.msrb.mxu2 %v2507_v20  ;;  %v2186_v20 = vld [vmem:[%s3198_s3 + $0x20] sm:$0xf0] }
  0x70   :  { %1270 = vmatpush.bf16.msrb.mxu1 %v2493_v21  ;;  %v2192_v21 = vld [vmem:[%s3198_s3 + $0x10] sm:$0xf] }
  0x71   :  { %1608 = vmatpush.bf16.msrb.mxu3 %v2515_v22  ;;  %v2502_v22 = vld [vmem:[%s3198_s3 + $0x24] sm:$0xf0] }
  0x72   :  { %1253 = vmatpush.bf16.msrb.mxu0 %v2488_v24  ;;  %v2193_v24 = vor.u32 %v2502_v22, %v2192_v21 }
  0x73   :  { %1595 = vmatpush.bf16.msrb.mxu2 %v2506_v25  ;;  %2173 = vmatmul.msk.bf16.vlgmr.msrb.gmra.mxu1 %vm1077_vm0, %v1740_v32 }
  0x74   :  { %1619 = vmatpush.bf16.msra.mxu1 %v2526_v23  ;;  %v2189_v23 = vor.u32 %v2498_v19, %v2186_v20 }
  0x75   :  { %1609 = vmatpush.bf16.msrb.mxu3 %v2514_v26 }
  0x76   :  { %1254 = vmatpush.bf16.msrb.mxu0 %v2487_v30 }
  0x77   :  { %1596 = vmatpush.bf16.msrb.mxu2 %v2505_v31 }
  0x78   :  { %1620 = vmatpush.bf16.msra.mxu1 %v2525_v29 }
  0x79   :  { %1610 = vmatpush.bf16.msrb.mxu3 %v2513_v34 }
  0x7a   :  { %1255 = vmatpush.bf16.msrb.mxu0 %v2486_v36 }
  0x7b   :  { %1597 = vmatpush.bf16.msrb.mxu2 %v2504_v37 }
  0x7c   :  { %1621 = vmatpush.bf16.msra.mxu1 %v2524_v35 }
  0x7d   :  { %1611 = vmatpush.bf16.msrb.mxu3 %v2512_v38 }
  0x7e   :  { %1256 = vmatpush.bf16.msrb.mxu0 %v2485_v40 }
  0x7f   :  { %1598 = vmatpush.bf16.msrb.mxu2 %v2503_v41 }
  0x80   :  { %1622 = vmatpush.bf16.msra.mxu1 %v2523_v39 }
  0x81   :  { %1612 = vmatpush.bf16.msrb.mxu3 %v2511_v48  ;;  %1257 = vmatmul.bf16.vlgmr.msrb.gmra.mxu0 %v1736_v49 }
  0x82   :  { %1633 = vmatpush.bf16.msra.mxu0 %v2534_v42  ;;  %1599 = vmatmul.bf16.vlgmr.msrb.gmra.mxu2 %v2177_v53 }
  0x83   :  { %1647 = vmatpush.bf16.msra.mxu2 %v2542_v45  ;;  %v353_v30 = vpop.permute.xlu0 %352 }
  0x84   :  { %1623 = vmatpush.bf16.msra.mxu1 %v2522_v50  ;;  %1613 = vmatmul.bf16.vlgmr.msrb.gmra.mxu3 %v2181_v58 }
  0x85   :  { %1665 = vmatpush.bf16.msra.mxu3 %v2546_v54 }
  0x86   :  { %1634 = vmatpush.bf16.msra.mxu0 %v2533_v56 }
  0x87   :  { %1648 = vmatpush.bf16.msra.mxu2 %v2541_v57 }
  0x88   :  { %1624 = vmatpush.bf16.msra.mxu1 %v2521_v59 }
  0x89   :  { %1666 = vmatpush.bf16.msra.mxu3 %v2545_v60 }
  0x8a   :  { %1635 = vmatpush.bf16.msra.mxu0 %v2532_v61 }
  0x8b   :  { %1649 = vmatpush.bf16.msra.mxu2 %v2540_v62  ;;  %v358_v36 = vpop.permute.xlu0 %357 }
  0x8c   :  { %1625 = vmatpush.bf16.msra.mxu1 %v2520_v63 }
  0x8d   :  { %1667 = vmatpush.bf16.msra.mxu3 %v2544_v0 }
  0x8e   :  { %1636 = vmatpush.bf16.msra.mxu0 %v2531_v1 }
  0x8f   :  { %1650 = vmatpush.bf16.msra.mxu2 %v2539_v2 }
  0x90   :  { %1626 = vmatpush.bf16.msra.mxu1 %v2519_v3 }
  0x91   :  { %1668 = vmatpush.bf16.msra.mxu3 %v2543_v6 }
  0x92   :  { %1637 = vmatpush.bf16.msra.mxu0 %v2530_v7 }
  0x93   :  { %1651 = vmatpush.bf16.msra.mxu2 %v2538_v8  ;;  %1627 = vmatmul.bf16.vlgmr.msra.gmra.mxu1 %v2185_v9 }
  0x94   :  { %2374 = vmatmul.msk.bf16.vlgmr.msra.gmra.mxu3 %vm1077_vm0, %v2197_v14 }
  0x96   :  { %1638 = vmatpush.bf16.msra.mxu0 %v2529_v12 }
  0x97   :  { %1652 = vmatpush.bf16.msra.mxu2 %v2537_v13 }
  0x9a   :  { %1639 = vmatpush.bf16.msra.mxu0 %v2528_v15 }
  0x9b   :  { %1653 = vmatpush.bf16.msra.mxu2 %v2536_v16 }
  0x9e   :  { %1640 = vmatpush.bf16.msra.mxu0 %v2527_v17  ;;  %v1090_v25 = vpop.f32.mrf.mxu0 }
  0x9f   :  { %1654 = vmatpush.bf16.msra.mxu2 %v2535_v18  ;;  %v1091_v33 = vadd.f32 %v1090_v25, %v353_v30 }
  0xa0   :  { %v1104_v26 = vpop.f32.mrf.mxu1 }
  0xa1   :  { %1641 = vmatmul.bf16.vlgmr.msra.gmra.mxu0 %v2189_v23  ;;  %v1105_v38 = vadd.f32 %v1104_v26, %v1091_v33 }
  0xa2   :  { %1655 = vmatmul.bf16.vlgmr.msra.gmra.mxu2 %v2193_v24 }
  0xa5   :  { %v1118_v27 = vpop.f32.mrf.mxu2 }
  0xa6   :  { %v1092_v28 = vpop.f32.mrf.mxu0  ;;  %v1119_v40 = vadd.f32 %v1118_v27, %v1105_v38 }
  0xa7   :  { %v1132_v31 = vpop.f32.mrf.mxu3  ;;  %v1093_v39 = vadd.f32 %v1092_v28, %v358_v36 }
  0xa8   :  { %v1106_v29 = vpop.f32.mrf.mxu1  ;;  %v1133_v45 = vadd.f32 %v1132_v31, %v1119_v40 }
  0xa9   :  { %v1107_v42 = vadd.f32 %v1106_v29, %v1093_v39 }
  0xad   :  { %v1120_v32 = vpop.f32.mrf.mxu2 }
  0xae   :  { %v1121_v47 = vadd.f32 %v1120_v32, %v1107_v42 }
  0xaf   :  { %v1134_v37 = vpop.f32.mrf.mxu3 }
  0xb0   :  { %v1135_v49 = vadd.f32 %v1134_v37, %v1121_v47 }
  0xbb   :  { %v1288_v24 = vpop.permute.xlu1 %1287 }
  0xbe   :  { %v1146_v34 = vpop.f32.mrf.mxu0 }
  0xbf   :  { %v1147_v48 = vadd.f32 %v1146_v34, %v1133_v45 }
  0xc0   :  { %v1160_v35 = vpop.f32.mrf.mxu1 }
  0xc1   :  { %v1161_v53 = vadd.f32 %v1160_v35, %v1147_v48 }
  0xc5   :  { %v1174_v41 = vpop.f32.mrf.mxu2 }
  0xc6   :  { %v1148_v43 = vpop.f32.mrf.mxu0  ;;  %v1175_v56 = vadd.f32 %v1174_v41, %v1161_v53 }
  0xc7   :  { %v1188_v46 = vpop.f32.mrf.mxu3  ;;  %v1149_v54 = vadd.f32 %v1148_v43, %v1135_v49 }
  0xc8   :  { %v1162_v44 = vpop.f32.mrf.mxu1  ;;  %v1189_v59 = vadd.f32 %v1188_v46, %v1175_v56 }
  0xc9   :  { %v1163_v57 = vadd.f32 %v1162_v44, %v1149_v54 }
  0xcd   :  { %v1176_v50 = vpop.f32.mrf.mxu2 }
  0xce   :  { %v1177_v60 = vadd.f32 %v1176_v50, %v1163_v57 }
  0xcf   :  { %v1190_v55 = vpop.f32.mrf.mxu3 }
  0xd0   :  { %v1191_v1 = vadd.f32 %v1190_v55, %v1177_v60 }
  0xd1   :  { %v1293_v29 = vpop.permute.xlu1 %1292 }
  0xde   :  { %v1202_v51 = vpop.f32.mrf.mxu0 }
  0xdf   :  { %v1203_v63 = vadd.f32 %v1202_v51, %v1189_v59 }
  0xe0   :  { %v1216_v52 = vpop.f32.mrf.mxu1 }
  0xe1   :  { %v1217_v2 = vadd.f32 %v1216_v52, %v1203_v63 }
  0xe5   :  { %v1230_v58 = vpop.f32.mrf.mxu2 }
  0xe6   :  { %v1204_v61 = vpop.f32.mrf.mxu0  ;;  %v1231_v4 = vadd.f32 %v1230_v58, %v1217_v2 }
  0xe7   :  { %v1244_v0 = vpop.f32.mrf.mxu3  ;;  %v1205_v3 = vadd.f32 %v1204_v61, %v1191_v1 }
  0xe8   :  { %v1218_v62 = vpop.f32.mrf.mxu1  ;;  %v1245_v9 = vadd.f32 %v1244_v0, %v1231_v4 }
  0xe9   :  { %v1219_v8 = vadd.f32 %v1218_v62, %v1205_v3 }
  0xed   :  { %v1232_v5 = vpop.f32.mrf.mxu2 }
  0xee   :  { %v1233_v10 = vadd.f32 %v1232_v5, %v1219_v8 }
  0xef   :  { %v1246_v11 = vpop.f32.mrf.mxu3 }
  0xf0   :  { %v1272_v6 = vpop.f32.mrf.mxu1  ;;  %v1247_v13 = vadd.f32 %v1246_v11, %v1233_v10 }
  0xf8   :  { %v1274_v17 = vpop.f32.mrf.mxu1 }
  0xfe   :  { %v1258_v7 = vpop.f32.mrf.mxu0 }
  0xff   :  { %v1259_v12 = vadd.f32 %v1258_v7, %v1245_v9 }
 0x101   :  { %v1273_v15 = vadd.f32 %v1272_v6, %v1259_v12 }
 0x103   :  { %v1277_v19 = vmax.f32 %v1273_v15, 0.0 }
 0x105   :  { %v1600_v23 = vpop.f32.mrf.mxu2 }
 0x106   :  { %v1260_v14 = vpop.f32.mrf.mxu0  ;;  %v1601_v28 = vadd.f32 %v1600_v23, %v1288_v24 }
 0x107   :  { %v1261_v16 = vadd.f32 %v1260_v14, %v1247_v13  ;;  %v1614_v22 = vpop.f32.mrf.mxu3 }
 0x108   :  { %v1615_v31 = vadd.f32 %v1614_v22, %v1601_v28 }
 0x109   :  { %v1275_v18 = vadd.f32 %v1274_v17, %v1261_v16 }
 0x10b   :  { %v1278_v20 = vmax.f32 %v1275_v18, 0.0 }
 0x10d   :  { %v2550_v21 = vpack.c.bf16 %v1278_v20, %v1277_v19  ;;  %v1602_v27 = vpop.f32.mrf.mxu2 }
 0x10e   :  { %v1603_v32 = vadd.f32 %v1602_v27, %v1293_v29 }
 0x10f   :  { %2551 = vst [vmem:[%s3199_s6] sm:$0xff] %v2550_v21   ;;  %v1616_v25 = vpop.f32.mrf.mxu3 }
 0x110   :  { %v1628_v26 = vpop.f32.mrf.mxu1  ;;  %v1617_v36 = vadd.f32 %v1616_v25, %v1603_v32 }
 0x111   :  { %v1629_v35 = vadd.f32 %v1628_v26, %v1615_v31 }
 0x117   :  { %v1670_v33 = vpop.f32.mrf.mxu3 }
 0x118   :  { %v1630_v37 = vpop.f32.mrf.mxu1 }
 0x119   :  { %v1631_v40 = vadd.f32 %v1630_v37, %v1617_v36 }
 0x11e   :  { %v1642_v30 = vpop.f32.mrf.mxu0 }
 0x11f   :  { %v1643_v38 = vadd.f32 %v1642_v30, %v1629_v35  ;;  %v1672_v46 = vpop.f32.mrf.mxu3 }
 0x125   :  { %v1656_v34 = vpop.f32.mrf.mxu2 }
 0x126   :  { %v1644_v39 = vpop.f32.mrf.mxu0  ;;  %v1657_v41 = vadd.f32 %v1656_v34, %v1643_v38 }
 0x127   :  { %v1645_v42 = vadd.f32 %v1644_v39, %v1631_v40 }
 0x128   :  { %v1671_v44 = vadd.f32 %v1670_v33, %v1657_v41 }
 0x12a   :  { %v1675_v48 = vmax.f32 %v1671_v44, 0.0 }
 0x12d   :  { %v1658_v43 = vpop.f32.mrf.mxu2 }
 0x12e   :  { %v1659_v45 = vadd.f32 %v1658_v43, %v1645_v42 }
 0x130   :  { %v1673_v47 = vadd.f32 %v1672_v46, %v1659_v45 }
 0x132   :  { %v1676_v49 = vmax.f32 %v1673_v47, 0.0 }
 0x134   :  { %v2555_v50 = vpack.c.bf16 %v1676_v49, %v1675_v48 }
 0x136   :  { %2557 = vst [vmem:[%s3199_s6 + $0x8] sm:$0xff] %v2555_v50  }

// kernel: cnn_forward.4
= control target key start
LH: loop header
LB: loop body
LE: loop exit
PB: predicated region body
PF: predicated region fallthrough
CT: control target
= control target key end

     0   :  { %v706_v8 = vmov 0   ;;  %s922_s0 = inlined_call_operand.vmem [shape: bf16[256,128], index: 0, kind: input, shape index: {}]   ;;  %s923_s1 = inlined_call_operand.vmem [shape: bf16[256,128], index: 1, kind: input, shape index: {}]   ;;  %s924_s4 = inlined_call_operand.vmem [shape: f32[32,1], index: 4, kind: input, shape index: {}]   ;;  %s925_s5 = inlined_call_operand.vmem [shape: f32[32,1], index: 5, kind: input, shape index: {}]   ;;  %s926_s2 = inlined_call_operand.vmem [shape: bf16[32,256], index: 2, kind: input, shape index: {}]   ;;  %s927_s3 = inlined_call_operand.vmem [shape: bf16[32,256], index: 3, kind: input, shape index: {}]   ;;  %s928_s6 = inlined_call_operand.vmem [shape: bf16[64,128], index: 6, kind: output, shape index: {}]  }
   0x1   :  { %v650_v0 = vld [vmem:[%s922_s0 + $0x38] sm:$0xff]  ;;  %v649_v4 = vld [vmem:[%s922_s0 + $0x30] sm:$0xff]  ;;  %704 = vset.pattern.permute.xlu1 %v706_v8  ;;  %703 = vset.pattern.permute.xlu0 %v706_v8  ;;  %v648_v9 = vld [vmem:[%s922_s0 + $0x28] sm:$0xff] }
   0x2   :  { %v658_v1 = vld [vmem:[%s922_s0 + $0x78] sm:$0xff]  ;;  %235 = vmatpush.bf16.msra.mxu0 %v650_v0  ;;  %v657_v5 = vld [vmem:[%s922_s0 + $0x70] sm:$0xff]  ;;  %705 = vset.pattern.permute.xlu2 %v706_v8  ;;  %v656_v10 = vld [vmem:[%s922_s0 + $0x68] sm:$0xff] }
   0x3   :  { %v670_v2 = vld [vmem:[%s923_s1 + $0x38] sm:$0xff]  ;;  %254 = vmatpush.bf16.msra.mxu1 %v658_v1  ;;  %v669_v6 = vld [vmem:[%s923_s1 + $0x30] sm:$0xff]  ;;  %v668_v11 = vld [vmem:[%s923_s1 + $0x28] sm:$0xff] }
   0x4   :  { %v678_v3 = vld [vmem:[%s923_s1 + $0x78] sm:$0xff]  ;;  %425 = vmatpush.bf16.msra.mxu2 %v670_v2  ;;  %v677_v7 = vld [vmem:[%s923_s1 + $0x70] sm:$0xff]  ;;  %v676_v12 = vld [vmem:[%s923_s1 + $0x68] sm:$0xff] }
   0x5   :  { %444 = vmatpush.bf16.msra.mxu3 %v678_v3  ;;  %v647_v13 = vld [vmem:[%s922_s0 + $0x20] sm:$0xff]  ;;  %v97_v17 = vld [vmem:[%s924_s4 + $0x10] sm:$0xff]  ;;  %v646_v19 = vld [vmem:[%s922_s0 + $0x18] sm:$0xff] }
   0x6   :  { %236 = vmatpush.bf16.msra.mxu0 %v649_v4  ;;  %v655_v14 = vld [vmem:[%s922_s0 + $0x60] sm:$0xff]  ;;  %v654_v20 = vld [vmem:[%s922_s0 + $0x58] sm:$0xff]  ;;  %111 = vperm.xlu1 %704, %v97_v17   ;;  %v645_v23 = vld [vmem:[%s922_s0 + $0x10] sm:$0xff] }
   0x7   :  { %255 = vmatpush.bf16.msra.mxu1 %v657_v5  ;;  %v667_v15 = vld [vmem:[%s923_s1 + $0x20] sm:$0xff]  ;;  %v666_v21 = vld [vmem:[%s923_s1 + $0x18] sm:$0xff]  ;;  %v653_v24 = vld [vmem:[%s922_s0 + $0x50] sm:$0xff] }
   0x8   :  { %426 = vmatpush.bf16.msra.mxu2 %v669_v6  ;;  %v675_v16 = vld [vmem:[%s923_s1 + $0x60] sm:$0xff]  ;;  %v674_v22 = vld [vmem:[%s923_s1 + $0x58] sm:$0xff]  ;;  %v665_v25 = vld [vmem:[%s923_s1 + $0x10] sm:$0xff] }
   0x9   :  { %445 = vmatpush.bf16.msra.mxu3 %v677_v7  ;;  %v95_v18 = vld [vmem:[%s924_s4] sm:$0xff]  ;;  %v673_v26 = vld [vmem:[%s923_s1 + $0x50] sm:$0xff]  ;;  %v98_v28 = vld [vmem:[%s924_s4 + $0x18] sm:$0xff] }
   0xa   :  { %237 = vmatpush.bf16.msra.mxu0 %v648_v9  ;;  %101 = vperm.xlu0 %703, %v95_v18   ;;  %v285_v27 = vld [vmem:[%s925_s5] sm:$0xff]  ;;  %v96_v29 = vld [vmem:[%s924_s4 + $0x8] sm:$0xff]  ;;  %v288_v49 = vld [vmem:[%s925_s5 + $0x18] sm:$0xff] }
   0xb   :  { %256 = vmatpush.bf16.msra.mxu1 %v656_v10  ;;  %291 = vperm.xlu2 %705, %v285_v27   ;;  %v644_v30 = vld [vmem:[%s922_s0 + $0x8] sm:$0xff]  ;;  %v643_v34 = vld [vmem:[%s922_s0] sm:$0xff]  ;;  %v287_v50 = vld [vmem:[%s925_s5 + $0x10] sm:$0xff] }
   0xc   :  { %427 = vmatpush.bf16.msra.mxu2 %v668_v11  ;;  %v652_v31 = vld [vmem:[%s922_s0 + $0x48] sm:$0xff]  ;;  %v651_v35 = vld [vmem:[%s922_s0 + $0x40] sm:$0xff]  ;;  %v489_v53 = vld [vmem:[%s926_s2 + $0x10] sm:$0xf] }
   0xd   :  { %446 = vmatpush.bf16.msra.mxu3 %v676_v12  ;;  %v664_v32 = vld [vmem:[%s923_s1 + $0x8] sm:$0xff]  ;;  %v663_v36 = vld [vmem:[%s923_s1] sm:$0xff]  ;;  %v642_v54 = vld [vmem:[%s926_s2 + $0x14] sm:$0xf0] }
   0xe   :  { %238 = vmatpush.bf16.msra.mxu0 %v647_v13  ;;  %v672_v33 = vld [vmem:[%s923_s1 + $0x48] sm:$0xff]  ;;  %116 = vperm.xlu1 %704, %v98_v28   ;;  %v671_v37 = vld [vmem:[%s923_s1 + $0x40] sm:$0xff]  ;;  %v641_v55 = vld [vmem:[%s926_s2 + $0x14] sm:$0xf]  ;;  %v490_v61 = vor.u32 %v642_v54, %v489_v53 }
   0xf   :  { %257 = vmatpush.bf16.msra.mxu1 %v655_v14  ;;  %v481_v38 = vld [vmem:[%s926_s2] sm:$0xf]  ;;  %v640_v39 = vld [vmem:[%s926_s2 + $0x4] sm:$0xf0]  ;;  %v639_v41 = vld [vmem:[%s926_s2 + $0x4] sm:$0xf] }
  0x10   :  { %428 = vmatpush.bf16.msra.mxu2 %v667_v15  ;;  %v286_v40 = vld [vmem:[%s925_s5 + $0x8] sm:$0xff]  ;;  %v561_v43 = vld [vmem:[%s927_s3] sm:$0xf]  ;;  %v659_v45 = vld [vmem:[%s927_s3 + $0x4] sm:$0xf]  ;;  %v482_v47 = vor.u32 %v640_v39, %v481_v38 }
  0x11   :  { %447 = vmatpush.bf16.msra.mxu3 %v675_v16  ;;  %v483_v42 = vld [vmem:[%s926_s2 + $0x8] sm:$0xf0]  ;;  %v660_v44 = vld [vmem:[%s927_s3 + $0x4] sm:$0xf0]  ;;  %v491_v56 = vld [vmem:[%s926_s2 + $0x18] sm:$0xf0] }
  0x12   :  { %239 = vmatpush.bf16.msra.mxu0 %v646_v19  ;;  %106 = vperm.xlu0 %703, %v96_v29   ;;  %v563_v46 = vld [vmem:[%s927_s3 + $0x8] sm:$0xf0]  ;;  %v486_v48 = vor.u32 %v639_v41, %v483_v42  ;;  %v562_v51 = vor.u32 %v660_v44, %v561_v43  ;;  %v569_v57 = vld [vmem:[%s927_s3 + $0x10] sm:$0xf]  ;;  %v662_v58 = vld [vmem:[%s927_s3 + $0x14] sm:$0xf0]  ;;  %v494_v62 = vor.u32 %v641_v55, %v491_v56 }
  0x13   :  { %258 = vmatpush.bf16.msra.mxu1 %v654_v20  ;;  %296 = vperm.xlu2 %705, %v286_v40   ;;  %v566_v52 = vor.u32 %v659_v45, %v563_v46  ;;  %v661_v59 = vld [vmem:[%s927_s3 + $0x14] sm:$0xf]  ;;  %v571_v60 = vld [vmem:[%s927_s3 + $0x18] sm:$0xf0]  ;;  %v570_v63 = vor.u32 %v662_v58, %v569_v57 }
  0x14   :  { %429 = vmatpush.bf16.msra.mxu2 %v666_v21  ;;  %v574_v0 = vor.u32 %v661_v59, %v571_v60 }
  0x15   :  { %448 = vmatpush.bf16.msra.mxu3 %v674_v22 }
  0x16   :  { %240 = vmatpush.bf16.msra.mxu0 %v645_v23  ;;  %306 = vperm.xlu1 %704, %v288_v49  }
  0x17   :  { %259 = vmatpush.bf16.msra.mxu1 %v653_v24 }
  0x18   :  { %430 = vmatpush.bf16.msra.mxu2 %v665_v25 }
  0x19   :  { %449 = vmatpush.bf16.msra.mxu3 %v673_v26 }
  0x1a   :  { %241 = vmatpush.bf16.msra.mxu0 %v644_v30  ;;  %301 = vperm.xlu0 %703, %v287_v50  }
  0x1b   :  { %260 = vmatpush.bf16.msra.mxu1 %v652_v31 }
  0x1c   :  { %431 = vmatpush.bf16.msra.mxu2 %v664_v32 }
  0x1d   :  { %450 = vmatpush.bf16.msra.mxu3 %v672_v33 }
  0x1e   :  { %242 = vmatpush.bf16.msra.mxu0 %v643_v34 }
  0x1f   :  { %261 = vmatpush.bf16.msra.mxu1 %v651_v35 }
  0x20   :  { %432 = vmatpush.bf16.msra.mxu2 %v663_v36 }
  0x21   :  { %451 = vmatpush.bf16.msra.mxu3 %v671_v37  ;;  %243 = vmatmul.bf16.vlgmr.msra.gmra.mxu0 %v482_v47 }
  0x22   :  { %262 = vmatmul.bf16.vlgmr.msra.gmra.mxu1 %v486_v48 }
  0x23   :  { %433 = vmatmul.bf16.vlgmr.msra.gmra.mxu2 %v562_v51 }
  0x24   :  { %452 = vmatmul.bf16.vlgmr.msra.gmra.mxu3 %v566_v52 }
  0x31   :  { %248 = vmatmul.bf16.gmra.mxu0 %v490_v61 }
  0x32   :  { %267 = vmatmul.bf16.gmra.mxu1 %v494_v62 }
  0x33   :  { %438 = vmatmul.bf16.gmra.mxu2 %v570_v63 }
  0x34   :  { %457 = vmatmul.bf16.gmra.mxu3 %v574_v0 }
  0x65   :  { %v292_v4 = vpop.permute.xlu2 %291 }
  0x6d   :  { %v297_v18 = vpop.permute.xlu2 %296 }
  0x78   :  { %v112_v13 = vpop.permute.xlu1 %111 }
  0x7c   :  { %v102_v1 = vpop.permute.xlu0 %101 }
  0x80   :  { %v117_v29 = vpop.permute.xlu1 %116 }
  0x84   :  { %v107_v6 = vpop.permute.xlu0 %106 }
  0x88   :  { %v307_v43 = vpop.permute.xlu1 %306 }
  0x8c   :  { %v302_v38 = vpop.permute.xlu0 %301 }
  0x9e   :  { %v244_v2 = vpop.f32.mrf.mxu0 }
  0x9f   :  { %v263_v3 = vpop.f32.mrf.mxu1  ;;  %v245_v5 = vadd.f32 %v244_v2, %v102_v1 }
  0xa1   :  { %v264_v11 = vadd.f32 %v263_v3, %v245_v5 }
  0xa3   :  { %v273_v16 = vmax.f32 %v264_v11, 0.0 }
  0xa6   :  { %v434_v7 = vpop.f32.mrf.mxu2  ;;  %v246_v9 = vpop.f32.mrf.mxu0 }
  0xa7   :  { %v453_v8 = vpop.f32.mrf.mxu3  ;;  %v265_v10 = vpop.f32.mrf.mxu1  ;;  %v247_v12 = vadd.f32 %v246_v9, %v107_v6  ;;  %v435_v15 = vadd.f32 %v434_v7, %v292_v4 }
  0xa9   :  { %v266_v14 = vadd.f32 %v265_v10, %v247_v12  ;;  %v454_v22 = vadd.f32 %v453_v8, %v435_v15 }
  0xab   :  { %v274_v17 = vmax.f32 %v266_v14, 0.0  ;;  %v463_v27 = vmax.f32 %v454_v22, 0.0 }
  0xad   :  { %v682_v19 = vpack.c.bf16 %v274_v17, %v273_v16 }
  0xae   :  { %v436_v20 = vpop.f32.mrf.mxu2  ;;  %v249_v24 = vpop.f32.mrf.mxu0 }
  0xaf   :  { %v455_v21 = vpop.f32.mrf.mxu3  ;;  %v437_v23 = vadd.f32 %v436_v20, %v297_v18  ;;  %v268_v25 = vpop.f32.mrf.mxu1  ;;  %683 = vst [vmem:[%s928_s6] sm:$0xff] %v682_v19   ;;  %v250_v30 = vadd.f32 %v249_v24, %v112_v13 }
  0xb1   :  { %v456_v26 = vadd.f32 %v455_v21, %v437_v23  ;;  %v269_v35 = vadd.f32 %v268_v25, %v250_v30 }
  0xb3   :  { %v464_v28 = vmax.f32 %v456_v26, 0.0  ;;  %v275_v41 = vmax.f32 %v269_v35, 0.0 }
  0xb5   :  { %v692_v31 = vpack.c.bf16 %v464_v28, %v463_v27 }
  0xb6   :  { %v439_v32 = vpop.f32.mrf.mxu2  ;;  %v251_v34 = vpop.f32.mrf.mxu0 }
  0xb7   :  { %v458_v33 = vpop.f32.mrf.mxu3  ;;  %700 = vst [vmem:[%s928_s6 + $0x10] sm:$0xff] %v692_v31   ;;  %v252_v36 = vadd.f32 %v251_v34, %v117_v29  ;;  %v270_v37 = vpop.f32.mrf.mxu1  ;;  %v440_v40 = vadd.f32 %v439_v32, %v302_v38 }
  0xb9   :  { %v271_v39 = vadd.f32 %v270_v37, %v252_v36  ;;  %v459_v46 = vadd.f32 %v458_v33, %v440_v40 }
  0xbb   :  { %v276_v42 = vmax.f32 %v271_v39, 0.0  ;;  %v465_v50 = vmax.f32 %v459_v46, 0.0 }
  0xbd   :  { %v687_v44 = vpack.c.bf16 %v276_v42, %v275_v41 }
  0xbe   :  { %v441_v45 = vpop.f32.mrf.mxu2 }
  0xbf   :  { %v442_v47 = vadd.f32 %v441_v45, %v307_v43  ;;  %699 = vst [vmem:[%s928_s6 + $0x8] sm:$0xff] %v687_v44   ;;  %v460_v48 = vpop.f32.mrf.mxu3 }
  0xc1   :  { %v461_v49 = vadd.f32 %v460_v48, %v442_v47 }
  0xc3   :  { %v466_v51 = vmax.f32 %v461_v49, 0.0 }
  0xc5   :  { %v697_v52 = vpack.c.bf16 %v466_v51, %v465_v50 }
  0xc7   :  { %701 = vst [vmem:[%s928_s6 + $0x18] sm:$0xff] %v697_v52  }

// kernel: cnn_forward.5
= control target key start
LH: loop header
LB: loop body
LE: loop exit
PB: predicated region body
PF: predicated region fallthrough
CT: control target
= control target key end

     0   :  { %vm1062_vm0 = vcmask 1044480   ;;  %vm1063_vm1 = vcmask 1045504   ;;  %vm1058_vm2 = vcmask 89088   ;;  %s5453_s4 = inlined_call_operand.vmem [shape: bf16[512,256], index: 4, kind: input, shape index: {}]   ;;  %s5454_s1 = inlined_call_operand.vmem [shape: bf16[2,512], index: 1, kind: input, shape index: {}]   ;;  %s5455_s0 = inlined_call_operand.vmem [shape: bf16[2,512], index: 0, kind: input, shape index: {}]   ;;  %s5456_s3 = inlined_call_operand.vmem [shape: bf16[512,256], index: 3, kind: input, shape index: {}]   ;;  %s5457_s5 = inlined_call_operand.vmem [shape: bf16[11,256], index: 5, kind: input, shape index: {}]   ;;  %s5458_s2 = inlined_call_operand.vmem [shape: f32[2,11], index: 2, kind: input, shape index: {}]   ;;  %s5459_s7 = inlined_call_operand.vmem [shape: bf16[256,512], index: 7, kind: input, shape index: {}]   ;;  %s5460_s6 = inlined_call_operand.vmem [shape: f32[1,256], index: 6, kind: input, shape index: {}]   ;;  %s5461_s9 = inlined_call_operand.vmem [shape: bf16[256,32], index: 9, kind: input, shape index: {}]   ;;  %s5462_s11 = inlined_call_operand.vmem [shape: bf16[256,32], index: 11, kind: input, shape index: {}]   ;;  %s5463_s12 = inlined_call_operand.vmem [shape: f32[1,32], index: 12, kind: input, shape index: {}]   ;;  %s5464_s10 = inlined_call_operand.vmem [shape: f32[1,32], index: 10, kind: input, shape index: {}]   ;;  %s5465_s8 = inlined_call_operand.vmem [shape: f32[1,512], index: 8, kind: input, shape index: {}]   ;;  %s5466_s13 = inlined_call_operand.vmem [shape: f32[2,512], index: 13, kind: output, shape index: {0}]   ;;  %s5467_s14 = inlined_call_operand.vmem [shape: f32[2,1024], index: 14, kind: output, shape index: {1}]  }
   0x1   :  { %v2538_v0 = vld [vmem:[%s5453_s4 + $0x70] sm:$0xf]  ;;  %v3545_v1 = vld [vmem:[%s5453_s4 + $0x74] sm:$0xf0]  ;;  %v2530_v11 = vld [vmem:[%s5453_s4 + $0x60] sm:$0xf] }
   0x2   :  { %v2602_v2 = vld [vmem:[%s5453_s4 + $0xf0] sm:$0xf]  ;;  %v2539_v3 = vor.u32 %v3545_v1, %v2538_v0  ;;  %v3561_v4 = vld [vmem:[%s5453_s4 + $0xf4] sm:$0xf0]  ;;  %v3543_v13 = vld [vmem:[%s5453_s4 + $0x64] sm:$0xf0] }
   0x3   :  { %v2666_v5 = vld [vmem:[%s5453_s4 + $0x170] sm:$0xf]  ;;  %v3577_v6 = vld [vmem:[%s5453_s4 + $0x174] sm:$0xf0]  ;;  %v2603_v7 = vor.u32 %v3561_v4, %v2602_v2  ;;  %v2594_v14 = vld [vmem:[%s5453_s4 + $0xe0] sm:$0xf]  ;;  %v2531_v16 = vor.u32 %v3543_v13, %v2530_v11 }
   0x4   :  { %v2667_v8 = vor.u32 %v3577_v6, %v2666_v5  ;;  %v2730_v9 = vld [vmem:[%s5453_s4 + $0x1f0] sm:$0xf]  ;;  %v3593_v10 = vld [vmem:[%s5453_s4 + $0x1f4] sm:$0xf0]  ;;  %507 = vmatpush.bf16.msra.mxu0 %v2539_v3  ;;  %v3559_v15 = vld [vmem:[%s5453_s4 + $0xe4] sm:$0xf0] }
   0x5   :  { %v2731_v12 = vor.u32 %v3593_v10, %v2730_v9  ;;  %520 = vmatpush.bf16.msra.mxu1 %v2603_v7  ;;  %v2595_v17 = vor.u32 %v3559_v15, %v2594_v14  ;;  %v2658_v18 = vld [vmem:[%s5453_s4 + $0x160] sm:$0xf]  ;;  %v3575_v19 = vld [vmem:[%s5453_s4 + $0x164] sm:$0xf0]  ;;  %v2522_v23 = vld [vmem:[%s5453_s4 + $0x50] sm:$0xf] }
   0x6   :  { %533 = vmatpush.bf16.msra.mxu2 %v2667_v8  ;;  %v2722_v20 = vld [vmem:[%s5453_s4 + $0x1e0] sm:$0xf]  ;;  %v2659_v21 = vor.u32 %v3575_v19, %v2658_v18  ;;  %v3591_v22 = vld [vmem:[%s5453_s4 + $0x1e4] sm:$0xf0]  ;;  %v3541_v24 = vld [vmem:[%s5453_s4 + $0x54] sm:$0xf0] }
   0x7   :  { %546 = vmatpush.bf16.msra.mxu3 %v2731_v12  ;;  %v2723_v25 = vor.u32 %v3591_v22, %v2722_v20  ;;  %v2586_v26 = vld [vmem:[%s5453_s4 + $0xd0] sm:$0xf]  ;;  %v3557_v27 = vld [vmem:[%s5453_s4 + $0xd4] sm:$0xf0]  ;;  %v2523_v29 = vor.u32 %v3541_v24, %v2522_v23  ;;  %v2514_v35 = vld [vmem:[%s5453_s4 + $0x40] sm:$0xf] }
   0x8   :  { %v2650_v28 = vld [vmem:[%s5453_s4 + $0x150] sm:$0xf]  ;;  %508 = vmatpush.bf16.msra.mxu0 %v2531_v16  ;;  %v3573_v30 = vld [vmem:[%s5453_s4 + $0x154] sm:$0xf0]  ;;  %v2587_v33 = vor.u32 %v3557_v27, %v2586_v26  ;;  %v3539_v36 = vld [vmem:[%s5453_s4 + $0x44] sm:$0xf0] }
   0x9   :  { %v2714_v31 = vld [vmem:[%s5453_s4 + $0x1d0] sm:$0xf]  ;;  %v3589_v32 = vld [vmem:[%s5453_s4 + $0x1d4] sm:$0xf0]  ;;  %521 = vmatpush.bf16.msra.mxu1 %v2595_v17  ;;  %v2651_v34 = vor.u32 %v3573_v30, %v2650_v28  ;;  %v2578_v37 = vld [vmem:[%s5453_s4 + $0xc0] sm:$0xf]  ;;  %v2515_v44 = vor.u32 %v3539_v36, %v2514_v35 }
   0xa   :  { %534 = vmatpush.bf16.msra.mxu2 %v2659_v21  ;;  %v2715_v38 = vor.u32 %v3589_v32, %v2714_v31  ;;  %v3555_v39 = vld [vmem:[%s5453_s4 + $0xc4] sm:$0xf0]  ;;  %v2642_v40 = vld [vmem:[%s5453_s4 + $0x140] sm:$0xf]  ;;  %v2506_v47 = vld [vmem:[%s5453_s4 + $0x30] sm:$0xf] }
   0xb   :  { %547 = vmatpush.bf16.msra.mxu3 %v2723_v25  ;;  %v3571_v41 = vld [vmem:[%s5453_s4 + $0x144] sm:$0xf0]  ;;  %v2706_v42 = vld [vmem:[%s5453_s4 + $0x1c0] sm:$0xf]  ;;  %v2579_v45 = vor.u32 %v3555_v39, %v2578_v37  ;;  %v3537_v48 = vld [vmem:[%s5453_s4 + $0x34] sm:$0xf0] }
   0xc   :  { %v3587_v43 = vld [vmem:[%s5453_s4 + $0x1c4] sm:$0xf0]  ;;  %509 = vmatpush.bf16.msra.mxu0 %v2523_v29  ;;  %v2643_v46 = vor.u32 %v3571_v41, %v2642_v40  ;;  %v2570_v49 = vld [vmem:[%s5453_s4 + $0xb0] sm:$0xf]  ;;  %v3553_v51 = vld [vmem:[%s5453_s4 + $0xb4] sm:$0xf0]  ;;  %v2507_v56 = vor.u32 %v3537_v48, %v2506_v47 }
   0xd   :  { %522 = vmatpush.bf16.msra.mxu1 %v2587_v33  ;;  %v2707_v50 = vor.u32 %v3587_v43, %v2706_v42  ;;  %v2634_v52 = vld [vmem:[%s5453_s4 + $0x130] sm:$0xf]  ;;  %v3569_v53 = vld [vmem:[%s5453_s4 + $0x134] sm:$0xf0]  ;;  %v2571_v57 = vor.u32 %v3553_v51, %v2570_v49  ;;  %v2498_v59 = vld [vmem:[%s5453_s4 + $0x20] sm:$0xf] }
   0xe   :  { %535 = vmatpush.bf16.msra.mxu2 %v2651_v34  ;;  %v2698_v54 = vld [vmem:[%s5453_s4 + $0x1b0] sm:$0xf]  ;;  %v3585_v55 = vld [vmem:[%s5453_s4 + $0x1b4] sm:$0xf0]  ;;  %v2635_v58 = vor.u32 %v3569_v53, %v2634_v52  ;;  %v3535_v60 = vld [vmem:[%s5453_s4 + $0x24] sm:$0xf0] }
   0xf   :  { %548 = vmatpush.bf16.msra.mxu3 %v2715_v38  ;;  %v2562_v61 = vld [vmem:[%s5453_s4 + $0xa0] sm:$0xf]  ;;  %v2699_v62 = vor.u32 %v3585_v55, %v2698_v54  ;;  %v3551_v63 = vld [vmem:[%s5453_s4 + $0xa4] sm:$0xf0]  ;;  %v2499_v4 = vor.u32 %v3535_v60, %v2498_v59  ;;  %v2490_v7 = vld [vmem:[%s5453_s4 + $0x10] sm:$0xf] }
  0x10   :  { %510 = vmatpush.bf16.msra.mxu0 %v2515_v44  ;;  %v2626_v0 = vld [vmem:[%s5453_s4 + $0x120] sm:$0xf]  ;;  %v3567_v1 = vld [vmem:[%s5453_s4 + $0x124] sm:$0xf0]  ;;  %v2563_v5 = vor.u32 %v3551_v63, %v2562_v61  ;;  %v3533_v8 = vld [vmem:[%s5453_s4 + $0x14] sm:$0xf0] }
  0x11   :  { %523 = vmatpush.bf16.msra.mxu1 %v2579_v45  ;;  %v2690_v2 = vld [vmem:[%s5453_s4 + $0x1a0] sm:$0xf]  ;;  %v3583_v3 = vld [vmem:[%s5453_s4 + $0x1a4] sm:$0xf0]  ;;  %v2627_v6 = vor.u32 %v3567_v1, %v2626_v0  ;;  %v2554_v9 = vld [vmem:[%s5453_s4 + $0x90] sm:$0xf]  ;;  %v2491_v16 = vor.u32 %v3533_v8, %v2490_v7 }
  0x12   :  { %536 = vmatpush.bf16.msra.mxu2 %v2643_v46  ;;  %v2691_v10 = vor.u32 %v3583_v3, %v2690_v2  ;;  %v3549_v11 = vld [vmem:[%s5453_s4 + $0x94] sm:$0xf0]  ;;  %v2618_v12 = vld [vmem:[%s5453_s4 + $0x110] sm:$0xf]  ;;  %v2482_v17 = vld [vmem:[%s5453_s4] sm:$0xf] }
  0x13   :  { %549 = vmatpush.bf16.msra.mxu3 %v2707_v50  ;;  %v3565_v13 = vld [vmem:[%s5453_s4 + $0x114] sm:$0xf0]  ;;  %v2682_v14 = vld [vmem:[%s5453_s4 + $0x190] sm:$0xf]  ;;  %v3531_v18 = vld [vmem:[%s5453_s4 + $0x4] sm:$0xf0]  ;;  %v2555_v19 = vor.u32 %v3549_v11, %v2554_v9 }
  0x14   :  { %511 = vmatpush.bf16.msra.mxu0 %v2507_v56  ;;  %v3581_v15 = vld [vmem:[%s5453_s4 + $0x194] sm:$0xf0]  ;;  %v2619_v20 = vor.u32 %v3565_v13, %v2618_v12  ;;  %v2546_v21 = vld [vmem:[%s5453_s4 + $0x80] sm:$0xf]  ;;  %v3547_v22 = vld [vmem:[%s5453_s4 + $0x84] sm:$0xf0]  ;;  %v2483_v31 = vor.u32 %v3531_v18, %v2482_v17 }
  0x15   :  { %524 = vmatpush.bf16.msra.mxu1 %v2571_v57  ;;  %v2610_v23 = vld [vmem:[%s5453_s4 + $0x100] sm:$0xf]  ;;  %v2683_v24 = vor.u32 %v3581_v15, %v2682_v14  ;;  %v3563_v25 = vld [vmem:[%s5453_s4 + $0x104] sm:$0xf0]  ;;  %v3544_v26 = vld [vmem:[%s5453_s4 + $0x74] sm:$0xf]  ;;  %v2547_v35 = vor.u32 %v3547_v22, %v2546_v21 }
  0x16   :  { %537 = vmatpush.bf16.msra.mxu2 %v2635_v58  ;;  %v2540_v27 = vld [vmem:[%s5453_s4 + $0x78] sm:$0xf0]  ;;  %v3560_v28 = vld [vmem:[%s5453_s4 + $0xf4] sm:$0xf]  ;;  %v2674_v33 = vld [vmem:[%s5453_s4 + $0x180] sm:$0xf]  ;;  %v2611_v36 = vor.u32 %v3563_v25, %v2610_v23 }
  0x17   :  { %550 = vmatpush.bf16.msra.mxu3 %v2699_v62  ;;  %v2604_v29 = vld [vmem:[%s5453_s4 + $0xf8] sm:$0xf0]  ;;  %v3576_v30 = vld [vmem:[%s5453_s4 + $0x174] sm:$0xf]  ;;  %v3579_v34 = vld [vmem:[%s5453_s4 + $0x184] sm:$0xf0]  ;;  %v2543_v39 = vor.u32 %v3544_v26, %v2540_v27 }
  0x18   :  { %512 = vmatpush.bf16.msra.mxu0 %v2499_v4  ;;  %v2668_v32 = vld [vmem:[%s5453_s4 + $0x178] sm:$0xf0]  ;;  %v3592_v37 = vld [vmem:[%s5453_s4 + $0x1f4] sm:$0xf]  ;;  %v2607_v40 = vor.u32 %v3560_v28, %v2604_v29  ;;  %v3542_v41 = vld [vmem:[%s5453_s4 + $0x64] sm:$0xf]  ;;  %v2675_v43 = vor.u32 %v3579_v34, %v2674_v33 }
  0x19   :  { %525 = vmatpush.bf16.msra.mxu1 %v2563_v5  ;;  %v2732_v38 = vld [vmem:[%s5453_s4 + $0x1f8] sm:$0xf0]  ;;  %v2671_v42 = vor.u32 %v3576_v30, %v2668_v32  ;;  %v2532_v44 = vld [vmem:[%s5453_s4 + $0x68] sm:$0xf0]  ;;  %v3558_v45 = vld [vmem:[%s5453_s4 + $0xe4] sm:$0xf] }
  0x1a   :  { %538 = vmatpush.bf16.msra.mxu2 %v2627_v6  ;;  %v2596_v46 = vld [vmem:[%s5453_s4 + $0xe8] sm:$0xf0]  ;;  %v2735_v47 = vor.u32 %v3592_v37, %v2732_v38  ;;  %v3574_v48 = vld [vmem:[%s5453_s4 + $0x164] sm:$0xf]  ;;  %v2535_v52 = vor.u32 %v3542_v41, %v2532_v44  ;;  %v3540_v54 = vld [vmem:[%s5453_s4 + $0x54] sm:$0xf] }
  0x1b   :  { %551 = vmatpush.bf16.msra.mxu3 %v2691_v10  ;;  %v2660_v49 = vld [vmem:[%s5453_s4 + $0x168] sm:$0xf0]  ;;  %v3590_v50 = vld [vmem:[%s5453_s4 + $0x1e4] sm:$0xf]  ;;  %v2599_v53 = vor.u32 %v3558_v45, %v2596_v46  ;;  %v2524_v56 = vld [vmem:[%s5453_s4 + $0x58] sm:$0xf0] }
  0x1c   :  { %513 = vmatpush.bf16.msra.mxu0 %v2491_v16  ;;  %v2724_v51 = vld [vmem:[%s5453_s4 + $0x1e8] sm:$0xf0]  ;;  %v2663_v55 = vor.u32 %v3574_v48, %v2660_v49  ;;  %v3556_v57 = vld [vmem:[%s5453_s4 + $0xd4] sm:$0xf]  ;;  %v2588_v58 = vld [vmem:[%s5453_s4 + $0xd8] sm:$0xf0]  ;;  %v2527_v1 = vor.u32 %v3540_v54, %v2524_v56 }
  0x1d   :  { %526 = vmatpush.bf16.msra.mxu1 %v2555_v19  ;;  %v2727_v59 = vor.u32 %v3590_v50, %v2724_v51  ;;  %v3572_v60 = vld [vmem:[%s5453_s4 + $0x154] sm:$0xf]  ;;  %v2652_v61 = vld [vmem:[%s5453_s4 + $0x158] sm:$0xf0]  ;;  %v112_v0 = vld [vmem:[%s5454_s1] sm:$0xf]  ;;  %v2591_v2 = vor.u32 %v3556_v57, %v2588_v58 }
  0x1e   :  { %539 = vmatpush.bf16.msra.mxu2 %v2619_v20  ;;  %v3588_v62 = vld [vmem:[%s5453_s4 + $0x1d4] sm:$0xf]  ;;  %v2716_v63 = vld [vmem:[%s5453_s4 + $0x1d8] sm:$0xf0]  ;;  %v3538_v3 = vld [vmem:[%s5453_s4 + $0x44] sm:$0xf]  ;;  %v2655_v4 = vor.u32 %v3572_v60, %v2652_v61 }
  0x1f   :  { %552 = vmatpush.bf16.msra.mxu3 %v2683_v24  ;;  %178 = vst [vmem:[#allocation1] ss:$9 sm:$0xff] %v112_v0  ;;  %v2516_v5 = vld [vmem:[%s5453_s4 + $0x48] sm:$0xf0]  ;;  %v3554_v6 = vld [vmem:[%s5453_s4 + $0xc4] sm:$0xf]  ;;  %v2719_v8 = vor.u32 %v3588_v62, %v2716_v63 }
  0x20   :  { %514 = vmatpush.bf16.msra.mxu0 %v2483_v31  ;;  %v2580_v7 = vld [vmem:[%s5453_s4 + $0xc8] sm:$0xf0]  ;;  %v3570_v9 = vld [vmem:[%s5453_s4 + $0x144] sm:$0xf]  ;;  %v2519_v13 = vor.u32 %v3538_v3, %v2516_v5  ;;  %v3536_v15 = vld [vmem:[%s5453_s4 + $0x34] sm:$0xf] }
  0x21   :  { %527 = vmatpush.bf16.msra.mxu1 %v2547_v35  ;;  %v2644_v10 = vld [vmem:[%s5453_s4 + $0x148] sm:$0xf0]  ;;  %v3586_v11 = vld [vmem:[%s5453_s4 + $0x1c4] sm:$0xf]  ;;  %v2583_v14 = vor.u32 %v3554_v6, %v2580_v7  ;;  %v2508_v16 = vld [vmem:[%s5453_s4 + $0x38] sm:$0xf0] }
  0x22   :  { %540 = vmatpush.bf16.msra.mxu2 %v2611_v36  ;;  %v2708_v12 = vld [vmem:[%s5453_s4 + $0x1c8] sm:$0xf0]  ;;  %v3552_v17 = vld [vmem:[%s5453_s4 + $0xb4] sm:$0xf]  ;;  %v2647_v18 = vor.u32 %v3570_v9, %v2644_v10  ;;  %v2572_v19 = vld [vmem:[%s5453_s4 + $0xb8] sm:$0xf0]  ;;  %v2511_v29 = vor.u32 %v3536_v15, %v2508_v16 }
  0x23   :  { %553 = vmatpush.bf16.msra.mxu3 %v2675_v43  ;;  %v3568_v20 = vld [vmem:[%s5453_s4 + $0x134] sm:$0xf]  ;;  %v2636_v21 = vld [vmem:[%s5453_s4 + $0x138] sm:$0xf0]  ;;  %v2711_v22 = vor.u32 %v3586_v11, %v2708_v12  ;;  %v47_v25 = vld [vmem:[%s5455_s0] sm:$0xf]  ;;  %v2575_v30 = vor.u32 %v3552_v17, %v2572_v19 }
  0x24   :  { %559 = vmatpush.bf16.msrb.mxu0 %v2543_v39  ;;  %v3584_v23 = vld [vmem:[%s5453_s4 + $0x1b4] sm:$0xf]  ;;  %v2700_v24 = vld [vmem:[%s5453_s4 + $0x1b8] sm:$0xf0]  ;;  %v3534_v26 = vld [vmem:[%s5453_s4 + $0x24] sm:$0xf]  ;;  %v2639_v34 = vor.u32 %v3568_v20, %v2636_v21 }
  0x25   :  { %572 = vmatpush.bf16.msrb.mxu1 %v2607_v40  ;;  %v2500_v31 = vld [vmem:[%s5453_s4 + $0x28] sm:$0xf0]  ;;  %v3550_v35 = vld [vmem:[%s5453_s4 + $0xa4] sm:$0xf]  ;;  %v2703_v37 = vor.u32 %v3584_v23, %v2700_v24  ;;  %v3532_v44 = vld [vmem:[%s5453_s4 + $0x14] sm:$0xf] }
  0x26   :  { %585 = vmatpush.bf16.msrb.mxu2 %v2671_v42  ;;  %v4126_v27 = vld [vmem:[#allocation1] sm:$0xff]  ;;  %v4128_v28 = vld [vmem:[#allocation1 + $0x9] sm:$0xff]  ;;  %v4133_v32 = vld [vmem:[#allocation1 + $0x12] sm:$0xff]  ;;  %v2503_v42 = vor.u32 %v3534_v26, %v2500_v31 }
  0x27   :  { %598 = vmatpush.bf16.msrb.mxu3 %v2735_v47  ;;  %v4135_v33 = vld [vmem:[#allocation1 + $0x1b] sm:$0xff]  ;;  %v2564_v36 = vld [vmem:[%s5453_s4 + $0xa8] sm:$0xf0]  ;;  %515 = vmatmul.bf16.vlgmr.msra.gmra.mxu0 %v4126_v27  ;;  %v3566_v38 = vld [vmem:[%s5453_s4 + $0x124] sm:$0xf] }
  0x28   :  { %560 = vmatpush.bf16.msrb.mxu0 %v2535_v52  ;;  %612 = vst [vmem:[#allocation1] ss:$9 sm:$0xff] %v47_v25  ;;  %v2628_v39 = vld [vmem:[%s5453_s4 + $0x128] sm:$0xf0]  ;;  %528 = vmatmul.bf16.vlgmr.msra.gmra.mxu1 %v4128_v28  ;;  %v3582_v40 = vld [vmem:[%s5453_s4 + $0x1a4] sm:$0xf]  ;;  %v2567_v43 = vor.u32 %v3550_v35, %v2564_v36 }
  0x29   :  { %573 = vmatpush.bf16.msrb.mxu1 %v2599_v53  ;;  %v2692_v41 = vld [vmem:[%s5453_s4 + $0x1a8] sm:$0xf0]  ;;  %541 = vmatmul.bf16.vlgmr.msra.gmra.mxu2 %v4133_v32  ;;  %v2631_v45 = vor.u32 %v3566_v38, %v2628_v39  ;;  %v2492_v46 = vld [vmem:[%s5453_s4 + $0x18] sm:$0xf0]  ;;  %v3548_v47 = vld [vmem:[%s5453_s4 + $0x94] sm:$0xf] }
  0x2a   :  { %586 = vmatpush.bf16.msrb.mxu2 %v2663_v55  ;;  %554 = vmatmul.bf16.vlgmr.msra.gmra.mxu3 %v4135_v33  ;;  %v2556_v48 = vld [vmem:[%s5453_s4 + $0x98] sm:$0xf0]  ;;  %v2695_v49 = vor.u32 %v3582_v40, %v2692_v41  ;;  %v3564_v50 = vld [vmem:[%s5453_s4 + $0x114] sm:$0xf]  ;;  %v2495_v54 = vor.u32 %v3532_v44, %v2492_v46  ;;  %v3530_v56 = vld [vmem:[%s5453_s4 + $0x4] sm:$0xf] }
  0x2b   :  { %599 = vmatpush.bf16.msrb.mxu3 %v2727_v59  ;;  %v2620_v51 = vld [vmem:[%s5453_s4 + $0x118] sm:$0xf0]  ;;  %v3580_v52 = vld [vmem:[%s5453_s4 + $0x194] sm:$0xf]  ;;  %v2559_v55 = vor.u32 %v3548_v47, %v2556_v48  ;;  %v2484_v57 = vld [vmem:[%s5453_s4 + $0x8] sm:$0xf0] }
  0x2c   :  { %561 = vmatpush.bf16.msrb.mxu0 %v2527_v1  ;;  %v2684_v53 = vld [vmem:[%s5453_s4 + $0x198] sm:$0xf0]  ;;  %v3546_v58 = vld [vmem:[%s5453_s4 + $0x84] sm:$0xf]  ;;  %v2623_v59 = vor.u32 %v3564_v50, %v2620_v51  ;;  %v2548_v60 = vld [vmem:[%s5453_s4 + $0x88] sm:$0xf0]  ;;  %v2487_v6 = vor.u32 %v3530_v56, %v2484_v57 }
  0x2d   :  { %574 = vmatpush.bf16.msrb.mxu1 %v2591_v2  ;;  %v3562_v61 = vld [vmem:[%s5453_s4 + $0x104] sm:$0xf]  ;;  %v2612_v62 = vld [vmem:[%s5453_s4 + $0x108] sm:$0xf0]  ;;  %v2687_v63 = vor.u32 %v3580_v52, %v2684_v53  ;;  %v2794_v0 = vld [vmem:[%s5456_s3 + $0x70] sm:$0xf]  ;;  %v2551_v7 = vor.u32 %v3546_v58, %v2548_v60 }
  0x2e   :  { %587 = vmatpush.bf16.msrb.mxu2 %v2655_v4  ;;  %v3481_v1 = vld [vmem:[%s5456_s3 + $0x74] sm:$0xf0]  ;;  %v2858_v2 = vld [vmem:[%s5456_s3 + $0xf0] sm:$0xf]  ;;  %v2676_v9 = vld [vmem:[%s5453_s4 + $0x188] sm:$0xf0]  ;;  %v2615_v10 = vor.u32 %v3562_v61, %v2612_v62 }
  0x2f   :  { %600 = vmatpush.bf16.msrb.mxu3 %v2719_v8  ;;  %v3497_v3 = vld [vmem:[%s5456_s3 + $0xf4] sm:$0xf0]  ;;  %v2922_v4 = vld [vmem:[%s5456_s3 + $0x170] sm:$0xf]  ;;  %v3578_v8 = vld [vmem:[%s5453_s4 + $0x184] sm:$0xf]  ;;  %v2795_v11 = vor.u32 %v3481_v1, %v2794_v0 }
  0x30   :  { %562 = vmatpush.bf16.msrb.mxu0 %v2519_v13  ;;  %v3513_v5 = vld [vmem:[%s5456_s3 + $0x174] sm:$0xf0]  ;;  %v2986_v12 = vld [vmem:[%s5456_s3 + $0x1f0] sm:$0xf]  ;;  %v2786_v16 = vld [vmem:[%s5456_s3 + $0x60] sm:$0xf]  ;;  %v2679_v19 = vor.u32 %v3578_v8, %v2676_v9 }
  0x31   :  { %575 = vmatpush.bf16.msrb.mxu1 %v2583_v14  ;;  %v3529_v13 = vld [vmem:[%s5456_s3 + $0x1f4] sm:$0xf0]  ;;  %v2859_v14 = vor.u32 %v3497_v3, %v2858_v2  ;;  %v2923_v15 = vor.u32 %v3513_v5, %v2922_v4  ;;  %v3479_v17 = vld [vmem:[%s5456_s3 + $0x64] sm:$0xf0]  ;;  %v2914_v21 = vld [vmem:[%s5456_s3 + $0x160] sm:$0xf] }
  0x32   :  { %588 = vmatpush.bf16.msrb.mxu2 %v2647_v18  ;;  %v2850_v18 = vld [vmem:[%s5456_s3 + $0xe0] sm:$0xf]  ;;  %v3495_v20 = vld [vmem:[%s5456_s3 + $0xe4] sm:$0xf0]  ;;  %v2987_v23 = vor.u32 %v3529_v13, %v2986_v12  ;;  %v2787_v24 = vor.u32 %v3479_v17, %v2786_v16  ;;  %v2778_v31 = vld [vmem:[%s5456_s3 + $0x50] sm:$0xf] }
  0x33   :  { %601 = vmatpush.bf16.msrb.mxu3 %v2711_v22  ;;  %v3511_v22 = vld [vmem:[%s5456_s3 + $0x164] sm:$0xf0]  ;;  %v2978_v25 = vld [vmem:[%s5456_s3 + $0x1e0] sm:$0xf]  ;;  %v2842_v35 = vld [vmem:[%s5456_s3 + $0xd0] sm:$0xf] }
  0x34   :  { %563 = vmatpush.bf16.msrb.mxu0 %v2511_v29  ;;  %v3527_v26 = vld [vmem:[%s5456_s3 + $0x1e4] sm:$0xf0]  ;;  %v2851_v29 = vor.u32 %v3495_v20, %v2850_v18  ;;  %v3493_v36 = vld [vmem:[%s5456_s3 + $0xd4] sm:$0xf0]  ;;  %v2970_v41 = vld [vmem:[%s5456_s3 + $0x1d0] sm:$0xf] }
  0x35   :  { %576 = vmatpush.bf16.msrb.mxu1 %v2575_v30  ;;  %v2915_v30 = vor.u32 %v3511_v22, %v2914_v21  ;;  %v3509_v38 = vld [vmem:[%s5456_s3 + $0x154] sm:$0xf0]  ;;  %v2979_v39 = vor.u32 %v3527_v26, %v2978_v25  ;;  %v3475_v44 = vld [vmem:[%s5456_s3 + $0x44] sm:$0xf0]  ;;  %v2898_v46 = vld [vmem:[%s5456_s3 + $0x140] sm:$0xf] }
  0x36   :  { %589 = vmatpush.bf16.msrb.mxu2 %v2639_v34  ;;  %v3477_v34 = vld [vmem:[%s5456_s3 + $0x54] sm:$0xf0]  ;;  %v3507_v47 = vld [vmem:[%s5456_s3 + $0x144] sm:$0xf0]  ;;  %v2962_v50 = vld [vmem:[%s5456_s3 + $0x1c0] sm:$0xf] }
  0x37   :  { %602 = vmatpush.bf16.msrb.mxu3 %v2703_v37  ;;  %v2906_v37 = vld [vmem:[%s5456_s3 + $0x150] sm:$0xf]  ;;  %v2779_v40 = vor.u32 %v3477_v34, %v2778_v31  ;;  %v3523_v51 = vld [vmem:[%s5456_s3 + $0x1c4] sm:$0xf0]  ;;  %v2899_v53 = vor.u32 %v3507_v47, %v2898_v46  ;;  %v3489_v56 = vld [vmem:[%s5456_s3 + $0xb4] sm:$0xf0] }
  0x38   :  { %564 = vmatpush.bf16.msrb.mxu0 %v2503_v42  ;;  %v3525_v42 = vld [vmem:[%s5456_s3 + $0x1d4] sm:$0xf0]  ;;  %v2890_v57 = vld [vmem:[%s5456_s3 + $0x130] sm:$0xf]  ;;  %v2754_v1 = vld [vmem:[%s5456_s3 + $0x20] sm:$0xf] }
  0x39   :  { %577 = vmatpush.bf16.msrb.mxu1 %v2567_v43  ;;  %v2843_v43 = vor.u32 %v3493_v36, %v2842_v35  ;;  %v2971_v48 = vor.u32 %v3525_v42, %v2970_v41  ;;  %v3505_v58 = vld [vmem:[%s5456_s3 + $0x134] sm:$0xf0]  ;;  %v2954_v61 = vld [vmem:[%s5456_s3 + $0x1b0] sm:$0xf]  ;;  %v3471_v2 = vld [vmem:[%s5456_s3 + $0x24] sm:$0xf0] }
  0x3a   :  { %590 = vmatpush.bf16.msrb.mxu2 %v2631_v45  ;;  %v2834_v45 = vld [vmem:[%s5456_s3 + $0xc0] sm:$0xf]  ;;  %v3521_v62 = vld [vmem:[%s5456_s3 + $0x1b4] sm:$0xf0]  ;;  %v2891_v0 = vor.u32 %v3505_v58, %v2890_v57  ;;  %v3487_v4 = vld [vmem:[%s5456_s3 + $0xa4] sm:$0xf0]  ;;  %v2755_v8 = vor.u32 %v3471_v2, %v2754_v1 }
  0x3b   :  { %603 = vmatpush.bf16.msrb.mxu3 %v2695_v49  ;;  %v2818_v3 = vld [vmem:[%s5456_s3 + $0xa0] sm:$0xf]  ;;  %v2746_v13 = vld [vmem:[%s5456_s3 + $0x10] sm:$0xf]  ;;  %v3485_v16 = vld [vmem:[%s5456_s3 + $0x94] sm:$0xf0] }
  0x3c   :  { %565 = vmatpush.bf16.msrb.mxu0 %v2495_v54  ;;  %v3473_v54 = vld [vmem:[%s5456_s3 + $0x34] sm:$0xf0]  ;;  %v2882_v5 = vld [vmem:[%s5456_s3 + $0x120] sm:$0xf]  ;;  %v2874_v17 = vld [vmem:[%s5456_s3 + $0x110] sm:$0xf] }
  0x3d   :  { %578 = vmatpush.bf16.msrb.mxu1 %v2559_v55  ;;  %v2826_v55 = vld [vmem:[%s5456_s3 + $0xb0] sm:$0xf]  ;;  %v2946_v9 = vld [vmem:[%s5456_s3 + $0x1a0] sm:$0xf]  ;;  %v3501_v18 = vld [vmem:[%s5456_s3 + $0x114] sm:$0xf0] }
  0x3e   :  { %591 = vmatpush.bf16.msrb.mxu2 %v2623_v59  ;;  %v2963_v59 = vor.u32 %v3523_v51, %v2962_v50  ;;  %v2938_v20 = vld [vmem:[%s5456_s3 + $0x190] sm:$0xf]  ;;  %v3517_v22 = vld [vmem:[%s5456_s3 + $0x194] sm:$0xf0]  ;;  %v2875_v26 = vor.u32 %v3501_v18, %v2874_v17  ;;  %v2866_v31 = vld [vmem:[%s5456_s3 + $0x100] sm:$0xf] }
  0x3f   :  { %604 = vmatpush.bf16.msrb.mxu3 %v2687_v63  ;;  %v2827_v63 = vor.u32 %v3489_v56, %v2826_v55  ;;  %v3499_v34 = vld [vmem:[%s5456_s3 + $0x104] sm:$0xf0]  ;;  %v3480_v35 = vld [vmem:[%s5456_s3 + $0x74] sm:$0xf]  ;;  %v2796_v36 = vld [vmem:[%s5456_s3 + $0x78] sm:$0xf0] }
  0x40   :  { %566 = vmatpush.bf16.msrb.mxu0 %v2487_v6  ;;  %v3503_v6 = vld [vmem:[%s5456_s3 + $0x124] sm:$0xf0]  ;;  %v2924_v42 = vld [vmem:[%s5456_s3 + $0x178] sm:$0xf0]  ;;  %v3528_v46 = vld [vmem:[%s5456_s3 + $0x1f4] sm:$0xf] }
  0x41   :  { %579 = vmatpush.bf16.msrb.mxu1 %v2551_v7  ;;  %v2955_v7 = vor.u32 %v3521_v62, %v2954_v61  ;;  %v2883_v12 = vor.u32 %v3503_v6, %v2882_v5  ;;  %v2988_v47 = vld [vmem:[%s5456_s3 + $0x1f8] sm:$0xf0]  ;;  %v3478_v50 = vld [vmem:[%s5456_s3 + $0x64] sm:$0xf]  ;;  %v2788_v51 = vld [vmem:[%s5456_s3 + $0x68] sm:$0xf0] }
  0x42   :  { %592 = vmatpush.bf16.msrb.mxu2 %v2615_v10  ;;  %v3519_v10 = vld [vmem:[%s5456_s3 + $0x1a4] sm:$0xf0]  ;;  %v4445_v55 = vld [vmem:[#allocation1] sm:$0xff]  ;;  %v4447_v56 = vld [vmem:[#allocation1 + $0x12] sm:$0xff]  ;;  %v2991_v57 = vor.u32 %v3528_v46, %v2988_v47 }
  0x43   :  { %605 = vmatpush.bf16.msrb.mxu3 %v2679_v19  ;;  %567 = vmatmul.bf16.vlgmr.msrb.gmra.mxu0 %v4126_v27  ;;  %v2907_v27 = vor.u32 %v3509_v38, %v2906_v37  ;;  %v2947_v19 = vor.u32 %v3519_v10, %v2946_v9  ;;  %v2939_v37 = vor.u32 %v3517_v22, %v2938_v20  ;;  %v3496_v38 = vld [vmem:[%s5456_s3 + $0xf4] sm:$0xf]  ;;  %v4449_v58 = vld [vmem:[#allocation1 + $0x9] sm:$0xff]  ;;  %v3526_v61 = vld [vmem:[%s5456_s3 + $0x1e4] sm:$0xf] }
  0x44   :  { %941 = vmatpush.bf16.msra.mxu0 %v2795_v11  ;;  %580 = vmatmul.bf16.vlgmr.msrb.gmra.mxu1 %v4128_v28  ;;  %v3491_v28 = vld [vmem:[%s5456_s3 + $0xc4] sm:$0xf0]  ;;  %v2819_v11 = vor.u32 %v3487_v4, %v2818_v3  ;;  %v2980_v62 = vld [vmem:[%s5456_s3 + $0x1e8] sm:$0xf0]  ;;  %v3476_v1 = vld [vmem:[%s5456_s3 + $0x54] sm:$0xf] }
  0x45   :  { %954 = vmatpush.bf16.msra.mxu1 %v2859_v14  ;;  %593 = vmatmul.bf16.vlgmr.msrb.gmra.mxu2 %v4133_v32  ;;  %v2770_v32 = vld [vmem:[%s5456_s3 + $0x40] sm:$0xf]  ;;  %v2835_v52 = vor.u32 %v3491_v28, %v2834_v45  ;;  %v3469_v14 = vld [vmem:[%s5456_s3 + $0x14] sm:$0xf0]  ;;  %v2799_v45 = vor.u32 %v3480_v35, %v2796_v36  ;;  %v2780_v2 = vld [vmem:[%s5456_s3 + $0x58] sm:$0xf0] }
  0x46   :  { %967 = vmatpush.bf16.msra.mxu2 %v2923_v15  ;;  %606 = vmatmul.bf16.vlgmr.msrb.gmra.mxu3 %v4135_v33  ;;  %v2771_v49 = vor.u32 %v3475_v44, %v2770_v32  ;;  %v2762_v33 = vld [vmem:[%s5456_s3 + $0x30] sm:$0xf]  ;;  %v2747_v21 = vor.u32 %v3469_v14, %v2746_v13  ;;  %v2867_v44 = vor.u32 %v3499_v34, %v2866_v31  ;;  %v3492_v3 = vld [vmem:[%s5456_s3 + $0xd4] sm:$0xf]  ;;  %v2844_v4 = vld [vmem:[%s5456_s3 + $0xd8] sm:$0xf0] }
  0x47   :  { %980 = vmatpush.bf16.msra.mxu3 %v2987_v23  ;;  %v2763_v60 = vor.u32 %v3473_v54, %v2762_v33  ;;  %v2810_v15 = vld [vmem:[%s5456_s3 + $0x90] sm:$0xf]  ;;  %v2738_v23 = vld [vmem:[%s5456_s3] sm:$0xf]  ;;  %v3510_v33 = vld [vmem:[%s5456_s3 + $0x164] sm:$0xf] }
  0x48   :  { %942 = vmatpush.bf16.msra.mxu0 %v2787_v24  ;;  %v3467_v24 = vld [vmem:[%s5456_s3 + $0x4] sm:$0xf0]  ;;  %v2811_v25 = vor.u32 %v3485_v16, %v2810_v15  ;;  %v2916_v54 = vld [vmem:[%s5456_s3 + $0x168] sm:$0xf0]  ;;  %v3508_v5 = vld [vmem:[%s5456_s3 + $0x154] sm:$0xf] }
  0x49   :  { %955 = vmatpush.bf16.msra.mxu1 %v2851_v29  ;;  %v2802_v29 = vld [vmem:[%s5456_s3 + $0x80] sm:$0xf]  ;;  %v2739_v41 = vor.u32 %v3467_v24, %v2738_v23  ;;  %v2908_v6 = vld [vmem:[%s5456_s3 + $0x158] sm:$0xf0]  ;;  %v3524_v9 = vld [vmem:[%s5456_s3 + $0x1d4] sm:$0xf] }
  0x4a   :  { %968 = vmatpush.bf16.msra.mxu2 %v2915_v30  ;;  %v3483_v30 = vld [vmem:[%s5456_s3 + $0x84] sm:$0xf0]  ;;  %v2972_v10 = vld [vmem:[%s5456_s3 + $0x1d8] sm:$0xf0]  ;;  %v3474_v13 = vld [vmem:[%s5456_s3 + $0x44] sm:$0xf] }
  0x4b   :  { %981 = vmatpush.bf16.msra.mxu3 %v2979_v39  ;;  %v2860_v39 = vld [vmem:[%s5456_s3 + $0xf8] sm:$0xf0]  ;;  %v2803_v32 = vor.u32 %v3483_v30, %v2802_v29  ;;  %v2772_v14 = vld [vmem:[%s5456_s3 + $0x48] sm:$0xf0]  ;;  %v3490_v15 = vld [vmem:[%s5456_s3 + $0xc4] sm:$0xf] }
  0x4c   :  { %943 = vmatpush.bf16.msra.mxu0 %v2779_v40  ;;  %v3512_v40 = vld [vmem:[%s5456_s3 + $0x174] sm:$0xf]  ;;  %v2863_v28 = vor.u32 %v3496_v38, %v2860_v39  ;;  %v2836_v16 = vld [vmem:[%s5456_s3 + $0xc8] sm:$0xf0]  ;;  %v3506_v17 = vld [vmem:[%s5456_s3 + $0x144] sm:$0xf]  ;;  %v2775_v20 = vor.u32 %v3474_v13, %v2772_v14 }
  0x4d   :  { %956 = vmatpush.bf16.msra.mxu1 %v2843_v43  ;;  %v2930_v43 = vld [vmem:[%s5456_s3 + $0x180] sm:$0xf]  ;;  %v2900_v18 = vld [vmem:[%s5456_s3 + $0x148] sm:$0xf0]  ;;  %v2839_v23 = vor.u32 %v3490_v15, %v2836_v16  ;;  %v3488_v29 = vld [vmem:[%s5456_s3 + $0xb4] sm:$0xf] }
  0x4e   :  { %969 = vmatpush.bf16.msra.mxu2 %v2907_v27  ;;  %v3515_v27 = vld [vmem:[%s5456_s3 + $0x184] sm:$0xf0]  ;;  %v2964_v22 = vld [vmem:[%s5456_s3 + $0x1c8] sm:$0xf0]  ;;  %v2903_v24 = vor.u32 %v3506_v17, %v2900_v18  ;;  %v2828_v30 = vld [vmem:[%s5456_s3 + $0xb8] sm:$0xf0] }
  0x4f   :  { %982 = vmatpush.bf16.msra.mxu3 %v2971_v48  ;;  %v2927_v48 = vor.u32 %v3512_v40, %v2924_v42  ;;  %v3504_v31 = vld [vmem:[%s5456_s3 + $0x134] sm:$0xf]  ;;  %v2892_v34 = vld [vmem:[%s5456_s3 + $0x138] sm:$0xf0]  ;;  %v2831_v39 = vor.u32 %v3488_v29, %v2828_v30  ;;  %v2756_v42 = vld [vmem:[%s5456_s3 + $0x28] sm:$0xf0] }
  0x50   :  { %944 = vmatpush.bf16.msra.mxu0 %v2771_v49  ;;  %v2931_v49 = vor.u32 %v3515_v27, %v2930_v43  ;;  %v2956_v38 = vld [vmem:[%s5456_s3 + $0x1b8] sm:$0xf0]  ;;  %v2895_v40 = vor.u32 %v3504_v31, %v2892_v34  ;;  %v3486_v43 = vld [vmem:[%s5456_s3 + $0xa4] sm:$0xf]  ;;  %v2820_v27 = vld [vmem:[%s5456_s3 + $0xa8] sm:$0xf0] }
  0x51   :  { %957 = vmatpush.bf16.msra.mxu1 %v2835_v52  ;;  %v3494_v52 = vld [vmem:[%s5456_s3 + $0xe4] sm:$0xf]  ;;  %v2948_v47 = vld [vmem:[%s5456_s3 + $0x1a8] sm:$0xf0]  ;;  %v3626_v30 = vld [vmem:[%s5459_s7 + $0xec] sm:$0xf0] }
  0x52   :  { %970 = vmatpush.bf16.msra.mxu2 %v2899_v53  ;;  %v2852_v53 = vld [vmem:[%s5456_s3 + $0xe8] sm:$0xf0]  ;;  %v3514_v18 = vld [vmem:[%s5456_s3 + $0x184] sm:$0xf]  ;;  %v3118_v34 = vld [vmem:[%s5459_s7 + $0xf0] sm:$0xf0] }
  0x53   :  { %983 = vmatpush.bf16.msra.mxu3 %v2963_v59  ;;  %v4451_v59 = vld [vmem:[#allocation1 + $0x1b] sm:$0xff]  ;;  %v3624_v31 = vld [vmem:[%s5459_s7 + $0xe4] sm:$0xf] }
  0x54   :  { %945 = vmatpush.bf16.msra.mxu0 %v2763_v60  ;;  %v2791_v60 = vor.u32 %v3478_v50, %v2788_v51  ;;  %v2823_v50 = vor.u32 %v3486_v43, %v2820_v27 }
  0x55   :  { %958 = vmatpush.bf16.msra.mxu1 %v2827_v63  ;;  %v2855_v63 = vor.u32 %v3494_v52, %v2852_v53  ;;  %v3484_v52 = vld [vmem:[%s5456_s3 + $0x94] sm:$0xf]  ;;  %v2812_v53 = vld [vmem:[%s5456_s3 + $0x98] sm:$0xf0] }
  0x56   :  { %971 = vmatpush.bf16.msra.mxu2 %v2891_v0  ;;  %v2919_v0 = vor.u32 %v3510_v33, %v2916_v54  ;;  %v3500_v33 = vld [vmem:[%s5456_s3 + $0x114] sm:$0xf]  ;;  %v2876_v54 = vld [vmem:[%s5456_s3 + $0x118] sm:$0xf0] }
  0x57   :  { %984 = vmatpush.bf16.msra.mxu3 %v2955_v7  ;;  %v2983_v7 = vor.u32 %v3526_v61, %v2980_v62  ;;  %v3595_v61 = vld [vmem:[%s5457_s5 + $0x4] sm:$0x30]  ;;  %v3594_v62 = vld [vmem:[%s5457_s5 + $0x4] sm:$0xf] }
  0x58   :  { %946 = vmatpush.bf16.msra.mxu0 %v2755_v8  ;;  %v2783_v8 = vor.u32 %v3476_v1, %v2780_v2  ;;  %v3516_v1 = vld [vmem:[%s5456_s3 + $0x194] sm:$0xf]  ;;  %v2940_v2 = vld [vmem:[%s5456_s3 + $0x198] sm:$0xf0] }
  0x59   :  { %959 = vmatpush.bf16.msra.mxu1 %v2819_v11  ;;  %v2847_v11 = vor.u32 %v3492_v3, %v2844_v4  ;;  %v3728_v3 = vmov 65535   ;;  %v2943_v15 = vor.u32 %v3516_v1, %v2940_v2  ;;  %v3618_v1 = vld [vmem:[%s5459_s7 + $0xac] sm:$0xf0]  ;;  %v3212_v2 = vld [vmem:[%s5459_s7 + $0x1a0] sm:$0xf] }
  0x5a   :  { %972 = vmatpush.bf16.msra.mxu2 %v2883_v12  ;;  %v2911_v12 = vor.u32 %v3508_v5, %v2908_v6  ;;  %v1064_v4 = vsel %vm1062_vm0, 4294967295, %v3728_v3  ;;  %v2815_v5 = vor.u32 %v3484_v52, %v2812_v53  ;;  %v2879_v6 = vor.u32 %v3500_v33, %v2876_v54  ;;  %v3620_v52 = vld [vmem:[%s5459_s7 + $0xc4] sm:$0xf]  ;;  %v3102_v53 = vld [vmem:[%s5459_s7 + $0xd0] sm:$0xf0] }
  0x5b   :  { %985 = vmatpush.bf16.msra.mxu3 %v2947_v19  ;;  %v2975_v19 = vor.u32 %v3524_v9, %v2972_v10  ;;  %v3482_v9 = vld [vmem:[%s5456_s3 + $0x84] sm:$0xf]  ;;  %v2804_v10 = vld [vmem:[%s5456_s3 + $0x88] sm:$0xf0]  ;;  %v1065_v16 = vsel %vm1063_vm1, %v1064_v4, 0 }
  0x5c   :  { %947 = vmatpush.bf16.msra.mxu0 %v2747_v21  ;;  %v3522_v21 = vld [vmem:[%s5456_s3 + $0x1c4] sm:$0xf] }
  0x5d   :  { %960 = vmatpush.bf16.msra.mxu1 %v2811_v25  ;;  %v3472_v25 = vld [vmem:[%s5456_s3 + $0x34] sm:$0xf]  ;;  %v2967_v35 = vor.u32 %v3522_v21, %v2964_v22 }
  0x5e   :  { %973 = vmatpush.bf16.msra.mxu2 %v2875_v26  ;;  %v2764_v26 = vld [vmem:[%s5456_s3 + $0x38] sm:$0xf0] }
  0x5f   :  { %986 = vmatpush.bf16.msra.mxu3 %v2939_v37  ;;  %v2767_v36 = vor.u32 %v3472_v25, %v2764_v26  ;;  %v3520_v37 = vld [vmem:[%s5456_s3 + $0x1b4] sm:$0xf]  ;;  %v1045_v25 = vld [vmem:[%s5458_s2] sm:$0x3] }
  0x60   :  { %948 = vmatpush.bf16.msra.mxu0 %v2739_v41  ;;  %v3470_v41 = vld [vmem:[%s5456_s3 + $0x24] sm:$0xf]  ;;  %3696 = vtanh.f32 %v1045_v25  ;;  %v3052_v25 = vld [vmem:[%s5459_s7 + $0x60] sm:$0xf] }
  0x61   :  { %961 = vmatpush.bf16.msra.mxu1 %v2803_v32  ;;  %v3502_v32 = vld [vmem:[%s5456_s3 + $0x124] sm:$0xf]  ;;  %v2759_v46 = vor.u32 %v3470_v41, %v2756_v42 }
  0x62   :  { %974 = vmatpush.bf16.msra.mxu2 %v2867_v44  ;;  %v2884_v44 = vld [vmem:[%s5456_s3 + $0x128] sm:$0xf0] }
  0x63   :  { %987 = vmatpush.bf16.msra.mxu3 %v2931_v49  ;;  %949 = vmatmul.bf16.vlgmr.msra.gmra.mxu0 %v4445_v55  ;;  %v2748_v49 = vld [vmem:[%s5456_s3 + $0x18] sm:$0xf0]  ;;  %v2887_v51 = vor.u32 %v3502_v32, %v2884_v44 }
  0x64   :  { %993 = vmatpush.bf16.msrb.mxu0 %v2799_v45  ;;  %962 = vmatmul.bf16.vlgmr.msra.gmra.mxu1 %v4449_v58  ;;  %v2959_v45 = vor.u32 %v3520_v37, %v2956_v38  ;;  %v3656_v37 = vld [vmem:[%s5459_s7 + $0x1e4] sm:$0xf]  ;;  %v3246_v38 = vld [vmem:[%s5459_s7 + $0x1f0] sm:$0xf0] }
  0x65   :  { %1006 = vmatpush.bf16.msrb.mxu1 %v2863_v28  ;;  %975 = vmatmul.bf16.vlgmr.msra.gmra.mxu2 %v4447_v56  ;;  %v3518_v28 = vld [vmem:[%s5456_s3 + $0x1a4] sm:$0xf] }
  0x66   :  { %1019 = vmatpush.bf16.msrb.mxu2 %v2927_v48  ;;  %988 = vmatmul.bf16.vlgmr.msra.gmra.mxu3 %v4451_v59  ;;  %v3468_v48 = vld [vmem:[%s5456_s3 + $0x14] sm:$0xf]  ;;  %v3697_v26 = vpop.eup %3696 }
  0x67   :  { %1032 = vmatpush.bf16.msrb.mxu3 %v2991_v57  ;;  %v2994_v57 = vld [vmem:[%s5457_s5] sm:$0xf]  ;;  %v1047_v29 = vpack.c.bf16 %v3697_v26, %v3697_v26 }
  0x68   :  { %994 = vmatpush.bf16.msrb.mxu0 %v2791_v60  ;;  %v2951_v60 = vor.u32 %v3518_v28, %v2948_v47  ;;  %v2995_v13 = vor.u32 %v3595_v61, %v2994_v57  ;;  %v3622_v47 = vld [vmem:[%s5459_s7 + $0xcc] sm:$0xf0]  ;;  %v3105_v57 = vor.u32 %v3620_v52, %v3102_v53  ;;  %v3230_v61 = vld [vmem:[%s5459_s7 + $0x1d0] sm:$0xf0]  ;;  %v3148_v52 = vld [vmem:[%s5459_s7 + $0x120] sm:$0xf] }
  0x69   :  { %1007 = vmatpush.bf16.msrb.mxu1 %v2855_v63  ;;  %v2996_v63 = vld [vmem:[%s5457_s5 + $0x8] sm:$0x30] }
  0x6a   :  { %1020 = vmatpush.bf16.msrb.mxu2 %v2919_v0  ;;  %v2751_v0 = vor.u32 %v3468_v48, %v2748_v49  ;;  %v2999_v14 = vor.u32 %v3594_v62, %v2996_v63  ;;  %v1067_v22 = vand.u32 %v2995_v13, %v1065_v16  ;;  %v3228_v48 = vld [vmem:[%s5459_s7 + $0x1c0] sm:$0xf] }
  0x6b   :  { %1033 = vmatpush.bf16.msrb.mxu3 %v2983_v7  ;;  %v3466_v7 = vld [vmem:[%s5456_s3 + $0x4] sm:$0xf]  ;;  %v3068_v13 = vld [vmem:[%s5459_s7 + $0x80] sm:$0xf] }
  0x6c   :  { %995 = vmatpush.bf16.msrb.mxu0 %v2783_v8  ;;  %v2740_v8 = vld [vmem:[%s5456_s3 + $0x8] sm:$0xf0] }
  0x6d   :  { %1008 = vmatpush.bf16.msrb.mxu1 %v2847_v11  ;;  %v3498_v11 = vld [vmem:[%s5456_s3 + $0x104] sm:$0xf]  ;;  %v2743_v17 = vor.u32 %v3466_v7, %v2740_v8  ;;  %v3086_v7 = vld [vmem:[%s5459_s7 + $0xb0] sm:$0xf0] }
  0x6e   :  { %1021 = vmatpush.bf16.msrb.mxu2 %v2911_v12  ;;  %v2868_v12 = vld [vmem:[%s5456_s3 + $0x108] sm:$0xf0] }
  0x6f   :  { %1034 = vmatpush.bf16.msrb.mxu3 %v2975_v19  ;;  %v2932_v19 = vld [vmem:[%s5456_s3 + $0x188] sm:$0xf0]  ;;  %v2871_v21 = vor.u32 %v3498_v11, %v2868_v12  ;;  %v3214_v11 = vld [vmem:[%s5459_s7 + $0x1b0] sm:$0xf0] }
  0x70   :  { %996 = vmatpush.bf16.msrb.mxu0 %v2775_v20  ;;  %v2807_v20 = vor.u32 %v3482_v9, %v2804_v10  ;;  %v3648_v10 = vld [vmem:[%s5459_s7 + $0x1a4] sm:$0xf] }
  0x71   :  { %1009 = vmatpush.bf16.msrb.mxu1 %v2839_v23  ;;  %v1070_v23 = vand.u32 %v2999_v14, %v1065_v16  ;;  %v3217_v12 = vor.u32 %v3648_v10, %v3214_v11  ;;  %v3614_v14 = vld [vmem:[%s5459_s7 + $0x8c] sm:$0xf0]  ;;  %v3006_v11 = vld [vmem:[%s5459_s7 + $0x10] sm:$0xf0] }
  0x72   :  { %1022 = vmatpush.bf16.msrb.mxu2 %v2903_v24  ;;  %v2935_v24 = vor.u32 %v3514_v18, %v2932_v19  ;;  %v3069_v16 = vor.u32 %v3614_v14, %v3068_v13  ;;  %v3612_v18 = vld [vmem:[%s5459_s7 + $0x84] sm:$0xf]  ;;  %v3070_v19 = vld [vmem:[%s5459_s7 + $0x90] sm:$0xf0]  ;;  %v3124_v14 = vld [vmem:[%s5459_s7 + $0xe8] sm:$0xf] }
  0x73   :  { %1035 = vmatpush.bf16.msrb.mxu3 %v2967_v35  ;;  %v3134_v13 = vld [vmem:[%s5459_s7 + $0x110] sm:$0xf0] }
  0x74   :  { %997 = vmatpush.bf16.msrb.mxu0 %v2767_v36  ;;  %v3121_v36 = vor.u32 %v3624_v31, %v3118_v34  ;;  %v3608_v31 = vld [vmem:[%s5459_s7 + $0x64] sm:$0xf]  ;;  %v3054_v34 = vld [vmem:[%s5459_s7 + $0x70] sm:$0xf0] }
  0x75   :  { %1010 = vmatpush.bf16.msrb.mxu1 %v2831_v39 }
  0x76   :  { %1023 = vmatpush.bf16.msrb.mxu2 %v2895_v40  ;;  %v3249_v40 = vor.u32 %v3656_v37, %v3246_v38  ;;  %v3057_v38 = vor.u32 %v3608_v31, %v3054_v34  ;;  %v3236_v31 = vld [vmem:[%s5459_s7 + $0x1c8] sm:$0xf] }
  0x77   :  { %1036 = vmatpush.bf16.msrb.mxu3 %v2959_v45 }
  0x78   :  { %998 = vmatpush.bf16.msrb.mxu0 %v2759_v46  ;;  %v3100_v46 = vld [vmem:[%s5459_s7 + $0xc0] sm:$0xf] }
  0x79   :  { %1011 = vmatpush.bf16.msrb.mxu1 %v2823_v50  ;;  %v3101_v50 = vor.u32 %v3622_v47, %v3100_v46  ;;  %v3636_v46 = vld [vmem:[%s5459_s7 + $0x144] sm:$0xf]  ;;  %v3166_v47 = vld [vmem:[%s5459_s7 + $0x150] sm:$0xf0] }
  0x7a   :  { %1024 = vmatpush.bf16.msrb.mxu2 %v2887_v51  ;;  %v3654_v51 = vld [vmem:[%s5459_s7 + $0x1cc] sm:$0xf0]  ;;  %v3169_v53 = vor.u32 %v3636_v46, %v3166_v47 }
  0x7b   :  { %1037 = vmatpush.bf16.msrb.mxu3 %v2951_v60  ;;  %v3229_v54 = vor.u32 %v3654_v51, %v3228_v48  ;;  %v3652_v60 = vld [vmem:[%s5459_s7 + $0x1c4] sm:$0xf]  ;;  %v3602_v51 = vld [vmem:[%s5459_s7 + $0x2c] sm:$0xf0] }
  0x7c   :  { %999 = vmatpush.bf16.msrb.mxu0 %v2751_v0  ;;  %v3233_v63 = vor.u32 %v3652_v60, %v3230_v61  ;;  %v3084_v0 = vld [vmem:[%s5459_s7 + $0xa0] sm:$0xf]  ;;  %v3632_v61 = vld [vmem:[%s5459_s7 + $0x124] sm:$0xf] }
  0x7d   :  { %1012 = vmatpush.bf16.msrb.mxu1 %v2815_v5  ;;  %v3085_v4 = vor.u32 %v3618_v1, %v3084_v0  ;;  %v3650_v5 = vld [vmem:[%s5459_s7 + $0x1ac] sm:$0xf0]  ;;  %v3004_v1 = vld [vmem:[%s5459_s7] sm:$0xf] }
  0x7e   :  { %1025 = vmatpush.bf16.msrb.mxu2 %v2879_v6  ;;  %v3616_v6 = vld [vmem:[%s5459_s7 + $0xa4] sm:$0xf]  ;;  %v3213_v8 = vor.u32 %v3650_v5, %v3212_v2  ;;  %v3598_v2 = vld [vmem:[%s5459_s7 + $0xc] sm:$0xf0] }
  0x7f   :  { %1038 = vmatpush.bf16.msrb.mxu3 %v2943_v15  ;;  %v3089_v9 = vor.u32 %v3616_v6, %v3086_v7  ;;  %v3196_v15 = vld [vmem:[%s5459_s7 + $0x180] sm:$0xf]  ;;  %v3630_v7 = vld [vmem:[%s5459_s7 + $0x10c] sm:$0xf0] }
  0x80   :  { %1000 = vmatpush.bf16.msrb.mxu0 %v2743_v17  ;;  %v3646_v17 = vld [vmem:[%s5459_s7 + $0x18c] sm:$0xf0]  ;;  %v3132_v6 = vld [vmem:[%s5459_s7 + $0x100] sm:$0xf] }
  0x81   :  { %1013 = vmatpush.bf16.msrb.mxu1 %v2807_v20 }
  0x82   :  { %1026 = vmatpush.bf16.msrb.mxu2 %v2871_v21  ;;  %v3197_v21 = vor.u32 %v3646_v17, %v3196_v15  ;;  %v3627_v15 = vld [vmem:[%s5459_s7 + $0xf4] sm:$0xf0]  ;;  %v3005_v17 = vor.u32 %v3598_v2, %v3004_v1  ;;  %v3613_v1 = vld [vmem:[%s5459_s7 + $0x8c] sm:$0xf]  ;;  %v3078_v2 = vld [vmem:[%s5459_s7 + $0x98] sm:$0xf0] }
  0x83   :  { %1039 = vmatpush.bf16.msrb.mxu3 %v2935_v24  ;;  %1001 = vmatmul.bf16.vlgmr.msrb.gmra.mxu0 %v4445_v55  ;;  %v3116_v55 = vld [vmem:[%s5459_s7 + $0xe0] sm:$0xf]  ;;  %v3198_v24 = vld [vmem:[%s5459_s7 + $0x190] sm:$0xf0] }
  0x84   :  { %1079 = vmatpush.bf16.msra.mxu0 %v1067_v22  ;;  %1014 = vmatmul.bf16.vlgmr.msrb.gmra.mxu1 %v4449_v58  ;;  %v3117_v58 = vor.u32 %v3626_v30, %v3116_v55  ;;  %v3073_v22 = vor.u32 %v3612_v18, %v3070_v19  ;;  %v3610_v55 = vld [vmem:[%s5459_s7 + $0x6c] sm:$0xf0]  ;;  %v3180_v30 = vld [vmem:[%s5459_s7 + $0x160] sm:$0xf]  ;;  %v3659_v18 = vld [vmem:[%s5459_s7 + $0x1f4] sm:$0xf0] }
  0x85   :  { %1092 = vmatpush.bf16.msra.mxu1 %v1070_v23  ;;  %1027 = vmatmul.bf16.vlgmr.msrb.gmra.mxu2 %v4447_v56  ;;  %v3244_v56 = vld [vmem:[%s5459_s7 + $0x1e0] sm:$0xf]  ;;  %v3644_v23 = vld [vmem:[%s5459_s7 + $0x184] sm:$0xf]  ;;  %v3625_v19 = vld [vmem:[%s5459_s7 + $0xec] sm:$0xf] }
  0x86   :  { %1040 = vmatmul.bf16.vlgmr.msrb.gmra.mxu3 %v4451_v59  ;;  %v3658_v59 = vld [vmem:[%s5459_s7 + $0x1ec] sm:$0xf0]  ;;  %1506 = vmatpush.bf16.msra.mxu2 %v3117_v58  ;;  %v3053_v58 = vor.u32 %v3610_v55, %v3052_v25  ;;  %v3254_v25 = vld [vmem:[%s5459_s7 + $0x1f8] sm:$0xf0] }
  0x87   :  { %v3245_v35 = vor.u32 %v3658_v59, %v3244_v56  ;;  %v3642_v56 = vld [vmem:[%s5459_s7 + $0x16c] sm:$0xf0] }
  0x88   :  { %1532 = vmatpush.bf16.msrb.mxu0 %v3121_v36  ;;  %v3181_v59 = vor.u32 %v3642_v56, %v3180_v30 }
  0x89   :  { %1519 = vmatpush.bf16.msra.mxu3 %v3245_v35  ;;  %1545 = vmatpush.bf16.msrb.mxu1 %v3249_v40  ;;  %v3640_v35 = vld [vmem:[%s5459_s7 + $0x164] sm:$0xf]  ;;  %v3036_v40 = vld [vmem:[%s5459_s7 + $0x40] sm:$0xf] }
  0x8a   :  { %1507 = vmatpush.bf16.msra.mxu2 %v3101_v50  ;;  %v3020_v50 = vld [vmem:[%s5459_s7 + $0x20] sm:$0xf] }
  0x8b   :  { %v3021_v0 = vor.u32 %v3602_v51, %v3020_v50  ;;  %v3094_v50 = vld [vmem:[%s5459_s7 + $0xb8] sm:$0xf0] }
  0x8c   :  { %1533 = vmatpush.bf16.msrb.mxu0 %v3105_v57  ;;  %v3022_v57 = vld [vmem:[%s5459_s7 + $0x30] sm:$0xf0] }
  0x8d   :  { %1520 = vmatpush.bf16.msra.mxu3 %v3229_v54  ;;  %1546 = vmatpush.bf16.msrb.mxu1 %v3233_v63  ;;  %v3600_v54 = vld [vmem:[%s5459_s7 + $0x24] sm:$0xf]  ;;  %v3150_v63 = vld [vmem:[%s5459_s7 + $0x130] sm:$0xf0] }
  0x8e   :  { %1508 = vmatpush.bf16.msra.mxu2 %v3085_v4  ;;  %v3025_v5 = vor.u32 %v3600_v54, %v3022_v57  ;;  %v3153_v10 = vor.u32 %v3632_v61, %v3150_v63  ;;  %v3076_v57 = vld [vmem:[%s5459_s7 + $0x88] sm:$0xf] }
  0x8f   :  { %v3204_v61 = vld [vmem:[%s5459_s7 + $0x188] sm:$0xf] }
  0x90   :  { %1534 = vmatpush.bf16.msrb.mxu0 %v3089_v9 }
  0x91   :  { %1521 = vmatpush.bf16.msra.mxu3 %v3213_v8  ;;  %1547 = vmatpush.bf16.msrb.mxu1 %v3217_v12  ;;  %v3596_v8 = vld [vmem:[%s5459_s7 + $0x4] sm:$0xf] }
  0x92   :  { %1509 = vmatpush.bf16.msra.mxu2 %v3069_v16  ;;  %v3628_v12 = vld [vmem:[%s5459_s7 + $0x104] sm:$0xf]  ;;  %v3252_v16 = vld [vmem:[%s5459_s7 + $0x1e8] sm:$0xf] }
  0x93   :  { %3000 = vmatmul.msk.bf16.vlgmr.msra.gmra.mxu0 %vm1058_vm2, %v1047_v29  ;;  %v3253_v55 = vor.u32 %v3659_v18, %v3252_v16  ;;  %v3643_v16 = vld [vmem:[%s5459_s7 + $0x174] sm:$0xf0]  ;;  %v3062_v18 = vld [vmem:[%s5459_s7 + $0x78] sm:$0xf0] }
  0x94   :  { %3001 = vmatmul.msk.bf16.vlgmr.msra.gmra.mxu1 %vm1058_vm2, %v1047_v29  ;;  %v3201_v29 = vor.u32 %v3644_v23, %v3198_v24  ;;  %1535 = vmatpush.bf16.msrb.mxu0 %v3073_v22  ;;  %v3133_v22 = vor.u32 %v3630_v7, %v3132_v6  ;;  %v3009_v23 = vor.u32 %v3596_v8, %v3006_v11  ;;  %v3657_v24 = vld [vmem:[%s5459_s7 + $0x1ec] sm:$0xf]  ;;  %v3206_v8 = vld [vmem:[%s5459_s7 + $0x198] sm:$0xf0]  ;;  %v3611_v11 = vld [vmem:[%s5459_s7 + $0x74] sm:$0xf0] }
  0x95   :  { %1522 = vmatpush.bf16.msra.mxu3 %v3197_v21  ;;  %v3126_v21 = vld [vmem:[%s5459_s7 + $0xf8] sm:$0xf0]  ;;  %v3257_v56 = vor.u32 %v3657_v24, %v3254_v25  ;;  %v3081_v6 = vor.u32 %v3613_v1, %v3078_v2  ;;  %v3645_v7 = vld [vmem:[%s5459_s7 + $0x18c] sm:$0xf] }
  0x96   :  { %1548 = vmatpush.bf16.msrb.mxu1 %v3201_v29  ;;  %1510 = vmatpush.bf16.msra.mxu2 %v3053_v58  ;;  %v3125_v29 = vor.u32 %v3627_v15, %v3124_v14  ;;  %v3129_v30 = vor.u32 %v3625_v19, %v3126_v21  ;;  %v3108_v58 = vld [vmem:[%s5459_s7 + $0xc8] sm:$0xf]  ;;  %v3190_v24 = vld [vmem:[%s5459_s7 + $0x178] sm:$0xf0]  ;;  %v3629_v2 = vld [vmem:[%s5459_s7 + $0x10c] sm:$0xf] }
  0x98   :  { %1536 = vmatpush.bf16.msrb.mxu0 %v3057_v38  ;;  %v3110_v38 = vld [vmem:[%s5459_s7 + $0xd8] sm:$0xf0] }
  0x99   :  { %1523 = vmatpush.bf16.msra.mxu3 %v3181_v59  ;;  %v3623_v59 = vld [vmem:[%s5459_s7 + $0xd4] sm:$0xf0] }
  0x9a   :  { %v3109_v34 = vor.u32 %v3623_v59, %v3108_v58  ;;  %v3605_v58 = vld [vmem:[%s5459_s7 + $0x4c] sm:$0xf]  ;;  %v3046_v59 = vld [vmem:[%s5459_s7 + $0x58] sm:$0xf0] }
  0xa4   :  { %v516_v39 = vpop.f32.mrf.mxu0 }
  0xa5   :  { %v529_v41 = vpop.f32.mrf.mxu1 }
  0xa6   :  { %v530_v42 = vadd.f32 %v529_v41, %v516_v39  ;;  %v3182_v39 = vld [vmem:[%s5459_s7 + $0x170] sm:$0xf0]  ;;  %v3606_v41 = vld [vmem:[%s5459_s7 + $0x4c] sm:$0xf0] }
  0xac   :  { %v518_v43 = vpop.f32.mrf.mxu0  ;;  %v542_v27 = vpop.f32.mrf.mxu2 }
  0xad   :  { %v531_v32 = vpop.f32.mrf.mxu1  ;;  %v543_v44 = vadd.f32 %v542_v27, %v530_v42  ;;  %v555_v45 = vpop.f32.mrf.mxu3  ;;  %v3185_v42 = vor.u32 %v3640_v35, %v3182_v39  ;;  %v3164_v43 = vld [vmem:[%s5459_s7 + $0x140] sm:$0xf]  ;;  %v3638_v27 = vld [vmem:[%s5459_s7 + $0x14c] sm:$0xf0]  ;;  %v3655_v35 = vld [vmem:[%s5459_s7 + $0x1d4] sm:$0xf0] }
  0xae   :  { %v3604_v32 = vld [vmem:[%s5459_s7 + $0x44] sm:$0xf]  ;;  %v3165_v48 = vor.u32 %v3638_v27, %v3164_v43  ;;  %v3237_v39 = vor.u32 %v3655_v35, %v3236_v31  ;;  %v3049_v35 = vor.u32 %v3605_v58, %v3046_v59  ;;  %v3667_v59 = vld [vmem:[%s5461_s9 + $0x38] sm:$0xff] }
  0xaf   :  { %v4651_v28 = vadd.f32 %v555_v45, %v543_v44  ;;  %v3037_v44 = vor.u32 %v3606_v41, %v3036_v40  ;;  %v3038_v45 = vld [vmem:[%s5459_s7 + $0x50] sm:$0xf0]  ;;  %1549 = vmatpush.bf16.msrb.mxu1 %v3185_v42  ;;  %v3653_v41 = vld [vmem:[%s5459_s7 + $0x1cc] sm:$0xf]  ;;  %v3238_v42 = vld [vmem:[%s5459_s7 + $0x1d8] sm:$0xf0] }
  0xb0   :  { %1524 = vmatpush.bf16.msra.mxu3 %v3165_v48  ;;  %v3241_v43 = vor.u32 %v3653_v41, %v3238_v42  ;;  %v3651_v48 = vld [vmem:[%s5459_s7 + $0x1b4] sm:$0xf0]  ;;  %v3028_v41 = vld [vmem:[%s5459_s7 + $0x28] sm:$0xf] }
  0xb1   :  { %1511 = vmatpush.bf16.msra.mxu2 %v3037_v44  ;;  %v3619_v44 = vld [vmem:[%s5459_s7 + $0xb4] sm:$0xf0] }
  0xb2   :  { %v3603_v42 = vld [vmem:[%s5459_s7 + $0x34] sm:$0xf0] }
  0xb3   :  { %1550 = vmatpush.bf16.msrb.mxu1 %v3169_v53  ;;  %v3649_v53 = vld [vmem:[%s5459_s7 + $0x1ac] sm:$0xf] }
  0xb4   :  { %v544_v49 = vpop.f32.mrf.mxu2 }
  0xb5   :  { %v557_v33 = vpop.f32.mrf.mxu3  ;;  %v3041_v49 = vor.u32 %v3604_v32, %v3038_v45  ;;  %1512 = vmatpush.bf16.msra.mxu2 %v3021_v0  ;;  %v3092_v32 = vld [vmem:[%s5459_s7 + $0xa8] sm:$0xf]  ;;  %v3647_v0 = vld [vmem:[%s5459_s7 + $0x194] sm:$0xf0] }
  0xb6   :  { %v3634_v33 = vld [vmem:[%s5459_s7 + $0x12c] sm:$0xf0]  ;;  %v3220_v45 = vld [vmem:[%s5459_s7 + $0x1a8] sm:$0xf]  ;;  %v3093_v47 = vor.u32 %v3619_v44, %v3092_v32  ;;  %v3029_v32 = vor.u32 %v3603_v42, %v3028_v41  ;;  %v3635_v44 = vld [vmem:[%s5459_s7 + $0x134] sm:$0xf0] }
  0xb7   :  { %1537 = vmatpush.bf16.msrb.mxu0 %v3041_v49  ;;  %v3149_v4 = vor.u32 %v3634_v33, %v3148_v52  ;;  %1551 = vmatpush.bf16.msrb.mxu1 %v3153_v10  ;;  %v3617_v49 = vld [vmem:[%s5459_s7 + $0xac] sm:$0xf]  ;;  %v3221_v51 = vor.u32 %v3651_v48, %v3220_v45  ;;  %v3222_v33 = vld [vmem:[%s5459_s7 + $0x1b8] sm:$0xf0]  ;;  %v3060_v10 = vld [vmem:[%s5459_s7 + $0x68] sm:$0xf] }
  0xb8   :  { %v3097_v52 = vor.u32 %v3617_v49, %v3094_v50  ;;  %v3225_v54 = vor.u32 %v3649_v53, %v3222_v33  ;;  %v3061_v15 = vor.u32 %v3611_v11, %v3060_v10  ;;  %v3601_v45 = vld [vmem:[%s5459_s7 + $0x2c] sm:$0xf]  ;;  %v3012_v53 = vld [vmem:[%s5459_s7 + $0x8] sm:$0xf]  ;;  %v3599_v33 = vld [vmem:[%s5459_s7 + $0x14] sm:$0xf0] }
  0xb9   :  { %1525 = vmatpush.bf16.msra.mxu3 %v3149_v4  ;;  %1513 = vmatpush.bf16.msra.mxu2 %v3005_v17  ;;  %v3609_v17 = vld [vmem:[%s5459_s7 + $0x6c] sm:$0xf]  ;;  %v3682_v41 = vld [vmem:[%s5462_s11 + $0x30] sm:$0xff] }
  0xba   :  { %v3633_v50 = vld [vmem:[%s5459_s7 + $0x12c] sm:$0xf]  ;;  %v3690_v42 = vld [vmem:[%s5462_s11 + $0x70] sm:$0xff] }
  0xbb   :  { %1538 = vmatpush.bf16.msrb.mxu0 %v3025_v5  ;;  %v3205_v5 = vor.u32 %v3647_v0, %v3204_v61  ;;  %v3597_v61 = vld [vmem:[%s5459_s7 + $0xc] sm:$0xf] }
  0xbd   :  { %1526 = vmatpush.bf16.msra.mxu3 %v3133_v22  ;;  %1558 = vmatpush.bf16.msrb.mxu2 %v3125_v29  ;;  %v3065_v22 = vor.u32 %v3609_v17, %v3062_v18  ;;  %v3607_v29 = vld [vmem:[%s5459_s7 + $0x54] sm:$0xf0] }
  0xbf   :  { %1539 = vmatpush.bf16.msrb.mxu0 %v3009_v23  ;;  %v3641_v23 = vld [vmem:[%s5459_s7 + $0x16c] sm:$0xf] }
  0xc0   :  { %v4677_v62 = vpop.f32.mrf.mxu0  ;;  %v3193_v25 = vor.u32 %v3641_v23, %v3190_v24 }
  0xc1   :  { %v4688_v3 = vpop.f32.mrf.mxu1  ;;  %1571 = vmatpush.bf16.msrb.mxu3 %v3253_v55  ;;  %1559 = vmatpush.bf16.msrb.mxu2 %v3109_v34  ;;  %v3172_v55 = vld [vmem:[%s5459_s7 + $0x148] sm:$0xf] }
  0xc3   :  { %1584 = vmatpush.bf16.msra.mxu0 %v3129_v30 }
  0xc5   :  { %1572 = vmatpush.bf16.msrb.mxu3 %v3237_v39  ;;  %1560 = vmatpush.bf16.msrb.mxu2 %v3093_v47  ;;  %v3030_v47 = vld [vmem:[%s5459_s7 + $0x38] sm:$0xf0] }
  0xc6   :  { %v3033_v49 = vor.u32 %v3601_v45, %v3030_v47  ;;  %v3689_v45 = vld [vmem:[%s5462_s11 + $0x68] sm:$0xff]  ;;  %v3664_v47 = vld [vmem:[%s5461_s9 + $0x20] sm:$0xff] }
  0xc8   :  { %v4723_v20 = vpop.f32.mrf.mxu2  ;;  %v570_v26 = vpop.f32.mrf.mxu0 }
  0xc9   :  { %v4752_v36 = vpop.f32.mrf.mxu3  ;;  %v583_v37 = vpop.f32.mrf.mxu1  ;;  %v3137_v26 = vor.u32 %v3628_v12, %v3134_v13  ;;  %1573 = vmatpush.bf16.msrb.mxu3 %v3221_v51  ;;  %v3188_v12 = vld [vmem:[%s5459_s7 + $0x168] sm:$0xf]  ;;  %v3158_v51 = vld [vmem:[%s5459_s7 + $0x138] sm:$0xf0] }
  0xca   :  { %v3621_v37 = vld [vmem:[%s5459_s7 + $0xcc] sm:$0xf]  ;;  %v3189_v21 = vor.u32 %v3643_v16, %v3188_v12 }
  0xcb   :  { %1552 = vmatpush.bf16.msrb.mxu1 %v3137_v26  ;;  %v3113_v40 = vor.u32 %v3621_v37, %v3110_v38  ;;  %v3044_v26 = vld [vmem:[%s5459_s7 + $0x48] sm:$0xf]  ;;  %v3637_v37 = vld [vmem:[%s5459_s7 + $0x14c] sm:$0xf]  ;;  %v3174_v38 = vld [vmem:[%s5459_s7 + $0x158] sm:$0xf0] }
  0xcc   :  { %v3045_v30 = vor.u32 %v3607_v29, %v3044_v26  ;;  %v3177_v39 = vor.u32 %v3637_v37, %v3174_v38  ;;  %v3691_v37 = vld [vmem:[%s5462_s11 + $0x78] sm:$0xff] }
  0xcd   :  { %1585 = vmatpush.bf16.msra.mxu0 %v3113_v40  ;;  %1574 = vmatpush.bf16.msrb.mxu3 %v3205_v5  ;;  %v3142_v5 = vld [vmem:[%s5459_s7 + $0x118] sm:$0xf0] }
  0xcf   :  { %1597 = vmatpush.bf16.msra.mxu1 %v3257_v56  ;;  %v3639_v56 = vld [vmem:[%s5459_s7 + $0x154] sm:$0xf0] }
  0xd0   :  { %v596_v60 = vpop.f32.mrf.mxu2  ;;  %v3173_v34 = vor.u32 %v3639_v56, %v3172_v55 }
  0xd1   :  { %v609_v9 = vpop.f32.mrf.mxu3  ;;  %v3615_v60 = vld [vmem:[%s5459_s7 + $0x94] sm:$0xf0]  ;;  %1586 = vmatpush.bf16.msra.mxu0 %v3097_v52  ;;  %1575 = vmatpush.bf16.msrb.mxu3 %v3189_v21  ;;  %v3161_v52 = vor.u32 %v3633_v50, %v3158_v51  ;;  %v3688_v50 = vld [vmem:[%s5462_s11 + $0x60] sm:$0xff] }
  0xd2   :  { %v3077_v63 = vor.u32 %v3615_v60, %v3076_v57  ;;  %v3209_v9 = vor.u32 %v3645_v7, %v3206_v8  ;;  %v3013_v57 = vor.u32 %v3599_v33, %v3012_v53  ;;  %v3631_v60 = vld [vmem:[%s5459_s7 + $0x114] sm:$0xf0]  ;;  %v582_v7 = vadd.f32 %v4688_v3, %v4677_v62 }
  0xd3   :  { %1598 = vmatpush.bf16.msra.mxu1 %v3241_v43  ;;  %v3156_v43 = vld [vmem:[%s5459_s7 + $0x128] sm:$0xf]  ;;  %v3663_v51 = vld [vmem:[%s5461_s9 + $0x18] sm:$0xff] }
  0xd4   :  { %1561 = vmatpush.bf16.msrb.mxu2 %v3077_v63  ;;  %v3157_v48 = vor.u32 %v3635_v44, %v3156_v43  ;;  %v3014_v63 = vld [vmem:[%s5459_s7 + $0x18] sm:$0xf0]  ;;  %v595_v8 = vadd.f32 %v4723_v20, %v582_v7  ;;  %v1100_v20 = vld [vmem:[%s5460_s6] sm:$0x3]  ;;  %v3665_v43 = vld [vmem:[%s5461_s9 + $0x28] sm:$0xff] }
  0xd5   :  { %1587 = vmatpush.bf16.msra.mxu0 %v3081_v6  ;;  %1576 = vmatpush.bf16.msrb.mxu3 %v3173_v34  ;;  %v3017_v1 = vor.u32 %v3597_v61, %v3014_v63  ;;  %v3145_v6 = vor.u32 %v3629_v2, %v3142_v5  ;;  %v1102_v23 = vperm.slane %v1100_v20, 0  ;;  %v1103_v24 = vperm.slane %v1100_v20, 1  ;;  %v3681_v44 = vld [vmem:[%s5462_s11 + $0x28] sm:$0xff]  ;;  %v3679_v53 = vld [vmem:[%s5462_s11 + $0x18] sm:$0xff]  ;;  %v3686_v61 = vld [vmem:[%s5462_s11 + $0x50] sm:$0xff] }
  0xd6   :  { %v608_v11 = vadd.f32 %v4752_v36, %v595_v8  ;;  %v3687_v33 = vld [vmem:[%s5462_s11 + $0x58] sm:$0xff]  ;;  %v3661_v63 = vld [vmem:[%s5461_s9 + $0x8] sm:$0xff]  ;;  %v3660_v5 = vld [vmem:[%s5461_s9] sm:$0xff] }
  0xd7   :  { %1599 = vmatpush.bf16.msra.mxu1 %v3225_v54  ;;  %v3140_v54 = vld [vmem:[%s5459_s7 + $0x108] sm:$0xf]  ;;  %v3676_v7 = vld [vmem:[%s5462_s11] sm:$0xff] }
  0xd8   :  { %1562 = vmatpush.bf16.msrb.mxu2 %v3061_v15  ;;  %v3141_v0 = vor.u32 %v3631_v60, %v3140_v54  ;;  %v3662_v54 = vld [vmem:[%s5461_s9 + $0x10] sm:$0xff]  ;;  %v3685_v2 = vld [vmem:[%s5462_s11 + $0x48] sm:$0xff]  ;;  %v3684_v8 = vld [vmem:[%s5462_s11 + $0x40] sm:$0xff] }
  0xd9   :  { %1588 = vmatpush.bf16.msra.mxu0 %v3065_v22  ;;  %1577 = vmatpush.bf16.msrb.mxu3 %v3157_v48  ;;  %v3672_v48 = vld [vmem:[%s5461_s9 + $0x60] sm:$0xff]  ;;  %v3678_v60 = vld [vmem:[%s5462_s11 + $0x10] sm:$0xff] }
  0xdb   :  { %1600 = vmatpush.bf16.msra.mxu1 %v3209_v9 }
  0xdc   :  { %1563 = vmatpush.bf16.msrb.mxu2 %v3045_v30 }
  0xdd   :  { %1589 = vmatpush.bf16.msra.mxu0 %v3049_v35  ;;  %1578 = vmatpush.bf16.msrb.mxu3 %v3141_v0  ;;  %v3683_v35 = vld [vmem:[%s5462_s11 + $0x38] sm:$0xff]  ;;  %v3669_v0 = vld [vmem:[%s5461_s9 + $0x48] sm:$0xff] }
  0xdf   :  { %1601 = vmatpush.bf16.msra.mxu1 %v3193_v25 }
  0xe0   :  { %v4877_v27 = vpop.f32.mrf.mxu0  ;;  %1564 = vmatpush.bf16.msrb.mxu2 %v3029_v32  ;;  %v3673_v32 = vld [vmem:[%s5461_s9 + $0x68] sm:$0xff] }
  0xe1   :  { %v4888_v46 = vpop.f32.mrf.mxu1  ;;  %1590 = vmatpush.bf16.msra.mxu0 %v3033_v49  ;;  %v951_v12 = vadd.f32 %v4877_v27, %v4651_v28  ;;  %v3680_v49 = vld [vmem:[%s5462_s11 + $0x20] sm:$0xff] }
  0xe3   :  { %1602 = vmatpush.bf16.msra.mxu1 %v3177_v39  ;;  %v964_v17 = vadd.f32 %v4888_v46, %v951_v12  ;;  %v3666_v39 = vld [vmem:[%s5461_s9 + $0x30] sm:$0xff] }
  0xe4   :  { %1565 = vmatpush.bf16.msrb.mxu2 %v3013_v57  ;;  %v3670_v57 = vld [vmem:[%s5461_s9 + $0x50] sm:$0xff] }
  0xe5   :  { %1591 = vmatpush.bf16.msra.mxu0 %v3017_v1  ;;  %v3677_v1 = vld [vmem:[%s5462_s11 + $0x8] sm:$0xff] }
  0xe7   :  { %1603 = vmatpush.bf16.msra.mxu1 %v3161_v52  ;;  %v3671_v52 = vld [vmem:[%s5461_s9 + $0x58] sm:$0xff] }
  0xe8   :  { %v4923_v4 = vpop.f32.mrf.mxu2  ;;  %v952_v14 = vpop.f32.mrf.mxu0 }
  0xe9   :  { %v4940_v13 = vpop.f32.mrf.mxu3  ;;  %v965_v19 = vpop.f32.mrf.mxu1  ;;  %v977_v3 = vadd.f32 %v4923_v4, %v964_v17 }
  0xeb   :  { %1604 = vmatpush.bf16.msra.mxu1 %v3145_v6  ;;  %v990_v36 = vadd.f32 %v4940_v13, %v977_v3  ;;  %v3675_v13 = vld [vmem:[%s5461_s9 + $0x78] sm:$0xff]  ;;  %v3668_v6 = vld [vmem:[%s5461_s9 + $0x40] sm:$0xff] }
  0xf0   :  { %v978_v31 = vpop.f32.mrf.mxu2 }
  0xf1   :  { %v991_v40 = vpop.f32.mrf.mxu3 }
  0xf2   :  { %v3674_v40 = vld [vmem:[%s5461_s9 + $0x70] sm:$0xff] }
 0x100   :  { %v1002_v9 = vpop.f32.mrf.mxu0 }
 0x101   :  { %v1015_v10 = vpop.f32.mrf.mxu1  ;;  %v1003_v14 = vadd.f32 %v1002_v9, %v608_v11  ;;  %v1964_v9 = vlaneseq }
 0x103   :  { %v1016_v62 = vadd.f32 %v1015_v10, %v1003_v14  ;;  %v5156_v10 = vld [vmem:[%s5465_s8] sm:$0xf]  ;;  %v5158_v11 = vshrl.u32 %v1964_v9, 7  ;;  %v5160_v12 = vand.u32 127, %v1964_v9 }
 0x105   :  { %v5163_v14 = vadd.s32 16, %v5158_v11  ;;  %v5170_v17 = vadd.s32 128, %v5160_v12 }
 0x107   :  { %v1979_v3 = vshra.s32 %v5170_v17, 5 }
 0x108   :  { %v1028_v15 = vpop.f32.mrf.mxu2  ;;  %v1004_v16 = vpop.f32.mrf.mxu0 }
 0x109   :  { %v1017_v18 = vpop.f32.mrf.mxu1  ;;  %v1041_v19 = vpop.f32.mrf.mxu3  ;;  %v1029_v21 = vadd.f32 %v1028_v15, %v1016_v62  ;;  %v5166_v15 = vadd.s32 24, %v5158_v11  ;;  %v1978_v16 = vshra.s32 %v5160_v12, 5  ;;  %v5177_v62 = vadd.s32 384, %v5160_v12 }
 0x10a   :  { %v1179_v18 = vperm.slane %v5156_v10, 1  ;;  %vm2003_vm6 = vcmp.eq.s32.totalorder %v5163_v14, %v1979_v3  ;;  %vm1987_vm0 = vcmp.eq.s32.totalorder %v5158_v11, %v1979_v3 }
 0x10b   :  { %v1042_v28 = vadd.f32 %v1041_v19, %v1029_v21  ;;  %v5174_v19 = vadd.s32 256, %v5160_v12  ;;  %vm2002_vm3 = vcmp.eq.s32.totalorder %v5163_v14, %v1978_v16  ;;  %vm2010_vm4 = vcmp.eq.s32.totalorder %v5166_v15, %v1978_v16 }
 0x10c   :  { %vm3386_vm5 = vmpackc.low %vm2010_vm4, %vm2002_vm3  ;;  %v1981_v20 = vshra.s32 %v5177_v62, 5  ;;  %vm2011_vm7 = vcmp.eq.s32.totalorder %v5166_v15, %v1979_v3  ;;  %vm1986_vm8 = vcmp.eq.s32.totalorder %v5158_v11, %v1978_v16 }
 0x10d   :  { %v1980_v21 = vshra.s32 %v5174_v19, 5  ;;  %vm3391_vm9 = vmpackc.low %vm2011_vm7, %vm2003_vm6 }
 0x10e   :  { %vm2005_vm12 = vcmp.eq.s32.totalorder %v5163_v14, %v1981_v20  ;;  %vm2013_vm14 = vcmp.eq.s32.totalorder %v5166_v15, %v1981_v20  ;;  %vm1989_vm6 = vcmp.eq.s32.totalorder %v5158_v11, %v1981_v20 }
 0x10f   :  { %vm2004_vm10 = vcmp.eq.s32.totalorder %v5163_v14, %v1980_v21  ;;  %vm2012_vm11 = vcmp.eq.s32.totalorder %v5166_v15, %v1980_v21  ;;  %vm3401_vm2 = vmpackc.low %vm2013_vm14, %vm2005_vm12  ;;  %vm1988_vm4 = vcmp.eq.s32.totalorder %v5158_v11, %v1980_v21 }
 0x110   :  { %v1030_v22 = vpop.f32.mrf.mxu2  ;;  %v1081_v27 = vpop.f32.mrf.mxu0  ;;  %vm3396_vm13 = vmpackc.low %vm2012_vm11, %vm2004_vm10 }
 0x111   :  { %v1043_v25 = vpop.f32.mrf.mxu3  ;;  %v1098_v26 = vadd.f32 %v1081_v27, %v990_v36  ;;  %v1094_v46 = vpop.f32.mrf.mxu1  ;;  %v5185_v36 = vadd.s32 8, %v5158_v11 }
 0x112   :  { %v1099_v29 = vadd.f32 %v1094_v46, %v1042_v28  ;;  %v1178_v25 = vperm.slane %v5156_v10, 0 }
 0x113   :  { %v1106_v55 = vadd.f32 %v1102_v23, %v1098_v26  ;;  %v3729_v23 = vmov 1.0|1.0   ;;  %vm1994_vm15 = vcmp.eq.s32.totalorder %v5185_v36, %v1978_v16  ;;  %vm1995_vm1 = vcmp.eq.s32.totalorder %v5185_v36, %v1979_v3 }
 0x114   :  { %v1107_v30 = vadd.f32 %v1103_v24, %v1099_v29  ;;  %vm3388_vm3 = vmpackc.low %vm1994_vm15, %vm1986_vm8  ;;  %vm1997_vm7 = vcmp.eq.s32.totalorder %v5185_v36, %v1981_v20 }
 0x115   :  { %v1108_v56 = vmax.f32 %v1106_v55, 0.0  ;;  %vm3403_vm8 = vmpackc.low %vm1997_vm7, %vm1989_vm6 }
 0x116   :  { %v1109_v4 = vmax.f32 %v1107_v30, 0.0 }
 0x117   :  { %v5041_v58 = vpack.c.bf16 %v1108_v56, %v1108_v56 }
 0x118   :  { %v5049_v31 = vpack.c.bf16 %v1109_v4, %v1109_v4  ;;  %v1083_v34 = vpop.f32.mrf.mxu0  ;;  %v5218_v4 = vadd.s32 512, %v5160_v12 }
 0x119   :  { %v1096_v38 = vpop.f32.mrf.mxu1  ;;  %1514 = vmatmul.bf16.vlgmr.msra.gmra.mxu2 %v5041_v58  ;;  %1540 = vmatmul.bf16.vlgmr.msrb.gmra.mxu0 %v5041_v58 }
 0x11a   :  { %1527 = vmatmul.bf16.vlgmr.msra.gmra.mxu3 %v5049_v31  ;;  %1553 = vmatmul.bf16.vlgmr.msrb.gmra.mxu1 %v5049_v31  ;;  %v1982_v34 = vshra.s32 %v5218_v4, 5  ;;  %v2070_v3 = vand.u32 31, %v5218_v4 }
 0x11b   :  { %1780 = vmatpush.bf16.msra.mxu2 %v3667_v59  ;;  %1793 = vmatpush.bf16.msra.mxu3 %v3675_v13  ;;  %v5224_v59 = vadd.s32 768, %v5160_v12  ;;  %v5227_v13 = vadd.s32 896, %v5160_v12 }
 0x11c   :  { %1938 = vmatpush.bf16.msrb.mxu0 %v3683_v35  ;;  %1951 = vmatpush.bf16.msrb.mxu1 %v3691_v37  ;;  %vm2006_vm11 = vcmp.eq.s32.totalorder %v5163_v14, %v1982_v34  ;;  %vm2014_vm12 = vcmp.eq.s32.totalorder %v5166_v15, %v1982_v34  ;;  %vm1998_vm6 = vcmp.eq.s32.totalorder %v5185_v36, %v1982_v34 }
 0x11d   :  { %v1984_v37 = vshra.s32 %v5224_v59, 5  ;;  %v1985_v38 = vshra.s32 %v5227_v13, 5  ;;  %vm3406_vm15 = vmpackc.low %vm2014_vm12, %vm2006_vm11  ;;  %v2072_v20 = vand.u32 31, %v5224_v59 }
 0x11f   :  { %1781 = vmatpush.bf16.msra.mxu2 %v3666_v39  ;;  %1794 = vmatpush.bf16.msra.mxu3 %v3674_v40  ;;  %vm1992_vm11 = vcmp.eq.s32.totalorder %v5158_v11, %v1984_v37  ;;  %vm2000_vm12 = vcmp.eq.s32.totalorder %v5185_v36, %v1984_v37 }
 0x120   :  { %1939 = vmatpush.bf16.msrb.mxu0 %v3682_v41  ;;  %1952 = vmatpush.bf16.msrb.mxu1 %v3690_v42  ;;  %v1180_v42 = vperm.slane %v5156_v10, 2 }
 0x123   :  { %1782 = vmatpush.bf16.msra.mxu2 %v3665_v43  ;;  %1795 = vmatpush.bf16.msra.mxu3 %v3673_v32  ;;  %v1181_v32 = vperm.slane %v5156_v10, 3 }
 0x124   :  { %1940 = vmatpush.bf16.msrb.mxu0 %v3681_v44  ;;  %1953 = vmatpush.bf16.msrb.mxu1 %v3689_v45 }
 0x127   :  { %1783 = vmatpush.bf16.msra.mxu2 %v3664_v47  ;;  %1796 = vmatpush.bf16.msra.mxu3 %v3672_v48 }
 0x128   :  { %1941 = vmatpush.bf16.msrb.mxu0 %v3680_v49  ;;  %1954 = vmatpush.bf16.msrb.mxu1 %v3688_v50 }
 0x129   :  { %1566 = vmatmul.bf16.vlgmr.msrb.gmra.mxu2 %v5041_v58  ;;  %1592 = vmatmul.bf16.vlgmr.msra.gmra.mxu0 %v5041_v58 }
 0x12a   :  { %1579 = vmatmul.bf16.vlgmr.msrb.gmra.mxu3 %v5049_v31  ;;  %1605 = vmatmul.bf16.vlgmr.msra.gmra.mxu1 %v5049_v31 }
 0x12b   :  { %1784 = vmatpush.bf16.msra.mxu2 %v3663_v51  ;;  %1797 = vmatpush.bf16.msra.mxu3 %v3671_v52 }
 0x12c   :  { %1942 = vmatpush.bf16.msrb.mxu0 %v3679_v53  ;;  %1955 = vmatpush.bf16.msrb.mxu1 %v3687_v33 }
 0x12f   :  { %1785 = vmatpush.bf16.msra.mxu2 %v3662_v54  ;;  %1798 = vmatpush.bf16.msra.mxu3 %v3670_v57  ;;  %v3694_v54 = vld [vmem:[%s5463_s12] ss:$0 sm:$0xff]  ;;  %v2066_v57 = vand.u32 31, %v5160_v12 }
 0x130   :  { %1943 = vmatpush.bf16.msrb.mxu0 %v3678_v60  ;;  %1956 = vmatpush.bf16.msrb.mxu1 %v3686_v61  ;;  %v2067_v60 = vand.u32 31, %v5170_v17  ;;  %v2068_v61 = vand.u32 31, %v5174_v19 }
 0x133   :  { %1786 = vmatpush.bf16.msra.mxu2 %v3661_v63  ;;  %1799 = vmatpush.bf16.msra.mxu3 %v3669_v0 }
 0x134   :  { %1944 = vmatpush.bf16.msrb.mxu0 %v3677_v1  ;;  %1957 = vmatpush.bf16.msrb.mxu1 %v3685_v2  ;;  %v2069_v1 = vand.u32 31, %v5177_v62 }
 0x137   :  { %1787 = vmatpush.bf16.msra.mxu2 %v3660_v5  ;;  %1800 = vmatpush.bf16.msra.mxu3 %v3668_v6 }
 0x138   :  { %1945 = vmatpush.bf16.msrb.mxu0 %v3676_v7  ;;  %1958 = vmatpush.bf16.msrb.mxu1 %v3684_v8 }
 0x13a   :  { %1788 = vmatmul.bf16.vlgmr.msra.gmra.mxu2 %v5041_v58  ;;  %1801 = vmatmul.bf16.vlgmr.msra.gmra.mxu3 %v5049_v31 }
 0x13b   :  { %1946 = vmatmul.bf16.vlgmr.msrb.gmra.mxu0 %v5041_v58  ;;  %1959 = vmatmul.bf16.vlgmr.msrb.gmra.mxu1 %v5049_v31  ;;  %v5221_v58 = vadd.s32 640, %v5160_v12 }
 0x13c   :  { %3387 = vmatpush.bf16.msk.msrb.mxu2 %vm3386_vm5, %v3729_v23  ;;  %3392 = vmatpush.bf16.msk.msrb.mxu3 %vm3391_vm9, %v3729_v23  ;;  %vm1996_vm5 = vcmp.eq.s32.totalorder %v5185_v36, %v1980_v21  ;;  %vm3393_vm9 = vmpackc.low %vm1995_vm1, %vm1987_vm0  ;;  %vm2008_vm0 = vcmp.eq.s32.totalorder %v5163_v14, %v1984_v37  ;;  %vm2016_vm1 = vcmp.eq.s32.totalorder %v5166_v15, %v1984_v37 }
 0x13d   :  { %3397 = vmatpush.bf16.msk.msra.mxu0 %vm3396_vm13, %v3729_v23  ;;  %3402 = vmatpush.bf16.msk.msra.mxu1 %vm3401_vm2, %v3729_v23  ;;  %vm3398_vm10 = vmpackc.low %vm1996_vm5, %vm1988_vm4  ;;  %v1983_v35 = vshra.s32 %v5221_v58, 5  ;;  %vm2009_vm2 = vcmp.eq.s32.totalorder %v5163_v14, %v1985_v38  ;;  %vm2017_vm4 = vcmp.eq.s32.totalorder %v5166_v15, %v1985_v38  ;;  %vm1990_vm5 = vcmp.eq.s32.totalorder %v5158_v11, %v1982_v34 }
 0x13e   :  { %vm3416_vm7 = vmpackc.low %vm2016_vm1, %vm2008_vm0  ;;  %v2071_v21 = vand.u32 31, %v5221_v58 }
 0x13f   :  { %vm2007_vm13 = vcmp.eq.s32.totalorder %v5163_v14, %v1983_v35  ;;  %vm2015_vm14 = vcmp.eq.s32.totalorder %v5166_v15, %v1983_v35  ;;  %vm3418_vm1 = vmpackc.low %vm2000_vm12, %vm1992_vm11  ;;  %vm2093_vm12 = vcmp.eq.s32.totalorder %v5163_v14, %v2069_v1 }
 0x140   :  { %3389 = vmatpush.bf16.msk.msrb.mxu2 %vm3388_vm3, %v3729_v23  ;;  %3394 = vmatpush.bf16.msk.msrb.mxu3 %vm3393_vm9, %v3729_v23  ;;  %vm3411_vm3 = vmpackc.low %vm2015_vm14, %vm2007_vm13  ;;  %vm1991_vm9 = vcmp.eq.s32.totalorder %v5158_v11, %v1983_v35  ;;  %vm1993_vm14 = vcmp.eq.s32.totalorder %v5158_v11, %v1985_v38 }
 0x141   :  { %3399 = vmatpush.bf16.msk.msra.mxu0 %vm3398_vm10, %v3729_v23  ;;  %3404 = vmatpush.bf16.msk.msra.mxu1 %vm3403_vm8, %v3729_v23  ;;  %vm1999_vm10 = vcmp.eq.s32.totalorder %v5185_v36, %v1983_v35  ;;  %vm3421_vm8 = vmpackc.low %vm2017_vm4, %vm2009_vm2  ;;  %vm2090_vm4 = vcmp.eq.s32.totalorder %v5163_v14, %v2066_v57 }
 0x142   :  { %vm3408_vm13 = vmpackc.low %vm1998_vm6, %vm1990_vm5  ;;  %vm2098_vm5 = vcmp.eq.s32.totalorder %v5166_v15, %v2066_v57  ;;  %vm2091_vm6 = vcmp.eq.s32.totalorder %v5163_v14, %v2067_v60 }
 0x143   :  { %vm3413_vm0 = vmpackc.low %vm1999_vm10, %vm1991_vm9  ;;  %vm2092_vm9 = vcmp.eq.s32.totalorder %v5163_v14, %v2068_v61  ;;  %vm2100_vm10 = vcmp.eq.s32.totalorder %v5166_v15, %v2068_v61 }
 0x144   :  { %3407 = vmatpush.bf16.msk.msra.mxu2 %vm3406_vm15, %v3729_v23  ;;  %3412 = vmatpush.bf16.msk.msra.mxu3 %vm3411_vm3, %v3729_v23  ;;  %vm2001_vm15 = vcmp.eq.s32.totalorder %v5185_v36, %v1985_v38  ;;  %vm5468_vm3 = vcmask 1041408   ;;  %vm5280_vm11 = vmpackc.low %vm2098_vm5, %vm2090_vm4  ;;  %vm2083_vm4 = vcmp.eq.s32.totalorder %v5185_v36, %v2067_v60 }
 0x145   :  { %3417 = vmatpush.bf16.msk.msrb.mxu0 %vm3416_vm7, %v3729_v23  ;;  %3422 = vmatpush.bf16.msk.msrb.mxu1 %vm3421_vm8, %v3729_v23  ;;  %vm3423_vm2 = vmpackc.low %vm2001_vm15, %vm1993_vm14  ;;  %vm2099_vm7 = vcmp.eq.s32.totalorder %v5166_v15, %v2067_v60  ;;  %vm2155_vm8 = vcmask 261120   ;;  %vm2074_vm15 = vcmp.eq.s32.totalorder %v5158_v11, %v2066_v57 }
 0x146   :  { %vm5290_vm14 = vmpackc.low %vm2099_vm7, %vm2091_vm6  ;;  %vm2076_vm6 = vcmp.eq.s32.totalorder %v5158_v11, %v2068_v61  ;;  %vm2084_vm7 = vcmp.eq.s32.totalorder %v5185_v36, %v2068_v61 }
 0x148   :  { %3409 = vmatpush.bf16.msk.msra.mxu2 %vm3408_vm13, %v3729_v23  ;;  %3414 = vmatpush.bf16.msk.msra.mxu3 %vm3413_vm0, %v3729_v23  ;;  %vm2101_vm13 = vcmp.eq.s32.totalorder %v5166_v15, %v2069_v1  ;;  %vm2082_vm0 = vcmp.eq.s32.totalorder %v5185_v36, %v2066_v57 }
 0x149   :  { %3419 = vmatpush.bf16.msk.msrb.mxu0 %vm3418_vm1, %v3729_v23  ;;  %3424 = vmatpush.bf16.msk.msrb.mxu1 %vm3423_vm2, %v3729_v23  ;;  %vm5296_vm1 = vmpackc.low %vm2100_vm10, %vm2092_vm9  ;;  %vm2075_vm2 = vcmp.eq.s32.totalorder %v5158_v11, %v2067_v60  ;;  %vm2077_vm10 = vcmp.eq.s32.totalorder %v5158_v11, %v2069_v1 }
 0x14a   :  { %vm3441_vm5 = vmpackc.low %vm2101_vm13, %vm2093_vm12 }
 0x14b   :  { %vm3428_vm9 = vmpackc.low %vm2082_vm0, %vm2074_vm15  ;;  %vm2103_vm0 = vcmp.eq.s32.totalorder %v5166_v15, %v2071_v21 }
 0x14c   :  { %vm3433_vm12 = vmpackc.low %vm2083_vm4, %vm2075_vm2  ;;  %vm2104_vm2 = vcmp.eq.s32.totalorder %v5166_v15, %v2072_v20 }
 0x14d   :  { %vm3438_vm13 = vmpackc.low %vm2084_vm7, %vm2076_vm6 }
 0x196   :  { %v1541_v22 = vpop.f32.mrf.mxu0 }
 0x197   :  { %v1542_v28 = vadd.f32 %v1541_v22, %v1179_v18  ;;  %v1554_v27 = vpop.f32.mrf.mxu1  ;;  %v2073_v22 = vand.u32 31, %v5227_v13 }
 0x199   :  { %v5199_v24 = vadd.f32 %v1554_v27, %v1542_v28  ;;  %vm2105_vm6 = vcmp.eq.s32.totalorder %v5166_v15, %v2073_v22 }
 0x19c   :  { %v1515_v26 = vpop.f32.mrf.mxu2 }
 0x19d   :  { %v1516_v46 = vadd.f32 %v1515_v26, %v1178_v25  ;;  %v1528_v29 = vpop.f32.mrf.mxu3 }
 0x19e   :  { %v1543_v55 = vpop.f32.mrf.mxu0 }
 0x19f   :  { %v1529_v30 = vadd.f32 %v1528_v29, %v1516_v46  ;;  %v1556_v56 = vpop.f32.mrf.mxu1 }
 0x1a1   :  { %1610 = vst [vmem:[%s5466_s13] sm:$0x3] %v1529_v30 }
 0x1a4   :  { %v1517_v31 = vpop.f32.mrf.mxu2 }
 0x1a5   :  { %v1530_v39 = vpop.f32.mrf.mxu3 }
 0x1a6   :  { %v1593_v40 = vpop.f32.mrf.mxu0 }
 0x1a7   :  { %v1606_v41 = vpop.f32.mrf.mxu1  ;;  %v1594_v50 = vadd.f32 %v1593_v40, %v1181_v32 }
 0x1a9   :  { %v5263_v53 = vadd.f32 %v1606_v41, %v1594_v50 }
 0x1ab   :  { %v1636_v5 = vsel %vm5468_vm3, %v5263_v53, -inf }
 0x1ac   :  { %v1567_v43 = vpop.f32.mrf.mxu2 }
 0x1ad   :  { %v1568_v44 = vadd.f32 %v1567_v43, %v1180_v42  ;;  %v1580_v45 = vpop.f32.mrf.mxu3 }
 0x1ae   :  { %v1595_v47 = vpop.f32.mrf.mxu0 }
 0x1af   :  { %v5258_v48 = vadd.f32 %v1580_v45, %v1568_v44  ;;  %v1608_v49 = vpop.f32.mrf.mxu1 }
 0x1b1   :  { %v1624_v51 = vsel %vm5468_vm3, %v5258_v48, -inf  ;;  %vm2085_vm3 = vcmp.eq.s32.totalorder %v5185_v36, %v2069_v1 }
 0x1b2   :  { %1625 = vmax.xlane.f32.xlu1 %v1624_v51  ;;  %vm3443_vm15 = vmpackc.low %vm2085_vm3, %vm2077_vm10  ;;  %vm2094_vm3 = vcmp.eq.s32.totalorder %v5163_v14, %v2070_v3  ;;  %vm2086_vm10 = vcmp.eq.s32.totalorder %v5185_v36, %v2070_v3 }
 0x1b4   :  { %v1569_v52 = vpop.f32.mrf.mxu2 }
 0x1b5   :  { %v1582_v33 = vpop.f32.mrf.mxu3 }
 0x1b8   :  { %v1947_v63 = vpop.f32.mrf.mxu0  ;;  %v1960_v0 = vpop.f32.mrf.mxu1 }
 0x1b9   :  { %v1948_v2 = vadd.f32 %v3694_v54, %v1947_v63 }
 0x1ba   :  { %1637 = vmax.xlane.f32.xlu1 %v1636_v5 }
 0x1bb   :  { %v1961_v6 = vadd.f32 %v1960_v0, %v1948_v2 }
 0x1bd   :  { %v2154_v8 = vpack.c.bf16 %v1961_v6, %v1961_v6  ;;  %v5286_v9 = vpop.f32.mrf.mxu2  ;;  %v5288_v10 = vpop.f32.mrf.mxu3 }
 0x1bf   :  { %3390 = vmatmul.msk.bf16.vlgmr.msrb.gmra.mxu2 %vm2155_vm8, %v2154_v8  ;;  %3395 = vmatmul.msk.bf16.vlgmr.msrb.gmra.mxu3 %vm2155_vm8, %v2154_v8 }
 0x1c0   :  { %3400 = vmatmul.msk.bf16.vlgmr.msra.gmra.mxu0 %vm2155_vm8, %v2154_v8  ;;  %3405 = vmatmul.msk.bf16.vlgmr.msra.gmra.mxu1 %vm2155_vm8, %v2154_v8  ;;  %v1949_v17 = vpop.f32.mrf.mxu0  ;;  %v1962_v18 = vpop.f32.mrf.mxu1 }
 0x1c1   :  { %3427 = vmatpush.bf16.msk.msrb.mxu2 %vm5280_vm11, %v3729_v23  ;;  %3432 = vmatpush.bf16.msk.msrb.mxu3 %vm5290_vm14, %v3729_v23  ;;  %vm2102_vm11 = vcmp.eq.s32.totalorder %v5166_v15, %v2070_v3  ;;  %vm2095_vm14 = vcmp.eq.s32.totalorder %v5163_v14, %v2071_v21 }
 0x1c2   :  { %3437 = vmatpush.bf16.msk.msra.mxu0 %vm5296_vm1, %v3729_v23  ;;  %3442 = vmatpush.bf16.msk.msra.mxu1 %vm3441_vm5, %v3729_v23  ;;  %vm2096_vm1 = vcmp.eq.s32.totalorder %v5163_v14, %v2072_v20  ;;  %vm5338_vm4 = vmpackc.low %vm2102_vm11, %vm2094_vm3  ;;  %vm2097_vm5 = vcmp.eq.s32.totalorder %v5163_v14, %v2073_v22  ;;  %vm2080_vm11 = vcmp.eq.s32.totalorder %v5158_v11, %v2072_v20  ;;  %v3695_v14 = vld [vmem:[%s5464_s10] ss:$0 sm:$0xff] }
 0x1c3   :  { %vm5344_vm7 = vmpackc.low %vm2103_vm0, %vm2095_vm14  ;;  %vm2088_vm14 = vcmp.eq.s32.totalorder %v5185_v36, %v2072_v20  ;;  %v1790_v15 = vadd.f32 %v3695_v14, %v5286_v9 }
 0x1c4   :  { %vm3461_vm3 = vmpackc.low %vm2105_vm6, %vm2097_vm5 }
 0x1c5   :  { %v1791_v19 = vpop.f32.mrf.mxu2  ;;  %v1804_v62 = vpop.f32.mrf.mxu3  ;;  %3429 = vmatpush.bf16.msk.msrb.mxu2 %vm3428_vm9, %v3729_v23  ;;  %3434 = vmatpush.bf16.msk.msrb.mxu3 %vm3433_vm12, %v3729_v23  ;;  %vm2078_vm9 = vcmp.eq.s32.totalorder %v5158_v11, %v2070_v3  ;;  %vm5350_vm12 = vmpackc.low %vm2104_vm2, %vm2096_vm1  ;;  %vm2081_vm1 = vcmp.eq.s32.totalorder %v5158_v11, %v2073_v22  ;;  %vm2089_vm2 = vcmp.eq.s32.totalorder %v5185_v36, %v2073_v22 }
 0x1c6   :  { %3439 = vmatpush.bf16.msk.msra.mxu0 %vm3438_vm13, %v3729_v23  ;;  %3444 = vmatpush.bf16.msk.msra.mxu1 %vm3443_vm15, %v3729_v23  ;;  %vm2079_vm13 = vcmp.eq.s32.totalorder %v5158_v11, %v2071_v21  ;;  %vm2087_vm15 = vcmp.eq.s32.totalorder %v5185_v36, %v2071_v21  ;;  %vm3448_vm0 = vmpackc.low %vm2086_vm10, %vm2078_vm9  ;;  %v1803_v11 = vadd.f32 %v5288_v10, %v1790_v15 }
 0x1c7   :  { %vm3453_vm5 = vmpackc.low %vm2087_vm15, %vm2079_vm13 }
 0x1c8   :  { %vm3458_vm6 = vmpackc.low %vm2088_vm14, %vm2080_vm11  ;;  %v2263_v36 = vpack.c.bf16 %v1803_v11, %v1803_v11 }
 0x1c9   :  { %vm3463_vm9 = vmpackc.low %vm2089_vm2, %vm2081_vm1 }
 0x1cf   :  { %3410 = vmatmul.msk.bf16.vlgmr.msra.gmra.mxu2 %vm2155_vm8, %v2154_v8  ;;  %3415 = vmatmul.msk.bf16.vlgmr.msra.gmra.mxu3 %vm2155_vm8, %v2154_v8 }
 0x1d0   :  { %3420 = vmatmul.msk.bf16.vlgmr.msrb.gmra.mxu0 %vm2155_vm8, %v2154_v8  ;;  %3425 = vmatmul.msk.bf16.vlgmr.msrb.gmra.mxu1 %vm2155_vm8, %v2154_v8 }
 0x1d1   :  { %3447 = vmatpush.bf16.msk.msra.mxu2 %vm5338_vm4, %v3729_v23  ;;  %3452 = vmatpush.bf16.msk.msra.mxu3 %vm5344_vm7, %v3729_v23  ;;  %vm5481_vm4 = vcmask 1041408  }
 0x1d2   :  { %3457 = vmatpush.bf16.msk.msrb.mxu0 %vm5350_vm12, %v3729_v23  ;;  %3462 = vmatpush.bf16.msk.msrb.mxu1 %vm3461_vm3, %v3729_v23  ;;  %vm5483_vm7 = vmmov %vm5481_vm4 }
 0x1d3   :  { %vm5484_vm10 = vmmov %vm5481_vm4 }
 0x1d4   :  { %vm5485_vm12 = vmmov %vm5481_vm4 }
 0x1d5   :  { %3449 = vmatpush.bf16.msk.msra.mxu2 %vm3448_vm0, %v3729_v23  ;;  %3454 = vmatpush.bf16.msk.msra.mxu3 %vm3453_vm5, %v3729_v23  ;;  %vm5486_vm13 = vmmov %vm5481_vm4 }
 0x1d6   :  { %3459 = vmatpush.bf16.msk.msrb.mxu0 %vm3458_vm6, %v3729_v23  ;;  %3464 = vmatpush.bf16.msk.msrb.mxu1 %vm3463_vm9, %v3729_v23  ;;  %vm5487_vm15 = vmmov %vm5481_vm4 }
 0x1d7   :  { %vm5488_vm3 = vmmov %vm5481_vm4 }
 0x1d8   :  { %vm5489_vm11 = vmmov %vm5488_vm3 }
 0x1d9   :  { %vm5490_vm14 = vmmov %vm5488_vm3 }
 0x1da   :  { %vm5491_vm0 = vmmov %vm5488_vm3 }
 0x1db   :  { %vm5492_vm1 = vmmov %vm5491_vm0 }
 0x1dc   :  { %vm5493_vm2 = vmmov %vm5491_vm0 }
 0x1dd   :  { %vm5494_vm5 = vmmov %vm5491_vm0 }
 0x1de   :  { %vm5495_vm6 = vmmov %vm5491_vm0 }
 0x1df   :  { %3430 = vmatmul.msk.bf16.vlgmr.msrb.gmra.mxu2 %vm2155_vm8, %v2263_v36  ;;  %3435 = vmatmul.msk.bf16.vlgmr.msrb.gmra.mxu3 %vm2155_vm8, %v2263_v36  ;;  %vm5496_vm9 = vmmov %vm5491_vm0 }
 0x1e0   :  { %3440 = vmatmul.msk.bf16.vlgmr.msra.gmra.mxu0 %vm2155_vm8, %v2263_v36  ;;  %3445 = vmatmul.msk.bf16.vlgmr.msra.gmra.mxu1 %vm2155_vm8, %v2263_v36 }
 0x1ef   :  { %3450 = vmatmul.msk.bf16.vlgmr.msra.gmra.mxu2 %vm2155_vm8, %v2263_v36  ;;  %3455 = vmatmul.msk.bf16.vlgmr.msra.gmra.mxu3 %vm2155_vm8, %v2263_v36 }
 0x1f0   :  { %3460 = vmatmul.msk.bf16.vlgmr.msrb.gmra.mxu0 %vm2155_vm8, %v2263_v36  ;;  %3465 = vmatmul.msk.bf16.vlgmr.msrb.gmra.mxu1 %vm2155_vm8, %v2263_v36  ;;  %vm5482_vm8 = vmmov %vm5481_vm4 }
 0x225   :  { %v5393_v23 = vpop.xlane.xlu1 %1625 }
 0x226   :  { %v1627_v14 = vsub.f32 %v5258_v48, %v5393_v23 }
 0x22d   :  { %v1638_v26 = vpop.xlane.xlu1 %1637 }
 0x22e   :  { %v1639_v46 = vsub.f32 %v5263_v53, %v1638_v26  ;;  %v1628_v26 = vmul.f32 1.442695, %v1627_v14 }
 0x230   :  { %v1640_v29 = vmul.f32 1.442695, %v1639_v46  ;;  %v1612_v46 = vsel %vm5490_vm14, %v5199_v24, -inf }
 0x232   :  { %3698 = vpow2.f32 %v1640_v29 }
 0x233   :  { %3700 = vpow2.f32 %v1628_v26 }
 0x238   :  { %v5396_v55 = vpop.eup %3698 }
 0x239   :  { %v1642_v30 = vsel %vm5481_vm4, %v5396_v55, 0.0  ;;  %v3701_v29 = vpop.eup %3700  ;;  %vm5497_vm4 = vmmov %vm5491_vm0 }
 0x23a   :  { %1643 = vadd.xlane.f32.xlu1 %v1642_v30  ;;  %v1630_v30 = vsel %vm5491_vm0, %v3701_v29, 0.0 }
 0x23d   :  { %v2194_v56 = vpop.f32.mrf.mxu0  ;;  %v2207_v4 = vpop.f32.mrf.mxu1 }
 0x242   :  { %v2168_v58 = vpop.f32.mrf.mxu2  ;;  %v2181_v59 = vpop.f32.mrf.mxu3 }
 0x245   :  { %v2196_v13 = vpop.f32.mrf.mxu0  ;;  %v2209_v31 = vpop.f32.mrf.mxu1 }
 0x24a   :  { %v2170_v34 = vpop.f32.mrf.mxu2  ;;  %v2183_v35 = vpop.f32.mrf.mxu3 }
 0x24d   :  { %v2246_v37 = vpop.f32.mrf.mxu0  ;;  %v2259_v38 = vpop.f32.mrf.mxu1 }
 0x252   :  { %v2220_v39 = vpop.f32.mrf.mxu2  ;;  %v2233_v40 = vpop.f32.mrf.mxu3 }
 0x255   :  { %v2248_v41 = vpop.f32.mrf.mxu0  ;;  %v2261_v42 = vpop.f32.mrf.mxu1 }
 0x25a   :  { %v2222_v43 = vpop.f32.mrf.mxu2  ;;  %v2235_v32 = vpop.f32.mrf.mxu3 }
 0x25d   :  { %v2302_v44 = vpop.f32.mrf.mxu0  ;;  %v2315_v45 = vpop.f32.mrf.mxu1 }
 0x25e   :  { %v2373_v61 = vmul.f32 %v2302_v44, %v2194_v56  ;;  %v2374_v63 = vmul.f32 %v2315_v45, %v2207_v4 }
 0x260   :  { %v2381_v8 = vsel %vm5484_vm10, %v2373_v61, -inf  ;;  %v2382_v9 = vsel %vm5485_vm12, %v2374_v63, -inf  ;;  %vm5500_vm10 = vmmov %vm5491_vm0  ;;  %vm2461_vm12 = vcmask 1045508  }
 0x262   :  { %v2276_v47 = vpop.f32.mrf.mxu2  ;;  %v2289_v49 = vpop.f32.mrf.mxu3 }
 0x263   :  { %v2371_v0 = vmul.f32 %v2276_v47, %v2168_v58  ;;  %v2372_v1 = vmul.f32 %v2289_v49, %v2181_v59 }
 0x265   :  { %v2304_v50 = vpop.f32.mrf.mxu0  ;;  %v2317_v51 = vpop.f32.mrf.mxu1  ;;  %v2379_v18 = vsel %vm5486_vm13, %v2371_v0, -inf  ;;  %v2380_v19 = vsel %vm5487_vm15, %v2372_v1, -inf  ;;  %vm2463_vm13 = vcmask 1043456   ;;  %vm5501_vm15 = vmmov %vm5491_vm0 }
 0x26a   :  { %v2278_v52 = vpop.f32.mrf.mxu2  ;;  %v2291_v53 = vpop.f32.mrf.mxu3 }
 0x26d   :  { %v2354_v33 = vpop.f32.mrf.mxu0  ;;  %v2367_v54 = vpop.f32.mrf.mxu1 }
 0x26e   :  { %v5400_v57 = vmul.f32 %v2354_v33, %v2246_v37  ;;  %v5402_v60 = vmul.f32 %v2367_v54, %v2259_v38 }
 0x270   :  { %v2387_v2 = vsel %vm5482_vm8, %v5400_v57, -inf  ;;  %v2389_v5 = vsel %vm5483_vm7, %v5402_v60, -inf  ;;  %vm5498_vm8 = vmmov %vm5491_vm0 }
 0x271   :  { %v2388_v16 = vmax.f32 %v2381_v8, %v2387_v2  ;;  %v2390_v17 = vmax.f32 %v2382_v9, %v2389_v5  ;;  %vm5499_vm7 = vmmov %vm5491_vm0 }
 0x272   :  { %v2328_v6 = vpop.f32.mrf.mxu2  ;;  %v2341_v7 = vpop.f32.mrf.mxu3 }
 0x273   :  { %v2375_v10 = vmul.f32 %v2328_v6, %v2220_v39  ;;  %v2376_v12 = vmul.f32 %v2341_v7, %v2233_v40  ;;  %v2392_v25 = vmax.f32 %v2388_v16, %v2390_v17 }
 0x275   :  { %v2383_v62 = vsel %vm5488_vm3, %v2375_v10, -inf  ;;  %v2385_v3 = vsel %vm5489_vm11, %v2376_v12, -inf  ;;  %v2356_v21 = vpop.f32.mrf.mxu0  ;;  %v2369_v20 = vpop.f32.mrf.mxu1  ;;  %vm5502_vm3 = vmmov %vm5491_vm0 }
 0x276   :  { %v2384_v22 = vmax.f32 %v2379_v18, %v2383_v62  ;;  %v2386_v28 = vmax.f32 %v2380_v19, %v2385_v3 }
 0x278   :  { %v2391_v27 = vmax.f32 %v2384_v22, %v2386_v28 }
 0x27a   :  { %v2330_v15 = vpop.f32.mrf.mxu2  ;;  %v2343_v11 = vpop.f32.mrf.mxu3  ;;  %v2393_v36 = vmax.f32 %v2391_v27, %v2392_v25 }
 0x27c   :  { %2394 = vmax.xlane.f32.xlu0 %v2393_v36 }
 0x284   :  { %1613 = vmax.xlane.f32.xlu0 %v1612_v46 }
 0x28c   :  { %1631 = vadd.xlane.f32.xlu0 %v1630_v30 }
 0x2ad   :  { %v1644_v56 = vpop.xlane.xlu1 %1643 }
 0x2ae   :  { %3702 = vrcp.f32 %v1644_v56 }
 0x2b4   :  { %v3703_v4 = vpop.eup %3702 }
 0x2b5   :  { %v1646_v58 = vmul.f32 %v3703_v4, %v5396_v55 }
 0x2b7   :  { %1647 = vst [vmem:[%s5466_s13 + $0x6] sm:$0x3] %v1646_v58 }
 0x2ef   :  { %v2395_v48 = vpop.xlane.xlu0 %2394 }
 0x2f0   :  { %v2396_v23 = vsub.f32 %v2371_v0, %v2395_v48  ;;  %v2397_v59 = vsub.f32 %v2372_v1, %v2395_v48  ;;  %v2398_v13 = vsub.f32 %v2373_v61, %v2395_v48  ;;  %v2399_v31 = vsub.f32 %v2374_v63, %v2395_v48 }
 0x2f1   :  { %v2400_v34 = vsub.f32 %v2375_v10, %v2395_v48  ;;  %v2401_v39 = vsub.f32 %v2376_v12, %v2395_v48  ;;  %v2402_v41 = vsub.f32 %v5400_v57, %v2395_v48  ;;  %v2403_v43 = vsub.f32 %v5402_v60, %v2395_v48 }
 0x2f2   :  { %v2404_v35 = vmul.f32 1.442695, %v2396_v23  ;;  %v2406_v37 = vmul.f32 1.442695, %v2397_v59  ;;  %v2408_v38 = vmul.f32 1.442695, %v2398_v13 }
 0x2f3   :  { %v2410_v40 = vmul.f32 1.442695, %v2399_v31  ;;  %v2412_v55 = vmul.f32 1.442695, %v2400_v34  ;;  %v2414_v32 = vmul.f32 1.442695, %v2401_v39 }
 0x2f4   :  { %3704 = vpow2.f32 %v2404_v35  ;;  %v2416_v44 = vmul.f32 1.442695, %v2402_v41  ;;  %v2418_v49 = vmul.f32 1.442695, %v2403_v43 }
 0x2f5   :  { %3706 = vpow2.f32 %v2406_v37 }
 0x2f6   :  { %3708 = vpow2.f32 %v2408_v38 }
 0x2f7   :  { %v1614_v42 = vpop.xlane.xlu0 %1613  ;;  %3710 = vpow2.f32 %v2410_v40 }
 0x2f8   :  { %3712 = vpow2.f32 %v2412_v55  ;;  %v1615_v1 = vsub.f32 %v5199_v24, %v1614_v42 }
 0x2f9   :  { %3714 = vpow2.f32 %v2414_v32 }
 0x2fa   :  { %v3705_v45 = vpop.eup %3704  ;;  %3716 = vpow2.f32 %v2416_v44  ;;  %v1616_v10 = vmul.f32 1.442695, %v1615_v1 }
 0x2fb   :  { %v3707_v47 = vpop.eup %3706  ;;  %v2420_v50 = vsel %vm5492_vm1, %v3705_v45, 0.0  ;;  %3718 = vpow2.f32 %v2418_v49 }
 0x2fc   :  { %v3709_v51 = vpop.eup %3708  ;;  %v2421_v52 = vsel %vm5493_vm2, %v3707_v47, 0.0 }
 0x2fd   :  { %v3711_v53 = vpop.eup %3710  ;;  %v2422_v33 = vadd.f32 %v2421_v52, %v2420_v50  ;;  %v2423_v54 = vsel %vm5494_vm5, %v3709_v51, 0.0 }
 0x2fe   :  { %v3713_v57 = vpop.eup %3712  ;;  %v2425_v63 = vsel %vm5495_vm6, %v3711_v53, 0.0 }
 0x2ff   :  { %v1632_v60 = vpop.xlane.xlu0 %1631  ;;  %v2424_v61 = vadd.f32 %v2423_v54, %v2422_v33  ;;  %v3715_v0 = vpop.eup %3714  ;;  %v2427_v5 = vsel %vm5496_vm9, %v3713_v57, 0.0 }
 0x300   :  { %3720 = vrcp.f32 %v1632_v60  ;;  %v3717_v6 = vpop.eup %3716  ;;  %v2429_v8 = vsel %vm5497_vm4, %v3715_v0, 0.0 }
 0x301   :  { %v2426_v2 = vadd.f32 %v2425_v63, %v2424_v61  ;;  %v3719_v9 = vpop.eup %3718  ;;  %v2431_v17 = vsel %vm5498_vm8, %v3717_v6, 0.0  ;;  %3722 = vpow2.f32 %v1616_v10 }
 0x302   :  { %v2433_v62 = vsel %vm5499_vm7, %v3719_v9, 0.0 }
 0x303   :  { %v2428_v7 = vadd.f32 %v2427_v5, %v2426_v2 }
 0x305   :  { %v2430_v12 = vadd.f32 %v2429_v8, %v2428_v7 }
 0x306   :  { %v3721_v16 = vpop.eup %3720 }
 0x307   :  { %v1634_v18 = vmul.f32 %v3721_v16, %v3701_v29  ;;  %v2432_v19 = vadd.f32 %v2431_v17, %v2430_v12  ;;  %v3723_v3 = vpop.eup %3722 }
 0x308   :  { %v1618_v21 = vsel %vm5500_vm10, %v3723_v3, 0.0 }
 0x309   :  { %1635 = vst [vmem:[%s5466_s13 + $0x4] sm:$0x3] %v1634_v18  ;;  %v2434_v24 = vadd.f32 %v2433_v62, %v2432_v19 }
 0x30b   :  { %2435 = vadd.xlane.f32.xlu2 %v2434_v24 }
 0x313   :  { %1619 = vadd.xlane.f32.xlu2 %v1618_v21 }
 0x37e   :  { %v2436_v20 = vpop.xlane.xlu2 %2435 }
 0x37f   :  { %3724 = vrcp.f32 %v2436_v20 }
 0x385   :  { %v3725_v22 = vpop.eup %3724 }
 0x386   :  { %v2439_v28 = vmul.f32 %v3725_v22, %v3707_v47  ;;  %v2440_v27 = vmul.f32 %v3725_v22, %v3709_v51  ;;  %v2441_v25 = vmul.f32 %v3725_v22, %v3711_v53  ;;  %v1620_v14 = vpop.xlane.xlu2 %1619  ;;  %v2438_v15 = vmul.f32 %v3725_v22, %v3705_v45 }
 0x387   :  { %v2443_v11 = vmul.f32 %v3725_v22, %v3715_v0  ;;  %v2444_v36 = vmul.f32 %v3725_v22, %v3717_v6  ;;  %v2445_v26 = vmul.f32 %v3725_v22, %v3719_v9  ;;  %3726 = vrcp.f32 %v1620_v14 }
 0x388   :  { %v2454_v46 = vrot.slane %v2439_v28, 6  ;;  %v2455_v29 = vrot.slane %v2440_v27, 4  ;;  %v2456_v30 = vrot.slane %v2441_v25, 2  ;;  %v2442_v56 = vmul.f32 %v3725_v22, %v3713_v57 }
 0x389   :  { %v2457_v4 = vrot.slane %v2443_v11, 6  ;;  %v2458_v58 = vrot.slane %v2444_v36, 4  ;;  %v2459_v48 = vrot.slane %v2445_v26, 2 }
 0x38a   :  { %v2460_v23 = vsel %vm5501_vm15, %v2438_v15, %v2454_v46  ;;  %v2462_v59 = vsel %vm2461_vm12, %v2455_v29, %v2456_v30 }
 0x38b   :  { %v2464_v13 = vsel %vm2463_vm13, %v2460_v23, %v2462_v59  ;;  %v2465_v31 = vsel %vm5502_vm3, %v2442_v56, %v2457_v4  ;;  %v2466_v34 = vsel %vm2461_vm12, %v2458_v58, %v2459_v48 }
 0x38c   :  { %v2467_v35 = vsel %vm2463_vm13, %v2465_v31, %v2466_v34  ;;  %2470 = vst [vmem:[%s5467_s14] sm:$0xff] %v2464_v13 }
 0x38d   :  { %2471 = vst [vmem:[%s5467_s14 + $0x8] sm:$0xff] %v2467_v35  ;;  %v3727_v37 = vpop.eup %3726 }
 0x38e   :  { %v1622_v38 = vmul.f32 %v3727_v37, %v3723_v3 }
 0x390   :  { %1623 = vst [vmem:[%s5466_s13 + $0x2] sm:$0x3] %v1622_v38 }

</bundles_post_ra>
